<compile_context>
chip_gen: v7x
topology: tpu7x:2x2x1
jax: 0.10.0
libtpu: 0.0.40
codegen_flags: <defaults>
</compile_context>

<pallas_src>
import functools

import jax
import jax.numpy as jnp
from jax.experimental import pallas as pl
from jax.experimental.pallas import tpu as pltpu

_BN_EPS = 1e-5
_LANE = 128


def _round_up(x, m):
    return (x + m - 1) // m * m


def _pad_to(a, shape):
    return jnp.pad(a, [(0, t - s) for s, t in zip(a.shape, shape)])


def _fold_bn(gamma, beta, mean, var, eps=_BN_EPS):
    scale = gamma / jnp.sqrt(var + eps)
    return scale, beta - mean * scale


# ----------------------------------------------------------------------------
# Fused kernel. Per (batch b, row-slab s) grid step:
#   y1 = relu(x_aug @ W1_aug)                          (1x1 conv, BN folded; bias via ones-channel)
#   y2 = relu(sum_{kh,kw} shift(y1) @ W2s[kh,kw] + b2) (3x3 conv, BN folded)
#   o  = relu(y2 @ W3s + b3 + x_skip)                  (1x1 conv, BN folded, identity skip)
# y1 lives in a flattened ((th+2)*wp, cmid) VMEM buffer (1 halo row above/below);
# the 9 conv2 taps are contiguous offset-slabs of that buffer.
# ----------------------------------------------------------------------------
def _bottleneck_kernel(xm_ref, xh0_ref, xh1_ref,
                       w1_ref, w2_ref, b2_ref, w3_ref, b3_ref,
                       o_ref, y1_buf, *, th, w, wp):
    s = pl.program_id(1)
    ns = pl.num_programs(1)
    cin_p = w1_ref.shape[0]
    cmid = w1_ref.shape[1]
    cout = w3_ref.shape[1]

    w1 = w1_ref[...]

    # ---- stage 1: 1x1 conv (+folded BN) + ReLU, written straight into y1_buf.
    # The padded input carries a ones-channel at data positions, so the bn1 shift
    # rides the matmul and conv2's zero-padding columns are exact zeros.
    def conv1(x3d, rows):
        x2d = x3d.reshape(rows, cin_p).astype(jnp.bfloat16)
        y = jnp.dot(x2d, w1, preferred_element_type=jnp.float32)
        return jnp.maximum(y, 0.0).astype(jnp.bfloat16)

    y1_buf[pl.ds(wp, th * wp), :] = conv1(xm_ref[...], th * wp)       # main rows
    y1_buf[pl.ds(0, wp), :] = conv1(xh0_ref[...], wp)                 # row above
    y1_buf[pl.ds((th + 1) * wp, wp), :] = conv1(xh1_ref[...], wp)     # row below

    # Image-boundary slabs: the out-of-image halo row is conv2 zero padding.
    @pl.when(s == 0)
    def _():
        y1_buf[pl.ds(0, wp), :] = jnp.zeros((wp, cmid), jnp.bfloat16)

    @pl.when(s == ns - 1)
    def _():
        y1_buf[pl.ds((th + 1) * wp, wp), :] = jnp.zeros((wp, cmid), jnp.bfloat16)

    # ---- stage 2: 3x3 conv (+BN) + ReLU.  Each tap is a contiguous
    # (row-flattened, sublane-shifted) slab of y1_buf: no strided window copies.
    acc = jnp.zeros((th * wp, cmid), jnp.float32)
    for kh in range(3):
        for kw in range(3):
            patch = y1_buf[pl.ds(kh * wp + kw, th * wp), :]
            acc = acc + jnp.dot(patch, w2_ref[kh * 3 + kw],
                                preferred_element_type=jnp.float32)
    # Valid output columns of the width-padded accumulator are [0, w).
    y2 = jnp.maximum(acc.reshape(th, wp, cmid)[:, :w, :] + b2_ref[...], 0.0)
    y2 = y2.reshape(th * w, cmid).astype(jnp.bfloat16)

    # ---- stage 3: 1x1 conv (+BN) + identity residual + ReLU -----------------
    out = jnp.dot(y2, w3_ref[...], preferred_element_type=jnp.float32) + b3_ref[...]
    skip = xm_ref[:, 1:w + 1, :cout].reshape(th * w, cout)            # exact f32 residual
    o_ref[...] = jnp.maximum(out + skip, 0.0).astype(o_ref.dtype)


# ----------------------------------------------------------------------------
# VMEM budgeting / row-tile selection
# ----------------------------------------------------------------------------
def _vmem_limit_bytes():
    cap = 64 * 2**20                       # conservative fallback (v7x-sized VMEM)
    try:
        cap = int(pltpu.get_tpu_info().vmem_capacity_bytes)
    except Exception:
        pass
    return (cap * 3) // 4                  # 96 MiB on v5e/v6e, 48 MiB on v7x


def _estimate_vmem(th, w, wp, cin_p, cmid_p, cout_p):
    bf16, f32 = 2, 4
    weights = 2 * bf16 * (cin_p * cmid_p + 9 * cmid_p * cmid_p + cmid_p * cout_p)
    biases = 2 * f32 * (cmid_p + cout_p)
    x_in = 2 * f32 * (th + 2) * wp * cin_p          # main + halo streams (double-buffered)
    out = 2 * f32 * th * w * cout_p                 # output block (double-buffered)
    y1 = bf16 * (th + 3) * wp * cmid_p              # y1 scratch
    temps = (2 * f32 * th * wp * cmid_p             # stage-1 f32 + stage-2 accumulator
             + bf16 * th * wp * cin_p               # bf16 cast of the input slab
             + 2 * f32 * th * w * cout_p)           # stage-3 result + residual slab
    return weights + biases + x_in + out + y1 + temps


def _pick_row_tile(h, w, wp, cin_p, cmid_p, cout_p, budget_bytes):
    cands = [t for t in range(1, h + 1)
             if h % t == 0 and (t == h or (t * w) % 8 == 0)]
    for th in sorted(cands, reverse=True):
        if _estimate_vmem(th, w, wp, cin_p, cmid_p, cout_p) <= budget_bytes:
            return th
    return cands[0]


# ----------------------------------------------------------------------------
# Wrapper
# ----------------------------------------------------------------------------
def bottleneck_forward(x_nchw, p, stride=1, row_tile=None):
    """BottleNeck forward (downsample=None => identity skip; requires stride == 1 and
    in_channels == out_channels * 4, exactly like the PyTorch module)."""
    # TODO(synk): stride != 1 / downsample path not implemented (the module is used
    # here with downsample=None, so only the identity-skip configuration is valid).
    assert stride == 1
    x = jnp.transpose(x_nchw, (0, 2, 3, 1)).astype(jnp.float32)   # NCHW -> NHWC
    n, h, w, cin = x.shape
    c = p["w1"].shape[0]
    cexp = p["w3"].shape[0]
    assert cin == cexp, "identity skip requires in_channels == out_channels * 4"

    cin_p = _round_up(cin + 1, _LANE)      # +1: homogeneous bias / ones channel
    cmid_p = _round_up(c, _LANE)
    cout_p = _round_up(cexp, _LANE)
    wp = _round_up(w + 2, 8)               # width incl. 3x3 halo columns, 8-aligned

    # Append the ones-channel, then zero-pad width (1 left, rest right) and channels.
    x1 = jnp.concatenate([x, jnp.ones((n, h, w, 1), jnp.float32)], axis=-1)
    xp = jnp.pad(x1, ((0, 0), (0, 0), (1, wp - w - 1), (0, cin_p - cin - 1)))

    # Fold BN scale into the conv weights (bf16 MXU operands); bn1's shift rides the
    # ones-channel of the input, bn2/bn3 shifts stay as f32 biases.
    s1, b1 = _fold_bn(p["g1"], p["b1"], p["m1"], p["v1"])
    s2, b2 = _fold_bn(p["g2"], p["b2"], p["m2"], p["v2"])
    s3, b3 = _fold_bn(p["g3"], p["b3"], p["m3"], p["v3"])

    w1m = p["w1"].reshape(c, cin).T * s1[None, :]                          # (cin, c)
    w1a = jnp.concatenate([w1m, b1[None, :]], axis=0)                      # (cin+1, c)
    w2m = jnp.transpose(p["w2"], (2, 3, 1, 0)) * s2[None, None, None, :]   # (3,3,c,c)
    w3m = p["w3"].reshape(cexp, c).T * s3[None, :]                         # (c, 4c)

    w1p = _pad_to(w1a, (cin_p, cmid_p)).astype(jnp.bfloat16)
    w2p = _pad_to(w2m, (3, 3, cmid_p, cmid_p)).reshape(9, cmid_p, cmid_p).astype(jnp.bfloat16)
    w3p = _pad_to(w3m, (cmid_p, cout_p)).astype(jnp.bfloat16)
    b2p = _pad_to(b2.reshape(1, c), (1, cmid_p)).astype(jnp.float32)
    b3p = _pad_to(b3.reshape(1, cexp), (1, cout_p)).astype(jnp.float32)

    vmem_limit = _vmem_limit_bytes()
    th = row_tile if row_tile is not None else _pick_row_tile(
        h, w, wp, cin_p, cmid_p, cout_p, int(vmem_limit * 0.85))
    assert h % th == 0, "image height must be divisible by the row tile"
    grid = (n, h // th)

    kernel = functools.partial(_bottleneck_kernel, th=th, w=w, wp=wp)

    out_p = pl.pallas_call(
        kernel,
        out_shape=jax.ShapeDtypeStruct((n, h * w, cout_p), jnp.float32),
        grid=grid,
        in_specs=[
            # main slab: the th output rows (also the f32 residual source)
            pl.BlockSpec((None, th, wp, cin_p), lambda b, s: (b, s, 0, 0)),
            # halo rows above / below (clamped at the image border; boundary slabs
            # zero the corresponding y1 rows in-kernel)
            pl.BlockSpec((None, 1, wp, cin_p),
                         lambda b, s: (b, jnp.maximum(s * th - 1, 0), 0, 0)),
            pl.BlockSpec((None, 1, wp, cin_p),
                         lambda b, s: (b, jnp.minimum(s * th + th, h - 1), 0, 0)),
            # weights / biases: constant index_map -> fetched once, stay resident
            pl.BlockSpec((cin_p, cmid_p), lambda b, s: (0, 0)),
            pl.BlockSpec((9, cmid_p, cmid_p), lambda b, s: (0, 0, 0)),
            pl.BlockSpec((1, cmid_p), lambda b, s: (0, 0)),
            pl.BlockSpec((cmid_p, cout_p), lambda b, s: (0, 0)),
            pl.BlockSpec((1, cout_p), lambda b, s: (0, 0)),
        ],
        out_specs=pl.BlockSpec((None, th * w, cout_p), lambda b, s: (b, s, 0)),
        scratch_shapes=[pltpu.VMEM(((th + 3) * wp, cmid_p), jnp.bfloat16)],
        compiler_params=pltpu.CompilerParams(
            dimension_semantics=("parallel", "parallel"),
            vmem_limit_bytes=int(vmem_limit),
        ),
    )(xp, xp, xp, w1p, w2p, b2p, w3p, b3p)

    out = out_p.reshape(n, h, w, cout_p)[:, :, :, :cexp]
    return jnp.transpose(out, (0, 3, 1, 2))   # back to NCHW (PyTorch layout)


# ----------------------------------------------------------------------------
# Pure-JAX reference (lax.conv, f32) for a correctness check
# ----------------------------------------------------------------------------
def bottleneck_reference(x_nchw, p):
    x = jnp.transpose(x_nchw, (0, 2, 3, 1)).astype(jnp.float32)
    dn = ("NHWC", "HWIO", "NHWC")

    def conv(x, w_oihw, pad):
        w = jnp.transpose(w_oihw, (2, 3, 1, 0))
        return jax.lax.conv_general_dilated(x, w, (1, 1), pad, dimension_numbers=dn)

    def bn(x, g, b, m, v):
        return (x - m) / jnp.sqrt(v + _BN_EPS) * g + b

    y = jax.nn.relu(bn(conv(x, p["w1"], "VALID"), p["g1"], p["b1"], p["m1"], p["v1"]))
    y = jax.nn.relu(bn(conv(y, p["w2"], ((1, 1), (1, 1))), p["g2"], p["b2"], p["m2"], p["v2"]))
    y = bn(conv(y, p["w3"], "VALID"), p["g3"], p["b3"], p["m3"], p["v3"])
    y = jax.nn.relu(y + x)
    return jnp.transpose(y, (0, 3, 1, 2))


# ----------------------------------------------------------------------------
# Deterministic parameter init (eval-mode BatchNorm statistics / affine params)
# ----------------------------------------------------------------------------
def init_params(key, in_channels, out_channels):
    exp = 4
    ks = jax.random.split(key, 12)
    c, cexp = out_channels, out_channels * exp
    return {
        "w1": 0.1 * jax.random.normal(ks[0], (c, in_channels, 1, 1), jnp.float32),
        "w2": 0.1 * jax.random.normal(ks[1], (c, c, 3, 3), jnp.float32),
        "w3": 0.1 * jax.random.normal(ks[2], (cexp, c, 1, 1), jnp.float32),
        "g1": jax.random.uniform(ks[3], (c,), jnp.float32, 0.5, 1.5),
        "b1": 0.1 * jax.random.normal(ks[4], (c,), jnp.float32),
        "m1": 0.1 * jax.random.normal(ks[5], (c,), jnp.float32),
        "v1": jax.random.uniform(ks[6], (c,), jnp.float32, 0.5, 1.5),
        "g2": jax.random.uniform(ks[7], (c,), jnp.float32, 0.5, 1.5),
        "b2": 0.1 * jax.random.normal(ks[8], (c,), jnp.float32),
        "m2": 0.1 * jax.random.normal(ks[9], (c,), jnp.float32),
        "v2": jax.random.uniform(ks[10], (c,), jnp.float32, 0.5, 1.5),
        "g3": jax.random.uniform(ks[11], (cexp,), jnp.float32, 0.5, 1.5),
        "b3": jnp.linspace(-0.1, 0.1, cexp, dtype=jnp.float32),
        "m3": jnp.linspace(-0.05, 0.05, cexp, dtype=jnp.float32),
        "v3": jnp.linspace(0.8, 1.2, cexp, dtype=jnp.float32),
    }


if __name__ == "__main__":
    # Identity skip requires in_channels == out_channels * expansion and stride == 1
    # (downsample=None), exactly like the PyTorch module configuration.
    batch, out_channels, spatial = 2, 4, 16
    in_channels = out_channels * 4  # = 16

    key = jax.random.PRNGKey(0)
    kx, kp = jax.random.split(key)
    x = jax.random.normal(kx, (batch, in_channels, spatial, spatial), jnp.float32)
    params = init_params(kp, in_channels, out_channels)

    ref = jax.block_until_ready(bottleneck_reference(x, params))

    # Auto-picked row tile (single slab per image).
    fwd = jax.jit(lambda x, p: bottleneck_forward(x, p))
    out = jax.block_until_ready(fwd(x, params))
    assert out.shape == (batch, in_channels, spatial, spatial)
    assert jnp.allclose(out, ref, rtol=3e-2, atol=3e-2), "mismatch vs JAX reference"

    # Forced small row tile: exercises the multi-slab halo / boundary path.
    fwd4 = jax.jit(lambda x, p: bottleneck_forward(x, p, row_tile=4))
    out4 = jax.block_until_ready(fwd4(x, params))
    assert jnp.allclose(out4, ref, rtol=3e-2, atol=3e-2), "mismatch (row_tile=4)"

    print("KERNEL_OK")
</pallas_src>

<mosaic_0001>
module attributes {stable_mosaic.version = 11 : i64} {
  func.func @_bottleneck_kernel(%arg0: i32, %arg1: i32, %arg2: memref<1x16x24x128xf32, #tpu.memory_space<vmem>>, %arg3: memref<1x1x24x128xf32, #tpu.memory_space<vmem>>, %arg4: memref<1x1x24x128xf32, #tpu.memory_space<vmem>>, %arg5: memref<128x128xbf16, #tpu.memory_space<vmem>>, %arg6: memref<9x128x128xbf16, #tpu.memory_space<vmem>>, %arg7: memref<1x128xf32, #tpu.memory_space<vmem>>, %arg8: memref<128x128xbf16, #tpu.memory_space<vmem>>, %arg9: memref<1x128xf32, #tpu.memory_space<vmem>>, %arg10: memref<1x256x128xf32, #tpu.memory_space<vmem>>, %arg11: memref<456x128xbf16, #tpu.memory_space<vmem>>) attributes {dimension_semantics = [#tpu.dimension_semantics<parallel>, #tpu.dimension_semantics<parallel>], iteration_bounds = array<i64: 2, 1>, scalar_prefetch = 0 : i64, scratch_operands = 1 : i64, tpu.core_type = #tpu.core_type<tc>, window_params = [{transform_indices = @transform_0, window_bounds = array<i64: 1, 16, 24, 128>}, {transform_indices = @transform_1, window_bounds = array<i64: 1, 1, 24, 128>}, {transform_indices = @transform_2, window_bounds = array<i64: 1, 1, 24, 128>}, {pipeline_mode = #tpu.pipeline_mode<synchronous>, transform_indices = @transform_3, window_bounds = array<i64: 128, 128>}, {pipeline_mode = #tpu.pipeline_mode<synchronous>, transform_indices = @transform_4, window_bounds = array<i64: 9, 128, 128>}, {pipeline_mode = #tpu.pipeline_mode<synchronous>, transform_indices = @transform_5, window_bounds = array<i64: 1, 128>}, {pipeline_mode = #tpu.pipeline_mode<synchronous>, transform_indices = @transform_6, window_bounds = array<i64: 128, 128>}, {pipeline_mode = #tpu.pipeline_mode<synchronous>, transform_indices = @transform_7, window_bounds = array<i64: 1, 128>}, {transform_indices = @transform_8, window_bounds = array<i64: 1, 256, 128>}]} {
    %c0 = arith.constant 0 : index
    %c0_0 = arith.constant 0 : index
    %0 = vector.load %arg5[%c0, %c0_0] : memref<128x128xbf16, #tpu.memory_space<vmem>>, vector<128x128xbf16>
    %c0_1 = arith.constant 0 : index
    %c0_2 = arith.constant 0 : index
    %c0_3 = arith.constant 0 : index
    %c0_4 = arith.constant 0 : index
    %1 = vector.load %arg2[%c0_1, %c0_2, %c0_3, %c0_4] : memref<1x16x24x128xf32, #tpu.memory_space<vmem>>, vector<1x16x24x128xf32>
    %2 = vector.shape_cast %1 : vector<1x16x24x128xf32> to vector<16x24x128xf32>
    %3 = vector.shape_cast %2 : vector<16x24x128xf32> to vector<384x128xf32>
    %4 = arith.truncf %3 : vector<384x128xf32> to vector<384x128xbf16>
    %cst = arith.constant dense<0.000000e+00> : vector<384x128xf32>
    %5 = tpu.matmul %4, %0, %cst {dimension_numbers = #tpu.dot_dimension_numbers<[1], [0], [0], [1], [0, 0, 1, 1], [], []>} : vector<384x128xbf16>, vector<128x128xbf16>, vector<384x128xf32> -> vector<384x128xf32>
    %cst_5 = arith.constant 0.000000e+00 : f32
    %6 = vector.broadcast %cst_5 : f32 to vector<384x128xf32>
    %7 = arith.maximumf %5, %6 : vector<384x128xf32>
    %8 = arith.truncf %7 : vector<384x128xf32> to vector<384x128xbf16>
    %c24 = arith.constant 24 : index
    %c0_6 = arith.constant 0 : index
    %9 = vector.load %arg11[%c24, %c0_6] : memref<456x128xbf16, #tpu.memory_space<vmem>>, vector<384x128xbf16>
    tpu.vector_store %arg11[%c24, %c0_6], %8 {strides = array<i32>} : memref<456x128xbf16, #tpu.memory_space<vmem>>, vector<384x128xbf16>,
    %c0_7 = arith.constant 0 : index
    %c0_8 = arith.constant 0 : index
    %c0_9 = arith.constant 0 : index
    %c0_10 = arith.constant 0 : index
    %10 = vector.load %arg3[%c0_7, %c0_8, %c0_9, %c0_10] : memref<1x1x24x128xf32, #tpu.memory_space<vmem>>, vector<1x1x24x128xf32>
    %11 = vector.shape_cast %10 : vector<1x1x24x128xf32> to vector<1x24x128xf32>
    %12 = vector.shape_cast %11 : vector<1x24x128xf32> to vector<24x128xf32>
    %13 = arith.truncf %12 : vector<24x128xf32> to vector<24x128xbf16>
    %cst_11 = arith.constant dense<0.000000e+00> : vector<24x128xf32>
    %14 = tpu.matmul %13, %0, %cst_11 {dimension_numbers = #tpu.dot_dimension_numbers<[1], [0], [0], [1], [0, 0, 1, 1], [], []>} : vector<24x128xbf16>, vector<128x128xbf16>, vector<24x128xf32> -> vector<24x128xf32>
    %cst_12 = arith.constant 0.000000e+00 : f32
    %15 = vector.broadcast %cst_12 : f32 to vector<24x128xf32>
    %16 = arith.maximumf %14, %15 : vector<24x128xf32>
    %17 = arith.truncf %16 : vector<24x128xf32> to vector<24x128xbf16>
    %c0_13 = arith.constant 0 : index
    %c0_14 = arith.constant 0 : index
    %18 = vector.load %arg11[%c0_13, %c0_14] : memref<456x128xbf16, #tpu.memory_space<vmem>>, vector<24x128xbf16>
    tpu.vector_store %arg11[%c0_13, %c0_14], %17 {strides = array<i32>} : memref<456x128xbf16, #tpu.memory_space<vmem>>, vector<24x128xbf16>,
    %c0_15 = arith.constant 0 : index
    %c0_16 = arith.constant 0 : index
    %c0_17 = arith.constant 0 : index
    %c0_18 = arith.constant 0 : index
    %19 = vector.load %arg4[%c0_15, %c0_16, %c0_17, %c0_18] : memref<1x1x24x128xf32, #tpu.memory_space<vmem>>, vector<1x1x24x128xf32>
    %20 = vector.shape_cast %19 : vector<1x1x24x128xf32> to vector<1x24x128xf32>
    %21 = vector.shape_cast %20 : vector<1x24x128xf32> to vector<24x128xf32>
    %22 = arith.truncf %21 : vector<24x128xf32> to vector<24x128xbf16>
    %cst_19 = arith.constant dense<0.000000e+00> : vector<24x128xf32>
    %23 = tpu.matmul %22, %0, %cst_19 {dimension_numbers = #tpu.dot_dimension_numbers<[1], [0], [0], [1], [0, 0, 1, 1], [], []>} : vector<24x128xbf16>, vector<128x128xbf16>, vector<24x128xf32> -> vector<24x128xf32>
    %cst_20 = arith.constant 0.000000e+00 : f32
    %24 = vector.broadcast %cst_20 : f32 to vector<24x128xf32>
    %25 = arith.maximumf %23, %24 : vector<24x128xf32>
    %26 = arith.truncf %25 : vector<24x128xf32> to vector<24x128xbf16>
    %c408 = arith.constant 408 : index
    %c0_21 = arith.constant 0 : index
    %27 = vector.load %arg11[%c408, %c0_21] : memref<456x128xbf16, #tpu.memory_space<vmem>>, vector<24x128xbf16>
    tpu.vector_store %arg11[%c408, %c0_21], %26 {strides = array<i32>} : memref<456x128xbf16, #tpu.memory_space<vmem>>, vector<24x128xbf16>,
    %c0_i32 = arith.constant 0 : i32
    %28 = arith.cmpi eq, %arg1, %c0_i32 : i32
    %29 = arith.extui %28 : i1 to i32
    %c0_i32_22 = arith.constant 0 : i32
    %30 = arith.cmpi ne, %29, %c0_i32_22 : i32
    scf.if %30 {
      %cst_83 = arith.constant 0.000000e+00 : bf16
      %104 = vector.broadcast %cst_83 : bf16 to vector<24x128xbf16>
      %c0_84 = arith.constant 0 : index
      %c0_85 = arith.constant 0 : index
      %105 = vector.load %arg11[%c0_84, %c0_85] : memref<456x128xbf16, #tpu.memory_space<vmem>>, vector<24x128xbf16>
      tpu.vector_store %arg11[%c0_84, %c0_85], %104 {strides = array<i32>} : memref<456x128xbf16, #tpu.memory_space<vmem>>, vector<24x128xbf16>,
    } else {
    }
    %c0_i32_23 = arith.constant 0 : i32
    %31 = arith.cmpi eq, %arg1, %c0_i32_23 : i32
    %32 = arith.extui %31 : i1 to i32
    %c0_i32_24 = arith.constant 0 : i32
    %33 = arith.cmpi ne, %32, %c0_i32_24 : i32
    scf.if %33 {
      %cst_83 = arith.constant 0.000000e+00 : bf16
      %104 = vector.broadcast %cst_83 : bf16 to vector<24x128xbf16>
      %c408_84 = arith.constant 408 : index
      %c0_85 = arith.constant 0 : index
      %105 = vector.load %arg11[%c408_84, %c0_85] : memref<456x128xbf16, #tpu.memory_space<vmem>>, vector<24x128xbf16>
      tpu.vector_store %arg11[%c408_84, %c0_85], %104 {strides = array<i32>} : memref<456x128xbf16, #tpu.memory_space<vmem>>, vector<24x128xbf16>,
    } else {
    }
    %cst_25 = arith.constant 0.000000e+00 : f32
    %34 = vector.broadcast %cst_25 : f32 to vector<384x128xf32>
    %c0_26 = arith.constant 0 : index
    %c0_27 = arith.constant 0 : index
    %35 = vector.load %arg11[%c0_26, %c0_27] : memref<456x128xbf16, #tpu.memory_space<vmem>>, vector<384x128xbf16>
    %c0_28 = arith.constant 0 : index
    %c0_29 = arith.constant 0 : index
    %c0_30 = arith.constant 0 : index
    %36 = vector.load %arg6[%c0_28, %c0_29, %c0_30] : memref<9x128x128xbf16, #tpu.memory_space<vmem>>, vector<1x128x128xbf16>
    %37 = vector.shape_cast %36 : vector<1x128x128xbf16> to vector<128x128xbf16>
    %cst_31 = arith.constant dense<0.000000e+00> : vector<384x128xf32>
    %38 = tpu.matmul %35, %37, %cst_31 {dimension_numbers = #tpu.dot_dimension_numbers<[1], [0], [0], [1], [0, 0, 1, 1], [], []>} : vector<384x128xbf16>, vector<128x128xbf16>, vector<384x128xf32> -> vector<384x128xf32>
    %39 = arith.addf %34, %38 : vector<384x128xf32>
    %c1 = arith.constant 1 : index
    %c0_32 = arith.constant 0 : index
    %40 = vector.load %arg11[%c1, %c0_32] : memref<456x128xbf16, #tpu.memory_space<vmem>>, vector<384x128xbf16>
    %c1_33 = arith.constant 1 : index
    %c0_34 = arith.constant 0 : index
    %c0_35 = arith.constant 0 : index
    %41 = vector.load %arg6[%c1_33, %c0_34, %c0_35] : memref<9x128x128xbf16, #tpu.memory_space<vmem>>, vector<1x128x128xbf16>
    %42 = vector.shape_cast %41 : vector<1x128x128xbf16> to vector<128x128xbf16>
    %cst_36 = arith.constant dense<0.000000e+00> : vector<384x128xf32>
    %43 = tpu.matmul %40, %42, %cst_36 {dimension_numbers = #tpu.dot_dimension_numbers<[1], [0], [0], [1], [0, 0, 1, 1], [], []>} : vector<384x128xbf16>, vector<128x128xbf16>, vector<384x128xf32> -> vector<384x128xf32>
    %44 = arith.addf %39, %43 : vector<384x128xf32>
    %c2 = arith.constant 2 : index
    %c0_37 = arith.constant 0 : index
    %45 = vector.load %arg11[%c2, %c0_37] : memref<456x128xbf16, #tpu.memory_space<vmem>>, vector<384x128xbf16>
    %c2_38 = arith.constant 2 : index
    %c0_39 = arith.constant 0 : index
    %c0_40 = arith.constant 0 : index
    %46 = vector.load %arg6[%c2_38, %c0_39, %c0_40] : memref<9x128x128xbf16, #tpu.memory_space<vmem>>, vector<1x128x128xbf16>
    %47 = vector.shape_cast %46 : vector<1x128x128xbf16> to vector<128x128xbf16>
    %cst_41 = arith.constant dense<0.000000e+00> : vector<384x128xf32>
    %48 = tpu.matmul %45, %47, %cst_41 {dimension_numbers = #tpu.dot_dimension_numbers<[1], [0], [0], [1], [0, 0, 1, 1], [], []>} : vector<384x128xbf16>, vector<128x128xbf16>, vector<384x128xf32> -> vector<384x128xf32>
    %49 = arith.addf %44, %48 : vector<384x128xf32>
    %c24_42 = arith.constant 24 : index
    %c0_43 = arith.constant 0 : index
    %50 = vector.load %arg11[%c24_42, %c0_43] : memref<456x128xbf16, #tpu.memory_space<vmem>>, vector<384x128xbf16>
    %c3 = arith.constant 3 : index
    %c0_44 = arith.constant 0 : index
    %c0_45 = arith.constant 0 : index
    %51 = vector.load %arg6[%c3, %c0_44, %c0_45] : memref<9x128x128xbf16, #tpu.memory_space<vmem>>, vector<1x128x128xbf16>
    %52 = vector.shape_cast %51 : vector<1x128x128xbf16> to vector<128x128xbf16>
    %cst_46 = arith.constant dense<0.000000e+00> : vector<384x128xf32>
    %53 = tpu.matmul %50, %52, %cst_46 {dimension_numbers = #tpu.dot_dimension_numbers<[1], [0], [0], [1], [0, 0, 1, 1], [], []>} : vector<384x128xbf16>, vector<128x128xbf16>, vector<384x128xf32> -> vector<384x128xf32>
    %54 = arith.addf %49, %53 : vector<384x128xf32>
    %c25 = arith.constant 25 : index
    %c0_47 = arith.constant 0 : index
    %55 = vector.load %arg11[%c25, %c0_47] : memref<456x128xbf16, #tpu.memory_space<vmem>>, vector<384x128xbf16>
    %c4 = arith.constant 4 : index
    %c0_48 = arith.constant 0 : index
    %c0_49 = arith.constant 0 : index
    %56 = vector.load %arg6[%c4, %c0_48, %c0_49] : memref<9x128x128xbf16, #tpu.memory_space<vmem>>, vector<1x128x128xbf16>
    %57 = vector.shape_cast %56 : vector<1x128x128xbf16> to vector<128x128xbf16>
    %cst_50 = arith.constant dense<0.000000e+00> : vector<384x128xf32>
    %58 = tpu.matmul %55, %57, %cst_50 {dimension_numbers = #tpu.dot_dimension_numbers<[1], [0], [0], [1], [0, 0, 1, 1], [], []>} : vector<384x128xbf16>, vector<128x128xbf16>, vector<384x128xf32> -> vector<384x128xf32>
    %59 = arith.addf %54, %58 : vector<384x128xf32>
    %c26 = arith.constant 26 : index
    %c0_51 = arith.constant 0 : index
    %60 = vector.load %arg11[%c26, %c0_51] : memref<456x128xbf16, #tpu.memory_space<vmem>>, vector<384x128xbf16>
    %c5 = arith.constant 5 : index
    %c0_52 = arith.constant 0 : index
    %c0_53 = arith.constant 0 : index
    %61 = vector.load %arg6[%c5, %c0_52, %c0_53] : memref<9x128x128xbf16, #tpu.memory_space<vmem>>, vector<1x128x128xbf16>
    %62 = vector.shape_cast %61 : vector<1x128x128xbf16> to vector<128x128xbf16>
    %cst_54 = arith.constant dense<0.000000e+00> : vector<384x128xf32>
    %63 = tpu.matmul %60, %62, %cst_54 {dimension_numbers = #tpu.dot_dimension_numbers<[1], [0], [0], [1], [0, 0, 1, 1], [], []>} : vector<384x128xbf16>, vector<128x128xbf16>, vector<384x128xf32> -> vector<384x128xf32>
    %64 = arith.addf %59, %63 : vector<384x128xf32>
    %c48 = arith.constant 48 : index
    %c0_55 = arith.constant 0 : index
    %65 = vector.load %arg11[%c48, %c0_55] : memref<456x128xbf16, #tpu.memory_space<vmem>>, vector<384x128xbf16>
    %c6 = arith.constant 6 : index
    %c0_56 = arith.constant 0 : index
    %c0_57 = arith.constant 0 : index
    %66 = vector.load %arg6[%c6, %c0_56, %c0_57] : memref<9x128x128xbf16, #tpu.memory_space<vmem>>, vector<1x128x128xbf16>
    %67 = vector.shape_cast %66 : vector<1x128x128xbf16> to vector<128x128xbf16>
    %cst_58 = arith.constant dense<0.000000e+00> : vector<384x128xf32>
    %68 = tpu.matmul %65, %67, %cst_58 {dimension_numbers = #tpu.dot_dimension_numbers<[1], [0], [0], [1], [0, 0, 1, 1], [], []>} : vector<384x128xbf16>, vector<128x128xbf16>, vector<384x128xf32> -> vector<384x128xf32>
    %69 = arith.addf %64, %68 : vector<384x128xf32>
    %c49 = arith.constant 49 : index
    %c0_59 = arith.constant 0 : index
    %70 = vector.load %arg11[%c49, %c0_59] : memref<456x128xbf16, #tpu.memory_space<vmem>>, vector<384x128xbf16>
    %c7 = arith.constant 7 : index
    %c0_60 = arith.constant 0 : index
    %c0_61 = arith.constant 0 : index
    %71 = vector.load %arg6[%c7, %c0_60, %c0_61] : memref<9x128x128xbf16, #tpu.memory_space<vmem>>, vector<1x128x128xbf16>
    %72 = vector.shape_cast %71 : vector<1x128x128xbf16> to vector<128x128xbf16>
    %cst_62 = arith.constant dense<0.000000e+00> : vector<384x128xf32>
    %73 = tpu.matmul %70, %72, %cst_62 {dimension_numbers = #tpu.dot_dimension_numbers<[1], [0], [0], [1], [0, 0, 1, 1], [], []>} : vector<384x128xbf16>, vector<128x128xbf16>, vector<384x128xf32> -> vector<384x128xf32>
    %74 = arith.addf %69, %73 : vector<384x128xf32>
    %c50 = arith.constant 50 : index
    %c0_63 = arith.constant 0 : index
    %75 = vector.load %arg11[%c50, %c0_63] : memref<456x128xbf16, #tpu.memory_space<vmem>>, vector<384x128xbf16>
    %c8 = arith.constant 8 : index
    %c0_64 = arith.constant 0 : index
    %c0_65 = arith.constant 0 : index
    %76 = vector.load %arg6[%c8, %c0_64, %c0_65] : memref<9x128x128xbf16, #tpu.memory_space<vmem>>, vector<1x128x128xbf16>
    %77 = vector.shape_cast %76 : vector<1x128x128xbf16> to vector<128x128xbf16>
    %cst_66 = arith.constant dense<0.000000e+00> : vector<384x128xf32>
    %78 = tpu.matmul %75, %77, %cst_66 {dimension_numbers = #tpu.dot_dimension_numbers<[1], [0], [0], [1], [0, 0, 1, 1], [], []>} : vector<384x128xbf16>, vector<128x128xbf16>, vector<384x128xf32> -> vector<384x128xf32>
    %79 = arith.addf %74, %78 : vector<384x128xf32>
    %80 = vector.shape_cast %79 : vector<384x128xf32> to vector<16x24x128xf32>
    %81 = vector.extract_strided_slice %80 {offsets = [0, 0, 0], sizes = [16, 16, 128], strides = [1, 1, 1]} : vector<16x24x128xf32> to vector<16x16x128xf32>
    %c0_67 = arith.constant 0 : index
    %c0_68 = arith.constant 0 : index
    %82 = vector.load %arg7[%c0_67, %c0_68] : memref<1x128xf32, #tpu.memory_space<vmem>>, vector<1x128xf32>
    %83 = vector.shape_cast %82 : vector<1x128xf32> to vector<1x1x128xf32>
    %84 = vector.broadcast %83 : vector<1x1x128xf32> to vector<16x16x128xf32>
    %85 = arith.addf %81, %84 : vector<16x16x128xf32>
    %cst_69 = arith.constant 0.000000e+00 : f32
    %86 = vector.broadcast %cst_69 : f32 to vector<16x16x128xf32>
    %87 = arith.maximumf %85, %86 : vector<16x16x128xf32>
    %88 = vector.shape_cast %87 : vector<16x16x128xf32> to vector<256x128xf32>
    %89 = arith.truncf %88 : vector<256x128xf32> to vector<256x128xbf16>
    %c0_70 = arith.constant 0 : index
    %c0_71 = arith.constant 0 : index
    %90 = vector.load %arg8[%c0_70, %c0_71] : memref<128x128xbf16, #tpu.memory_space<vmem>>, vector<128x128xbf16>
    %cst_72 = arith.constant dense<0.000000e+00> : vector<256x128xf32>
    %91 = tpu.matmul %89, %90, %cst_72 {dimension_numbers = #tpu.dot_dimension_numbers<[1], [0], [0], [1], [0, 0, 1, 1], [], []>} : vector<256x128xbf16>, vector<128x128xbf16>, vector<256x128xf32> -> vector<256x128xf32>
    %c0_73 = arith.constant 0 : index
    %c0_74 = arith.constant 0 : index
    %92 = vector.load %arg9[%c0_73, %c0_74] : memref<1x128xf32, #tpu.memory_space<vmem>>, vector<1x128xf32>
    %93 = vector.broadcast %92 : vector<1x128xf32> to vector<256x128xf32>
    %94 = arith.addf %91, %93 : vector<256x128xf32>
    %c0_75 = arith.constant 0 : index
    %c0_76 = arith.constant 0 : index
    %c1_77 = arith.constant 1 : index
    %c0_78 = arith.constant 0 : index
    %95 = vector.load %arg2[%c0_75, %c0_76, %c1_77, %c0_78] : memref<1x16x24x128xf32, #tpu.memory_space<vmem>>, vector<1x16x16x128xf32>
    %96 = vector.shape_cast %95 : vector<1x16x16x128xf32> to vector<16x16x128xf32>
    %97 = vector.shape_cast %96 : vector<16x16x128xf32> to vector<256x128xf32>
    %98 = arith.addf %94, %97 : vector<256x128xf32>
    %cst_79 = arith.constant 0.000000e+00 : f32
    %99 = vector.broadcast %cst_79 : f32 to vector<256x128xf32>
    %100 = arith.maximumf %98, %99 : vector<256x128xf32>
    %c0_80 = arith.constant 0 : index
    %c0_81 = arith.constant 0 : index
    %c0_82 = arith.constant 0 : index
    %101 = vector.load %arg10[%c0_80, %c0_81, %c0_82] : memref<1x256x128xf32, #tpu.memory_space<vmem>>, vector<1x256x128xf32>
    %102 = vector.shape_cast %101 : vector<1x256x128xf32> to vector<256x128xf32>
    %103 = vector.shape_cast %100 : vector<256x128xf32> to vector<1x256x128xf32>
    tpu.vector_store %arg10[%c0_80, %c0_81, %c0_82], %103 {strides = array<i32>} : memref<1x256x128xf32, #tpu.memory_space<vmem>>, vector<1x256x128xf32>,
    return
  }
  func.func @transform_0(%arg0: i32, %arg1: i32) -> (i32, i32, i32, i32) {
    %c0_i32 = arith.constant 0 : i32
    %c0_i32_0 = arith.constant 0 : i32
    %c0_i32_1 = arith.constant 0 : i32
    return %arg0, %arg1, %c0_i32, %c0_i32_0 : i32, i32, i32, i32
  }
  func.func @transform_1(%arg0: i32, %arg1: i32) -> (i32, i32, i32, i32) {
    %c16_i32 = arith.constant 16 : i32
    %0 = arith.muli %arg1, %c16_i32 : i32
    %c1_i32 = arith.constant 1 : i32
    %1 = arith.subi %0, %c1_i32 : i32
    %c0_i32 = arith.constant 0 : i32
    %2 = arith.maxsi %1, %c0_i32 : i32
    %c0_i32_0 = arith.constant 0 : i32
    %c0_i32_1 = arith.constant 0 : i32
    %c0_i32_2 = arith.constant 0 : i32
    return %arg0, %2, %c0_i32_0, %c0_i32_1 : i32, i32, i32, i32
  }
  func.func @transform_2(%arg0: i32, %arg1: i32) -> (i32, i32, i32, i32) {
    %c16_i32 = arith.constant 16 : i32
    %0 = arith.muli %arg1, %c16_i32 : i32
    %c16_i32_0 = arith.constant 16 : i32
    %1 = arith.addi %0, %c16_i32_0 : i32
    %c15_i32 = arith.constant 15 : i32
    %2 = arith.minsi %1, %c15_i32 : i32
    %c0_i32 = arith.constant 0 : i32
    %c0_i32_1 = arith.constant 0 : i32
    %c0_i32_2 = arith.constant 0 : i32
    return %arg0, %2, %c0_i32, %c0_i32_1 : i32, i32, i32, i32
  }
  func.func @transform_3(%arg0: i32, %arg1: i32) -> (i32, i32) {
    %c0_i32 = arith.constant 0 : i32
    %c0_i32_0 = arith.constant 0 : i32
    %c0_i32_1 = arith.constant 0 : i32
    return %c0_i32, %c0_i32_0 : i32, i32
  }
  func.func @transform_4(%arg0: i32, %arg1: i32) -> (i32, i32, i32) {
    %c0_i32 = arith.constant 0 : i32
    %c0_i32_0 = arith.constant 0 : i32
    %c0_i32_1 = arith.constant 0 : i32
    %c0_i32_2 = arith.constant 0 : i32
    return %c0_i32, %c0_i32_0, %c0_i32_1 : i32, i32, i32
  }
  func.func @transform_5(%arg0: i32, %arg1: i32) -> (i32, i32) {
    %c0_i32 = arith.constant 0 : i32
    %c0_i32_0 = arith.constant 0 : i32
    %c0_i32_1 = arith.constant 0 : i32
    return %c0_i32, %c0_i32_0 : i32, i32
  }
  func.func @transform_6(%arg0: i32, %arg1: i32) -> (i32, i32) {
    %c0_i32 = arith.constant 0 : i32
    %c0_i32_0 = arith.constant 0 : i32
    %c0_i32_1 = arith.constant 0 : i32
    return %c0_i32, %c0_i32_0 : i32, i32
  }
  func.func @transform_7(%arg0: i32, %arg1: i32) -> (i32, i32) {
    %c0_i32 = arith.constant 0 : i32
    %c0_i32_0 = arith.constant 0 : i32
    %c0_i32_1 = arith.constant 0 : i32
    return %c0_i32, %c0_i32_0 : i32, i32
  }
  func.func @transform_8(%arg0: i32, %arg1: i32) -> (i32, i32, i32) {
    %c0_i32 = arith.constant 0 : i32
    %c0_i32_0 = arith.constant 0 : i32
    return %arg0, %arg1, %c0_i32 : i32, i32, i32
  }
}

</mosaic_0001>

<bundles_post_ra>
// kernel: _lambda_.1
= control target key start
LH: loop header
LB: loop body
LE: loop exit
PB: predicated region body
PF: predicated region fallthrough
CT: control target
= control target key end

     0   :  { %s8403_s27 = smov 0   ;;  %s8405_s28 = smov 0   ;;  %s9804_s0 = inlined_call_operand.vmem [shape: f32[2,16,24,128], index: 0, kind: input, shape index: {}, may-alias: {0,1,2}]   ;;  %s9805_s1 = inlined_call_operand.vmem [shape: f32[2,16,24,128], index: 1, kind: input, shape index: {}, may-alias: {0,1,2}]   ;;  %s9806_s2 = inlined_call_operand.vmem [shape: f32[2,16,24,128], index: 2, kind: input, shape index: {}, may-alias: {0,1,2}]   ;;  %s9807_s3 = inlined_call_operand.vmem [shape: bf16[128,128], index: 3, kind: input, shape index: {}]   ;;  %s9808_s4 = inlined_call_operand.vmem [shape: bf16[9,128,128], index: 4, kind: input, shape index: {}]   ;;  %s9809_s5 = inlined_call_operand.vmem [shape: f32[1,128], index: 5, kind: input, shape index: {}]   ;;  %s9810_s6 = inlined_call_operand.vmem [shape: bf16[128,128], index: 6, kind: input, shape index: {}]   ;;  %s9811_s7 = inlined_call_operand.vmem [shape: f32[1,128], index: 7, kind: input, shape index: {}]   ;;  %s9812_s8 = inlined_call_operand.vmem [shape: f32[2,256,128], index: 8, kind: output, shape index: {}]  }
   0x1   :  { %s8407_s29 = smov 0  }
   0x2 LB: > { %s30_s30 = sadd.s32 1, %s8351_s28  ;;  %p6365_p0 = scmp.ge.s32.totalorder %s8355_s29, 1  ;;  %s8355_s29 = sphi %s8407_s29, %s18_s29   ;;  %s8351_s28 = sphi %s8405_s28, %s9855_s28   ;;  %s8347_s27 = sphi %s8403_s27, %s9854_s27  }
   0x3   : > { %p32_p1 = scmp.ge.s32.totalorder %s30_s30, 2  ;;  %p348_p2 = scmp.lt.s32.totalorder %s8355_s29, 3 }
   0x5   : > { %s9857_s30 = smov (%p32_p1, %s30_s30), 0  ;;  %p349_p3 = pnand %p6365_p0, %p348_p2 }
   0x7   : > { %352 = sbr.rel (%p349_p3) target bundleno = 1202 (0x4b2), region = 52 }
   0xe   : > { %v8424_v0 = vld [vmem:[%s9807_s3] sm:$0xff]   ;;  %p418_p4 = scmp.lt.s32.totalorder %s8347_s27, 1  ;;  %v8429_v1 = vld [vmem:[%s9807_s3 + $0x8] sm:$0xff]   ;;  %v8442_v2 = vld [vmem:[%s9807_s3 + $0x10] sm:$0xff]   ;;  %vm1481_vm0 = vsmask.f32 7424 }
   0xf   : > { %7341 = vmatprep.subr.bf16.mxu0 %v8424_v0  ;;  %7405 = vmatprep.subr.bf16.mxu1 %v8424_v0  ;;  %v8464_v3 = vld [vmem:[%s9807_s3 + $0x18] sm:$0xff]   ;;  %v8479_v10 = vld [vmem:[%s9807_s3 + $0x20] sm:$0xff]   ;;  %v8488_v11 = vld [vmem:[%s9807_s3 + $0x28] sm:$0xff]   ;;  %vm2261_vm1 = vcmask 1046528  }
  0x10   : > { %s9859_s27 = smov (!%p418_p4, %s8347_s27), 1  ;;  %7342 = vmatpush3.bf16.msra.mxu0 %v8424_v0  ;;  %7406 = vmatpush3.bf16.msra.mxu1 %v8424_v0  ;;  %v8497_v12 = vld [vmem:[%s9807_s3 + $0x30] sm:$0xff]   ;;  %v8507_v13 = vld [vmem:[%s9807_s3 + $0x38] sm:$0xff]   ;;  %v8105_v20 = vld [vmem:[%s9808_s4] sm:$0xff]  }
  0x11   : > { %7343 = vmatprep.subr.bf16.mxu0 %v8429_v1  ;;  %7407 = vmatprep.subr.bf16.mxu1 %v8429_v1  ;;  %s8445_s15 = smul.u32 384, %s9859_s27  ;;  %v8106_v26 = vld [vmem:[%s9808_s4 + $0x8] sm:$0xff]   ;;  %v8108_v31 = vld [vmem:[%s9808_s4 + $0x10] sm:$0xff]   ;;  %v8107_v51 = vld [vmem:[%s9808_s4 + $0x40] sm:$0xff]  }
  0x12   : > { %v8109_v54 = vld [vmem:[%s9808_s4 + $0x48] sm:$0xff]  }
  0x13   : > { %s8451_s18 = scalar_lea.vmem %s9804_s0, %s8445_s15  ;;  %s8457_s21 = scalar_lea.vmem %s9805_s1, %s8445_s15 }
  0x14   : > { %7344 = vmatpush3.bf16.msra.mxu0 %v8429_v1  ;;  %7408 = vmatpush3.bf16.msra.mxu1 %v8429_v1  ;;  %v489_v4 = vld [vmem:[%s8451_s18] sm:$0xff]  ;;  %v490_v5 = vld [vmem:[%s8451_s18 + $0x8] sm:$0xff]  ;;  %s6772_s12 = sadd.s32 360, %s8445_s15  ;;  %v491_v14 = vld [vmem:[%s8451_s18 + $0x10] sm:$0xff] }
  0x15   : > { %7345 = vmatprep.subr.bf16.mxu0 %v8442_v2  ;;  %7409 = vmatprep.subr.bf16.mxu1 %v8442_v2  ;;  %v1122_v6 = vld [vmem:[%s8457_s21] sm:$0xff]  ;;  %v537_v7 = vpack.c.bf16 %v490_v5, %v489_v4  ;;  %v1123_v8 = vld [vmem:[%s8457_s21 + $0x8] sm:$0xff]  ;;  %s8512_s19 = scalar_lea.vmem %s9806_s2, %s6772_s12  ;;  %v492_v15 = vld [vmem:[%s8451_s18 + $0x18] sm:$0xff]  ;;  %s6773_s12 = sshll.u32 %s9859_s27, 8 }
  0x16   : > { %v1125_v9 = vpack.c.bf16 %v1123_v8, %v1122_v6  ;;  %v1124_v16 = vld [vmem:[%s8457_s21 + $0x10] sm:$0xff]  ;;  %v493_v17 = vld [vmem:[%s8451_s18 + $0x20] sm:$0xff]  ;;  %v494_v18 = vld [vmem:[%s8451_s18 + $0x28] sm:$0xff]  ;;  %v538_v22 = vpack.c.bf16 %v492_v15, %v491_v14  ;;  %s9704_s16 = scalar_lea.vmem %s9812_s8, %s6773_s12 }
  0x17   : > { %7357 = vmatprep.mubr.bf16.mxu0 %v537_v7  ;;  %v1194_v19 = vld [vmem:[%s8512_s19] sm:$0xff]  ;;  %v1195_v21 = vld [vmem:[%s8512_s19 + $0x8] sm:$0xff]  ;;  %v1126_v23 = vpack.c.bf16 %v1124_v16, %v1124_v16  ;;  %v539_v24 = vpack.c.bf16 %v494_v18, %v493_v17  ;;  %v495_v27 = vld [vmem:[%s8451_s18 + $0x30] sm:$0xff] }
  0x18   : > { %7346 = vmatpush3.bf16.msra.mxu0 %v8442_v2  ;;  %7410 = vmatpush3.bf16.msra.mxu1 %v8442_v2  ;;  %v1197_v25 = vpack.c.bf16 %v1195_v21, %v1194_v19  ;;  %v496_v28 = vld [vmem:[%s8451_s18 + $0x38] sm:$0xff]  ;;  %v497_v29 = vld [vmem:[%s8451_s18 + $0x40] sm:$0xff]  ;;  %v498_v30 = vld [vmem:[%s8451_s18 + $0x48] sm:$0xff] }
  0x19   : > { %7347 = vmatprep.subr.bf16.mxu0 %v8464_v3  ;;  %7411 = vmatprep.subr.bf16.mxu1 %v8464_v3  ;;  %v540_v32 = vpack.c.bf16 %v496_v28, %v495_v27  ;;  %v541_v33 = vpack.c.bf16 %v498_v30, %v497_v29  ;;  %v499_v34 = vld [vmem:[%s8451_s18 + $0x50] sm:$0xff]  ;;  %v500_v35 = vld [vmem:[%s8451_s18 + $0x58] sm:$0xff]  ;;  %v501_v36 = vld [vmem:[%s8451_s18 + $0x60] sm:$0xff] }
  0x1a   : > { %7421 = vmatprep.mubr.bf16.mxu1 %v1125_v9  ;;  %v502_v37 = vld [vmem:[%s8451_s18 + $0x68] sm:$0xff]  ;;  %v542_v38 = vpack.c.bf16 %v500_v35, %v499_v34  ;;  %v503_v40 = vld [vmem:[%s8451_s18 + $0x70] sm:$0xff]  ;;  %v504_v41 = vld [vmem:[%s8451_s18 + $0x78] sm:$0xff] }
  0x1b   : > { %v543_v39 = vpack.c.bf16 %v502_v37, %v501_v36  ;;  %v505_v42 = vld [vmem:[%s8451_s18 + $0x80] sm:$0xff]  ;;  %v506_v43 = vld [vmem:[%s8451_s18 + $0x88] sm:$0xff]  ;;  %v544_v44 = vpack.c.bf16 %v504_v41, %v503_v40  ;;  %v507_v46 = vld [vmem:[%s8451_s18 + $0x90] sm:$0xff] }
  0x1c   : > { %7348 = vmatpush3.bf16.msra.mxu0 %v8464_v3  ;;  %7412 = vmatpush3.bf16.msra.mxu1 %v8464_v3  ;;  %v545_v45 = vpack.c.bf16 %v506_v43, %v505_v42  ;;  %v508_v47 = vld [vmem:[%s8451_s18 + $0x98] sm:$0xff]  ;;  %v1196_v48 = vld [vmem:[%s8512_s19 + $0x10] sm:$0xff]  ;;  %v509_v49 = vld [vmem:[%s8451_s18 + $0xa0] sm:$0xff] }
  0x1d   : > { %7349 = vmatprep.subr.bf16.mxu0 %v8479_v10  ;;  %7413 = vmatprep.subr.bf16.mxu1 %v8479_v10  ;;  %v510_v50 = vld [vmem:[%s8451_s18 + $0xa8] sm:$0xff]  ;;  %v546_v52 = vpack.c.bf16 %v508_v47, %v507_v46  ;;  %v1198_v53 = vpack.c.bf16 %v1196_v48, %v1196_v48  ;;  %v511_v56 = vld [vmem:[%s8451_s18 + $0xb0] sm:$0xff]  ;;  %v512_v57 = vld [vmem:[%s8451_s18 + $0xb8] sm:$0xff] }
  0x1e   : > { %v547_v55 = vpack.c.bf16 %v510_v50, %v509_v49  ;;  %v513_v58 = vld [vmem:[%s8451_s18 + $0xc0] sm:$0xff]  ;;  %v514_v59 = vld [vmem:[%s8451_s18 + $0xc8] sm:$0xff]  ;;  %v548_v60 = vpack.c.bf16 %v512_v57, %v511_v56  ;;  %v515_v62 = vld [vmem:[%s8451_s18 + $0xd0] sm:$0xff] }
  0x1f   : > { %v549_v61 = vpack.c.bf16 %v514_v59, %v513_v58  ;;  %v516_v63 = vld [vmem:[%s8451_s18 + $0xd8] sm:$0xff]  ;;  %v519_v4 = vld [vmem:[%s8451_s18 + $0xf0] sm:$0xff]  ;;  %v521_v6 = vld [vmem:[%s8451_s18 + $0x100] sm:$0xff] }
  0x20   : > { %7350 = vmatpush3.bf16.msra.mxu0 %v8479_v10  ;;  %7414 = vmatpush3.bf16.msra.mxu1 %v8479_v10  ;;  %v520_v5 = vld [vmem:[%s8451_s18 + $0xf8] sm:$0xff]  ;;  %v522_v7 = vld [vmem:[%s8451_s18 + $0x108] sm:$0xff]  ;;  %v527_v16 = vld [vmem:[%s8451_s18 + $0x130] sm:$0xff] }
  0x21   : > { %7351 = vmatprep.subr.bf16.mxu0 %v8488_v11  ;;  %7415 = vmatprep.subr.bf16.mxu1 %v8488_v11  ;;  %v552_v8 = vpack.c.bf16 %v520_v5, %v519_v4  ;;  %v553_v9 = vpack.c.bf16 %v522_v7, %v521_v6  ;;  %v528_v17 = vld [vmem:[%s8451_s18 + $0x138] sm:$0xff]  ;;  %v529_v18 = vld [vmem:[%s8451_s18 + $0x140] sm:$0xff]  ;;  %v530_v19 = vld [vmem:[%s8451_s18 + $0x148] sm:$0xff] }
  0x22   : > { %v557_v21 = vpack.c.bf16 %v530_v19, %v529_v18  ;;  %v535_v28 = vld [vmem:[%s8451_s18 + $0x170] sm:$0xff]  ;;  %v536_v29 = vld [vmem:[%s8451_s18 + $0x178] sm:$0xff]  ;;  %v8114_v35 = vld [vmem:[%s9808_s4 + $0x28] sm:$0xff]  }
  0x23   : > { %v8110_v30 = vld [vmem:[%s9808_s4 + $0x18] sm:$0xff]   ;;  %v8115_v36 = vld [vmem:[%s9808_s4 + $0x60] sm:$0xff]   ;;  %v8116_v37 = vld [vmem:[%s9808_s4 + $0x30] sm:$0xff]  }
  0x24   : > { %7352 = vmatpush3.bf16.msra.mxu0 %v8488_v11  ;;  %7416 = vmatpush3.bf16.msra.mxu1 %v8488_v11  ;;  %v8113_v34 = vld [vmem:[%s9808_s4 + $0x58] sm:$0xff]   ;;  %v8119_v40 = vld [vmem:[%s9808_s4 + $0x70] sm:$0xff]   ;;  %v8637_v42 = vld [vmem:[%s9808_s4 + $0x80] sm:$0xff]  }
  0x25   : > { %7353 = vmatprep.subr.bf16.mxu0 %v8497_v12  ;;  %7417 = vmatprep.subr.bf16.mxu1 %v8497_v12  ;;  %v8124_v41 = vld [vmem:[%s9808_s4 + $0x78] sm:$0xff]   ;;  %v8643_v43 = vld [vmem:[%s9808_s4 + $0xc0] sm:$0xff]  }
  0x28   : > { %7354 = vmatpush3.bf16.msra.mxu0 %v8497_v12  ;;  %7418 = vmatpush3.bf16.msra.mxu1 %v8497_v12 }
  0x29   : > { %7355 = vmatprep.subr.bf16.mxu0 %v8507_v13  ;;  %7419 = vmatprep.subr.bf16.mxu1 %v8507_v13 }
  0x2c   : > { %7356 = vmatpush3.bf16.msra.mxu0 %v8507_v13  ;;  %7420 = vmatpush3.bf16.msra.mxu1 %v8507_v13 }
  0x2d   : > { %7425 = vmatprep.subr.bf16.mxu1 %v8424_v0  ;;  %7509 = vmatprep.subr.bf16.mxu0 %v8105_v20 }
  0x2f   : > { %7358 = vmatmul.mubr.bf16.vlgmr.msra.gmra.mrb[0].mxu0 %v538_v22  ;;  %7422 = vmatmul.mubr.bf16.vlgmr.msra.gmra.mrb[0].mxu1 %v1126_v23  ;;  %v531_v22 = vld [vmem:[%s8451_s18 + $0x150] sm:$0xff]  ;;  %v532_v23 = vld [vmem:[%s8451_s18 + $0x158] sm:$0xff] }
  0x30   : > { %7361 = vmatprep.mubr.bf16.mxu0 %v539_v24  ;;  %7426 = vmatpush3.bf16.msra.mxu1 %v8424_v0  ;;  %v517_v0 = vld [vmem:[%s8451_s18 + $0xe0] sm:$0xff] }
  0x31   : > { %7427 = vmatprep.subr.bf16.mxu1 %v8429_v1  ;;  %7441 = vmatprep.mubr.bf16.mxu1 %v1197_v25  ;;  %v533_v24 = vld [vmem:[%s8451_s18 + $0x160] sm:$0xff]  ;;  %v534_v25 = vld [vmem:[%s8451_s18 + $0x168] sm:$0xff] }
  0x32   : > { %7510 = vmatpush3.bf16.msra.mxu0 %v8105_v20  ;;  %v556_v20 = vpack.c.bf16 %v528_v17, %v527_v16  ;;  %v559_v27 = vpack.c.bf16 %v534_v25, %v533_v24 }
  0x33   : > { %7511 = vmatprep.subr.bf16.mxu0 %v8106_v26 }
  0x34   : > { %7428 = vmatpush3.bf16.msra.mxu1 %v8429_v1  ;;  %v518_v1 = vld [vmem:[%s8451_s18 + $0xe8] sm:$0xff] }
  0x35   : > { %7429 = vmatprep.subr.bf16.mxu1 %v8442_v2 }
  0x36   : > { %7512 = vmatpush3.bf16.msra.mxu0 %v8106_v26  ;;  %v558_v26 = vpack.c.bf16 %v532_v23, %v531_v22 }
  0x37   : > { %7362 = vmatmul.mubr.bf16.gmra.mrb[4].mxu0 %v540_v32  ;;  %7513 = vmatprep.subr.bf16.mxu0 %v8108_v31  ;;  %v8111_v32 = vld [vmem:[%s9808_s4 + $0x50] sm:$0xff]  }
  0x38   : > { %7365 = vmatprep.mubr.bf16.mxu0 %v541_v33  ;;  %7430 = vmatpush3.bf16.msra.mxu1 %v8442_v2  ;;  %v550_v2 = vpack.c.bf16 %v516_v63, %v515_v62  ;;  %v8112_v33 = vld [vmem:[%s9808_s4 + $0x20] sm:$0xff]  }
  0x39   : > { %7431 = vmatprep.subr.bf16.mxu1 %v8464_v3 }
  0x3a   : > { %7514 = vmatpush3.bf16.msra.mxu0 %v8108_v31  ;;  %v560_v31 = vpack.c.bf16 %v536_v29, %v535_v28 }
  0x3b   : > { %7515 = vmatprep.subr.bf16.mxu0 %v8110_v30 }
  0x3c   : > { %7432 = vmatpush3.bf16.msra.mxu1 %v8464_v3  ;;  %v551_v3 = vpack.c.bf16 %v518_v1, %v517_v0 }
  0x3d   : > { %7433 = vmatprep.subr.bf16.mxu1 %v8479_v10 }
  0x3e   : > { %7516 = vmatpush3.bf16.msra.mxu0 %v8110_v30 }
  0x3f   : > { %7366 = vmatmul.mubr.bf16.gmra.mrb[8].mxu0 %v542_v38  ;;  %7517 = vmatprep.subr.bf16.mxu0 %v8112_v33  ;;  %v8117_v38 = vld [vmem:[%s9808_s4 + $0x68] sm:$0xff]  }
  0x40   : > { %7369 = vmatprep.mubr.bf16.mxu0 %v543_v39  ;;  %7434 = vmatpush3.bf16.msra.mxu1 %v8479_v10  ;;  %v523_v10 = vld [vmem:[%s8451_s18 + $0x110] sm:$0xff]  ;;  %v8118_v39 = vld [vmem:[%s9808_s4 + $0x38] sm:$0xff]  }
  0x41   : > { %7435 = vmatprep.subr.bf16.mxu1 %v8488_v11 }
  0x42   : > { %7518 = vmatpush3.bf16.msra.mxu0 %v8112_v33 }
  0x43   : > { %7519 = vmatprep.subr.bf16.mxu0 %v8114_v35 }
  0x44   : > { %7436 = vmatpush3.bf16.msra.mxu1 %v8488_v11  ;;  %v524_v11 = vld [vmem:[%s8451_s18 + $0x118] sm:$0xff] }
  0x45   : > { %7437 = vmatprep.subr.bf16.mxu1 %v8497_v12  ;;  %v554_v14 = vpack.c.bf16 %v524_v11, %v523_v10 }
  0x46   : > { %7520 = vmatpush3.bf16.msra.mxu0 %v8114_v35  ;;  %v8150_v35 = vld [vmem:[%s9808_s4 + $0xd0] sm:$0xff]  }
  0x47   : > { %7370 = vmatmul.mubr.bf16.gmra.mrb[12].mxu0 %v544_v44  ;;  %7521 = vmatprep.subr.bf16.mxu0 %v8116_v37 }
  0x48   : > { %7373 = vmatprep.mubr.bf16.mxu0 %v545_v45  ;;  %7438 = vmatpush3.bf16.msra.mxu1 %v8497_v12  ;;  %v525_v12 = vld [vmem:[%s8451_s18 + $0x120] sm:$0xff] }
  0x49   : > { %7439 = vmatprep.subr.bf16.mxu1 %v8507_v13 }
  0x4a   : > { %7522 = vmatpush3.bf16.msra.mxu0 %v8116_v37 }
  0x4b   : > { %7523 = vmatprep.subr.bf16.mxu0 %v8118_v39 }
  0x4c   : > { %7440 = vmatpush3.bf16.msra.mxu1 %v8507_v13  ;;  %v526_v13 = vld [vmem:[%s8451_s18 + $0x128] sm:$0xff] }
  0x4d   : > { %7445 = vmatprep.subr.bf16.mxu1 %v8107_v51  ;;  %v555_v15 = vpack.c.bf16 %v526_v13, %v525_v12 }
  0x4e   : > { %7524 = vmatpush3.bf16.msra.mxu0 %v8118_v39 }
  0x4f   : > { %7374 = vmatmul.mubr.bf16.gmra.mrb[16].mxu0 %v546_v52  ;;  %7442 = vmatmul.mubr.bf16.vlgmr.msra.gmra.mrb[4].mxu1 %v1198_v53 }
  0x50   : > { %7377 = vmatprep.mubr.bf16.mxu0 %v547_v55  ;;  %7446 = vmatpush3.bf16.msra.mxu1 %v8107_v51 }
  0x51   : > { %7447 = vmatprep.subr.bf16.mxu1 %v8109_v54  ;;  %7637 = vmatprep.subr.bf16.mxu0 %v8643_v43 }
  0x54   : > { %7448 = vmatpush3.bf16.msra.mxu1 %v8109_v54 }
  0x55   : > { %7449 = vmatprep.subr.bf16.mxu1 %v8111_v32 }
  0x57   : > { %7378 = vmatmul.mubr.bf16.gmra.mrb[20].mxu0 %v548_v60  ;;  %v8357_v60 = vmov 0  }
  0x58   : > { %7381 = vmatprep.mubr.bf16.mxu0 %v549_v61  ;;  %7450 = vmatpush3.bf16.msra.mxu1 %v8111_v32 }
  0x59   : > { %7451 = vmatprep.subr.bf16.mxu1 %v8113_v34 }
  0x5c   : > { %7452 = vmatpush3.bf16.msra.mxu1 %v8113_v34 }
  0x5d   : > { %7453 = vmatprep.subr.bf16.mxu1 %v8115_v36 }
  0x5f   : > { %7382 = vmatmul.mubr.bf16.gmra.mrb[24].mxu0 %v550_v2 }
  0x60   : > { %7385 = vmatprep.mubr.bf16.mxu0 %v551_v3  ;;  %7454 = vmatpush3.bf16.msra.mxu1 %v8115_v36 }
  0x61   : > { %7455 = vmatprep.subr.bf16.mxu1 %v8117_v38 }
  0x64   : > { %7456 = vmatpush3.bf16.msra.mxu1 %v8117_v38 }
  0x65   : > { %7457 = vmatprep.subr.bf16.mxu1 %v8119_v40 }
  0x67   : > { %7386 = vmatmul.mubr.bf16.gmra.mrb[28].mxu0 %v552_v8 }
  0x68   : > { %7389 = vmatprep.mubr.bf16.mxu0 %v553_v9  ;;  %7458 = vmatpush3.bf16.msra.mxu1 %v8119_v40 }
  0x69   : > { %7459 = vmatprep.subr.bf16.mxu1 %v8124_v41 }
  0x6c   : > { %7460 = vmatpush3.bf16.msra.mxu1 %v8124_v41 }
  0x6d   : > { %7573 = vmatprep.subr.bf16.mxu1 %v8637_v42 }
  0x6f   : > { %7390 = vmatmul.mubr.bf16.gmra.mrb[32].mxu0 %v554_v14 }
  0x70   : > { %7393 = vmatprep.mubr.bf16.mxu0 %v555_v15 }
  0x77   : > { %7394 = vmatmul.mubr.bf16.gmra.mrb[36].mxu0 %v556_v20 }
  0x78   : > { %7397 = vmatprep.mubr.bf16.mxu0 %v557_v21  ;;  %v8148_v21 = vld [vmem:[%s9808_s4 + $0xc8] sm:$0xff]  }
  0x7f   : > { %7398 = vmatmul.mubr.bf16.gmra.mrb[40].mxu0 %v558_v26 }
  0x80   : > { %7401 = vmatprep.mubr.bf16.mxu0 %v559_v27 }
  0x87   : > { %7402 = vmatmul.mubr.bf16.gmra.mrb[44].mxu0 %v560_v31 }
 0x102   : > { %v7359_v44 = vpop.f32.mrb[0].mxu0  ;;  %v7423_v45 = vpop.f32.mrb[0].mxu1 }
 0x103   : > { %v1177_v46 = vmax.f32 %v7423_v45, 0.0  ;;  %v643_v47 = vpop.f32.mrb[1].mxu0  ;;  %v1161_v48 = vpop.f32.mrb[1].mxu1  ;;  %v836_v49 = vmax.f32 %v7359_v44, 0.0 }
 0x104   : > { %v834_v50 = vmax.f32 %v643_v47, 0.0  ;;  %v7360_v51 = vpop.f32.mrb[2].mxu0  ;;  %v7424_v52 = vpop.f32.mrb[2].mxu1  ;;  %v1175_v57 = vmax.f32 %v1161_v48, 0.0 }
 0x105   : > { %v6824_v53 = vpack.c.bf16 %v1177_v46, %v1177_v46  ;;  %v646_v54 = vpop.f32.mrb[3].mxu0  ;;  %v1164_v55 = vpop.f32.mrb[3].mxu1  ;;  %v837_v1 = vmax.f32 %v7360_v51, 0.0 }
 0x106   : > { %v6774_v56 = vpack.c.bf16 %v834_v50, %v834_v50  ;;  %v835_v58 = vmax.f32 %v646_v54, 0.0  ;;  %v1176_v59 = vmax.f32 %v1164_v55, 0.0  ;;  %v8130_v50 = vld [vmem:[%s9808_s4 + $0x88] sm:$0xff]  }
 0x107   : > { %1193 = vst [vmem:[#allocation2 + $0x8] sm:$0xf] %v6824_v53 }
 0x108   : > { %1272 = vst [vmem:[#allocation2 + $0x8] sm:$0xf] %v8357_v60  ;;  %1074 = vst [vmem:[#allocation2 + $0xc] sm:$0xf] %v6774_v56  ;;  %v6831_v61 = vpack.c.bf16 %v836_v49, %v835_v58  ;;  %v6946_v62 = vpack.c.bf16 %v1176_v59, %v1175_v57 }
 0x10a   : > { %6953 = vst [vmem:[#allocation2 + $0x10] sm:$0xff] %v6831_v61   ;;  %6947 = vst [vmem:[#allocation2] sm:$0xff] %v6946_v62   ;;  %v7363_v63 = vpop.f32.mrb[4].mxu0 }
 0x10b   : > { %1270 = vst [vmem:[#allocation2] sm:$0xf] %v8357_v60  ;;  %1271 = vst [vmem:[#allocation2 + $0x4] sm:$0xf] %v8357_v60  ;;  %v659_v0 = vpop.f32.mrb[5].mxu0  ;;  %v840_v2 = vmax.f32 %v7363_v63, 0.0 }
 0x10c   : > { %v838_v3 = vmax.f32 %v659_v0, 0.0  ;;  %v7364_v4 = vpop.f32.mrb[6].mxu0 }
 0x10d   : > { %v662_v5 = vpop.f32.mrb[7].mxu0  ;;  %v841_v22 = vmax.f32 %v7364_v4, 0.0  ;;  %v8152_v4 = vld [vmem:[%s9808_s4 + $0xd8] sm:$0xff]  }
 0x10e   : > { %v6836_v6 = vpack.c.bf16 %v838_v3, %v837_v1  ;;  %v839_v7 = vmax.f32 %v662_v5, 0.0 }
 0x10f   : > { %v8649_v8 = vld [vmem:[#allocation2 + $0x8] sm:$0xff]  }
 0x110   : > { %6954 = vst [vmem:[#allocation2 + $0x18] sm:$0xff] %v6836_v6   ;;  %v6841_v9 = vpack.c.bf16 %v840_v2, %v839_v7  ;;  %v1490_v11 = vshll.u32 %v8649_v8, 16  ;;  %v1494_v15 = vshrl.u32 %v8649_v8, 16  ;;  %v2263_v41 = vrot.slane %v8649_v8, 1  ;;  %v8133_v7 = vld [vmem:[%s9808_s4 + $0x90] sm:$0xff]  }
 0x111   : > { %v8651_v10 = vld [vmem:[#allocation2 + $0x10] sm:$0xff]  }
 0x112   : > { %6955 = vst [vmem:[#allocation2 + $0x20] sm:$0xff] %v6841_v9   ;;  %v7367_v12 = vpop.f32.mrb[8].mxu0  ;;  %v1276_v13 = vld [vmem:[#allocation2] sm:$0xf]  ;;  %v1277_v14 = vld [vmem:[#allocation2 + $0x4] sm:$0xf] }
 0x113   : > { %v675_v16 = vpop.f32.mrb[9].mxu0  ;;  %v6449_v17 = vcombine.low %v1276_v13, %v1277_v14  ;;  %v2240_v18 = vld [vmem:[#allocation2] sm:$0xe]  ;;  %v1492_v19 = vrot.slane %v1490_v11, 1  ;;  %v1498_v20 = vshll.u32 %v8651_v10, 16  ;;  %v844_v23 = vmax.f32 %v7367_v12, 0.0 }
 0x114   : > { %v842_v24 = vmax.f32 %v675_v16, 0.0  ;;  %v7368_v25 = vpop.f32.mrb[10].mxu0  ;;  %v6506_v26 = vcombine.low %v2240_v18, %v1277_v14  ;;  %v1502_v31 = vshrl.u32 %v8651_v10, 16  ;;  %v2265_v51 = vrot.slane %v8651_v10, 1 }
 0x115   : > { %v678_v27 = vpop.f32.mrb[11].mxu0  ;;  %v1485_v28 = vshll.u32 %v6449_v17, 16  ;;  %7525 = vmatprep.mubr.bf16.mxu0 %v6449_v17  ;;  %v1483_v29 = vshrl.u32 %v6449_v17, 16  ;;  %v1496_v30 = vor.u32 %v1494_v15, %v1492_v19  ;;  %v1500_v34 = vrot.slane %v1498_v20, 1 }
 0x116   : > { %v6846_v32 = vpack.c.bf16 %v842_v24, %v841_v22  ;;  %v843_v33 = vmax.f32 %v678_v27, 0.0  ;;  %7526 = vmatmul.mubr.bf16.vlgmr.msra.gmra.mrb[48].mxu0 %v8649_v8  ;;  %v2262_v36 = vrot.slane %v6506_v26, 1  ;;  %v845_v39 = vmax.f32 %v7368_v25, 0.0  ;;  %v8157_v27 = vld [vmem:[%s9808_s4 + $0xe8] sm:$0xff]  }
 0x117   : > { %7529 = vmatprep.mubr.bf16.mxu0 %v8651_v10  ;;  %v1487_v37 = vrot.slane %v1485_v28, 1  ;;  %v8126_v38 = vld [vmem:[#allocation2 + $0x18] sm:$0xff]   ;;  %7638 = vmatpush3.bf16.msra.mxu0 %v8643_v43  ;;  %v1501_v48 = vsel %vm1481_vm0, %v1496_v30, %v1500_v34  ;;  %v1504_v49 = vor.u32 %v1502_v31, %v1500_v34  ;;  %v8680_v61 = vsel %vm2261_vm1, %v2263_v41, %v2265_v51 }
 0x118   : > { %6956 = vst [vmem:[#allocation2 + $0x28] sm:$0xff] %v6846_v32   ;;  %v6851_v40 = vpack.c.bf16 %v844_v23, %v843_v33  ;;  %7639 = vmatprep.subr.bf16.mxu0 %v8148_v21  ;;  %v1506_v45 = vshll.u32 %v8126_v38, 16  ;;  %v8674_v43 = vsel %vm2261_vm1, %v2262_v36, %v2263_v41  ;;  %v1510_v55 = vshrl.u32 %v8126_v38, 16  ;;  %v8141_v41 = vld [vmem:[%s9808_s4 + $0xa0] sm:$0xff]  }
 0x119   : > { %v1488_v44 = vor.u32 %v1487_v37, %v1483_v29  ;;  %v8667_v46 = vld [vmem:[#allocation2 + $0x20] sm:$0xff]   ;;  %v2267_v62 = vrot.slane %v8126_v38, 1 }
 0x11a   : > { %6957 = vst [vmem:[#allocation2 + $0x30] sm:$0xff] %v6851_v40   ;;  %v7371_v47 = vpop.f32.mrb[12].mxu0  ;;  %v1508_v54 = vrot.slane %v1506_v45, 1  ;;  %v1514_v56 = vshll.u32 %v8667_v46, 16  ;;  %v1518_v3 = vshrl.u32 %v8667_v46, 16  ;;  %v2269_v9 = vrot.slane %v8667_v46, 1 }
 0x11b   : > { %v691_v52 = vpop.f32.mrb[13].mxu0  ;;  %v1493_v53 = vsel %vm1481_vm0, %v1488_v44, %v1492_v19  ;;  %7640 = vmatpush3.bf16.msra.mxu0 %v8148_v21  ;;  %v848_v57 = vmax.f32 %v7371_v47, 0.0  ;;  %v8692_v8 = vsel %vm2261_vm1, %v2265_v51, %v2267_v62  ;;  %v8138_v19 = vld [vmem:[%s9808_s4 + $0x98] sm:$0xff]  }
 0x11c   : > { %v846_v58 = vmax.f32 %v691_v52, 0.0  ;;  %v7372_v59 = vpop.f32.mrb[14].mxu0  ;;  %7461 = vmatprep.mubr.bf16.mxu1 %v1493_v53  ;;  %7641 = vmatprep.subr.bf16.mxu0 %v8150_v35  ;;  %v1509_v0 = vsel %vm1481_vm0, %v1504_v49, %v1508_v54  ;;  %v1512_v1 = vor.u32 %v1510_v55, %v1508_v54  ;;  %v1516_v2 = vrot.slane %v1514_v56, 1  ;;  %v8159_v52 = vld [vmem:[%s9808_s4 + $0xf0] sm:$0xff]  }
 0x11d   : > { %v694_v63 = vpop.f32.mrb[15].mxu0  ;;  %7462 = vmatmul.mubr.bf16.vlgmr.msra.gmra.mrb[8].mxu1 %v1501_v48  ;;  %v8702_v12 = vsel %vm2261_vm1, %v2267_v62, %v2269_v9  ;;  %v849_v15 = vmax.f32 %v7372_v59, 0.0 }
 0x11e   : > { %v6856_v5 = vpack.c.bf16 %v846_v58, %v845_v39  ;;  %v847_v6 = vmax.f32 %v694_v63, 0.0  ;;  %7574 = vmatpush3.bf16.msra.mxu1 %v8637_v42  ;;  %7530 = vmatmul.mubr.bf16.gmra.mrb[52].mxu0 %v8126_v38  ;;  %v8155_v42 = vld [vmem:[%s9808_s4 + $0xe0] sm:$0xff]   ;;  %v1517_v17 = vsel %vm1481_vm0, %v1512_v1, %v1516_v2  ;;  %v1520_v18 = vor.u32 %v1518_v3, %v1516_v2  ;;  %v8147_v2 = vld [vmem:[%s9808_s4 + $0xa8] sm:$0xff]  }
 0x11f   : > { %7465 = vmatprep.mubr.bf16.mxu1 %v1509_v0  ;;  %7533 = vmatprep.mubr.bf16.mxu0 %v8667_v46  ;;  %v8696_v10 = vld [vmem:[#allocation2 + $0x28] sm:$0xff]  }
 0x120   : > { %6958 = vst [vmem:[#allocation2 + $0x38] sm:$0xff] %v6856_v5   ;;  %v6861_v11 = vpack.c.bf16 %v848_v57, %v847_v6  ;;  %7575 = vmatprep.subr.bf16.mxu1 %v8130_v50  ;;  %7642 = vmatpush3.bf16.msra.mxu0 %v8150_v35  ;;  %v1522_v13 = vshll.u32 %v8696_v10, 16  ;;  %v1526_v24 = vshrl.u32 %v8696_v10, 16  ;;  %v2271_v33 = vrot.slane %v8696_v10, 1 }
 0x121   : > { %v8705_v14 = vld [vmem:[#allocation2 + $0x30] sm:$0xff]   ;;  %7643 = vmatprep.subr.bf16.mxu0 %v8152_v4 }
 0x122   : > { %6959 = vst [vmem:[#allocation2 + $0x40] sm:$0xff] %v6861_v11   ;;  %v7375_v16 = vpop.f32.mrb[16].mxu0  ;;  %7576 = vmatpush3.bf16.msra.mxu1 %v8130_v50  ;;  %v7443_v20 = vpop.f32.mrb[4].mxu1  ;;  %v1524_v23 = vrot.slane %v1522_v13, 1  ;;  %v1530_v25 = vshll.u32 %v8705_v14, 16  ;;  %v1534_v37 = vshrl.u32 %v8705_v14, 16  ;;  %v8727_v48 = vsel %vm2261_vm1, %v2269_v9, %v2271_v33 }
 0x123   : > { %v852_v21 = vmax.f32 %v7375_v16, 0.0  ;;  %v707_v22 = vpop.f32.mrb[17].mxu0  ;;  %7577 = vmatprep.subr.bf16.mxu1 %v8133_v7  ;;  %v1233_v26 = vpop.f32.mrb[5].mxu1  ;;  %v1249_v30 = vmax.f32 %v7443_v20, 0.0  ;;  %v2273_v49 = vrot.slane %v8705_v14, 1  ;;  %v8153_v20 = vld [vmem:[%s9808_s4 + $0xb0] sm:$0xff]  }
 0x124   : > { %v850_v28 = vmax.f32 %v707_v22, 0.0  ;;  %v8716_v29 = vpop.f32.mrb[18].mxu0  ;;  %v1247_v31 = vmax.f32 %v1233_v26, 0.0  ;;  %v7444_v32 = vpop.f32.mrb[6].mxu1  ;;  %7644 = vmatpush3.bf16.msra.mxu0 %v8152_v4  ;;  %v1525_v35 = vsel %vm1481_vm0, %v1520_v18, %v1524_v23  ;;  %v1532_v36 = vrot.slane %v1530_v25, 1 }
 0x125   : > { %v710_v34 = vpop.f32.mrb[19].mxu0  ;;  %7466 = vmatmul.mubr.bf16.gmra.mrb[12].mxu1 %v1517_v17  ;;  %v1236_v38 = vpop.f32.mrb[7].mxu1  ;;  %7645 = vmatprep.subr.bf16.mxu0 %v8155_v42  ;;  %v1528_v46 = vor.u32 %v1526_v24, %v1524_v23  ;;  %v8737_v55 = vsel %vm2261_vm1, %v2271_v33, %v2273_v49  ;;  %v853_v56 = vmax.f32 %v8716_v29, 0.0 }
 0x126   : > { %v6866_v39 = vpack.c.bf16 %v850_v28, %v849_v15  ;;  %v851_v40 = vmax.f32 %v710_v34, 0.0  ;;  %7534 = vmatmul.mubr.bf16.gmra.mrb[56].mxu0 %v8696_v10  ;;  %7469 = vmatprep.mubr.bf16.mxu1 %v1525_v35  ;;  %v6825_v44 = vpack.c.bf16 %v1247_v31, %v1247_v31  ;;  %v1248_v45 = vmax.f32 %v1236_v38, 0.0  ;;  %v8161_v31 = vld [vmem:[%s9808_s4 + $0xb8] sm:$0xff]  }
 0x127   : > { %7537 = vmatprep.mubr.bf16.mxu0 %v8705_v14  ;;  %v8131_v47 = vld [vmem:[#allocation2 + $0x38] sm:$0xff]   ;;  %7578 = vmatpush3.bf16.msra.mxu1 %v8133_v7  ;;  %v1533_v62 = vsel %vm1481_vm0, %v1528_v46, %v1532_v36  ;;  %v1536_v63 = vor.u32 %v1534_v37, %v1532_v36 }
 0x128   : > { %6960 = vst [vmem:[#allocation2 + $0x48] sm:$0xff] %v6866_v39   ;;  %v6871_v50 = vpack.c.bf16 %v852_v21, %v851_v40  ;;  %7579 = vmatprep.subr.bf16.mxu1 %v8138_v19  ;;  %1263 = vst [vmem:[#allocation2 + $0xcc] sm:$0xf] %v6825_v44  ;;  %v6951_v51 = vpack.c.bf16 %v1249_v30, %v1248_v45  ;;  %7646 = vmatpush3.bf16.msra.mxu0 %v8155_v42  ;;  %v1538_v53 = vshll.u32 %v8131_v47, 16 }
 0x129   : > { %v8733_v54 = vld [vmem:[#allocation2 + $0x40] sm:$0xff]   ;;  %1273 = vst [vmem:[#allocation2 + $0xcc] sm:$0xf] %v8357_v60  ;;  %7647 = vmatprep.subr.bf16.mxu0 %v8157_v27  ;;  %v2275_v58 = vrot.slane %v8131_v47, 1  ;;  %v1542_v11 = vshrl.u32 %v8131_v47, 16 }
 0x12a   : > { %6961 = vst [vmem:[#allocation2 + $0x50] sm:$0xff] %v6871_v50   ;;  %v7379_v57 = vpop.f32.mrb[20].mxu0  ;;  %6976 = vst [vmem:[#allocation2 + $0xd0] sm:$0xff] %v6951_v51   ;;  %v1540_v0 = vrot.slane %v1538_v53, 1  ;;  %v1546_v1 = vshll.u32 %v8733_v54, 16  ;;  %v2277_v7 = vrot.slane %v8733_v54, 1 }
 0x12b   : > { %v723_v59 = vpop.f32.mrb[21].mxu0  ;;  %7580 = vmatpush3.bf16.msra.mxu1 %v8138_v19  ;;  %1274 = vst [vmem:[#allocation2 + $0xd0] sm:$0xf] %v8357_v60  ;;  %1275 = vst [vmem:[#allocation2 + $0xd4] sm:$0xf] %v8357_v60  ;;  %v856_v3 = vmax.f32 %v7379_v57, 0.0  ;;  %v8748_v6 = vsel %vm2261_vm1, %v2273_v49, %v2275_v58 }
 0x12c   : > { %v854_v4 = vmax.f32 %v723_v59, 0.0  ;;  %v7380_v5 = vpop.f32.mrb[22].mxu0  ;;  %7581 = vmatprep.subr.bf16.mxu1 %v8141_v41  ;;  %7648 = vmatpush3.bf16.msra.mxu0 %v8157_v27  ;;  %v1541_v10 = vsel %vm1481_vm0, %v1536_v63, %v1540_v0  ;;  %v8162_v60 = vld [vmem:[%s9808_s4 + $0xf8] sm:$0xff]   ;;  %v1550_v14 = vshrl.u32 %v8733_v54, 16  ;;  %v8757_v15 = vsel %vm2261_vm1, %v2275_v58, %v2277_v7  ;;  %v8777_v51 = vld [vmem:[%s9808_s4 + $0x100] sm:$0xff]  }
 0x12d   : > { %v726_v9 = vpop.f32.mrb[23].mxu0  ;;  %7470 = vmatmul.mubr.bf16.gmra.mrb[16].mxu1 %v1533_v62  ;;  %7649 = vmatprep.subr.bf16.mxu0 %v8159_v52  ;;  %v1544_v16 = vor.u32 %v1542_v11, %v1540_v0  ;;  %v1548_v17 = vrot.slane %v1546_v1, 1  ;;  %v857_v23 = vmax.f32 %v7380_v5, 0.0  ;;  %v8783_v1 = vld [vmem:[%s9808_s4 + $0x140] sm:$0xff]  }
 0x12e   : > { %v6876_v42 = vpack.c.bf16 %v854_v4, %v853_v56  ;;  %v855_v13 = vmax.f32 %v726_v9, 0.0  ;;  %7538 = vmatmul.mubr.bf16.gmra.mrb[60].mxu0 %v8131_v47  ;;  %7473 = vmatprep.mubr.bf16.mxu1 %v1541_v10 }
 0x12f   : > { %7541 = vmatprep.mubr.bf16.mxu0 %v8733_v54  ;;  %v8134_v18 = vld [vmem:[#allocation2 + $0x48] sm:$0xff]   ;;  %7582 = vmatpush3.bf16.msra.mxu1 %v8141_v41  ;;  %v1549_v27 = vsel %vm1481_vm0, %v1544_v16, %v1548_v17  ;;  %v1552_v28 = vor.u32 %v1550_v14, %v1548_v17 }
 0x130   : > { %6962 = vst [vmem:[#allocation2 + $0x58] sm:$0xff] %v6876_v42   ;;  %v6881_v19 = vpack.c.bf16 %v856_v3, %v855_v13  ;;  %7583 = vmatprep.subr.bf16.mxu1 %v8147_v2  ;;  %7650 = vmatpush3.bf16.msra.mxu0 %v8159_v52  ;;  %v1554_v21 = vshll.u32 %v8134_v18, 16  ;;  %v2279_v25 = vrot.slane %v8134_v18, 1  ;;  %v1558_v39 = vshrl.u32 %v8134_v18, 16 }
 0x131   : > { %v8135_v22 = vld [vmem:[#allocation2 + $0x50] sm:$0xff]   ;;  %7651 = vmatprep.subr.bf16.mxu0 %v8162_v60 }
 0x132   : > { %6963 = vst [vmem:[#allocation2 + $0x60] sm:$0xff] %v6881_v19   ;;  %v7383_v24 = vpop.f32.mrb[24].mxu0  ;;  %v1556_v29 = vrot.slane %v1554_v21, 1  ;;  %v1562_v30 = vshll.u32 %v8135_v22, 16  ;;  %v8768_v35 = vsel %vm2261_vm1, %v2277_v7, %v2279_v25  ;;  %v2281_v36 = vrot.slane %v8135_v22, 1 }
 0x133   : > { %v739_v26 = vpop.f32.mrb[25].mxu0  ;;  %7584 = vmatpush3.bf16.msra.mxu1 %v8147_v2  ;;  %v860_v32 = vmax.f32 %v7383_v24, 0.0  ;;  %v1566_v44 = vshrl.u32 %v8135_v22, 16 }
 0x134   : > { %v858_v33 = vmax.f32 %v739_v26, 0.0  ;;  %v7384_v34 = vpop.f32.mrb[26].mxu0  ;;  %7585 = vmatprep.subr.bf16.mxu1 %v8153_v20  ;;  %7652 = vmatpush3.bf16.msra.mxu0 %v8162_v60  ;;  %v1557_v38 = vsel %vm1481_vm0, %v1552_v28, %v1556_v29  ;;  %v8772_v45 = vsel %vm2261_vm1, %v2279_v25, %v2281_v36  ;;  %v1560_v46 = vor.u32 %v1558_v39, %v1556_v29 }
 0x135   : > { %v742_v37 = vpop.f32.mrb[27].mxu0  ;;  %7474 = vmatmul.mubr.bf16.gmra.mrb[20].mxu1 %v1549_v27  ;;  %v1564_v47 = vrot.slane %v1562_v30, 1  ;;  %v861_v54 = vmax.f32 %v7384_v34, 0.0  ;;  %7765 = vmatprep.subr.bf16.mxu0 %v8783_v1 }
 0x136   : > { %v6886_v40 = vpack.c.bf16 %v858_v33, %v857_v23  ;;  %v859_v41 = vmax.f32 %v742_v37, 0.0  ;;  %7542 = vmatmul.mubr.bf16.gmra.mrb[64].mxu0 %v8134_v18  ;;  %7477 = vmatprep.mubr.bf16.mxu1 %v1557_v38 }
 0x137   : > { %7545 = vmatprep.mubr.bf16.mxu0 %v8135_v22  ;;  %v8136_v49 = vld [vmem:[#allocation2 + $0x58] sm:$0xff]   ;;  %7586 = vmatpush3.bf16.msra.mxu1 %v8153_v20  ;;  %v1565_v59 = vsel %vm1481_vm0, %v1560_v46, %v1564_v47  ;;  %v1568_v62 = vor.u32 %v1566_v44, %v1564_v47 }
 0x138   : > { %6964 = vst [vmem:[#allocation2 + $0x68] sm:$0xff] %v6886_v40   ;;  %v6891_v50 = vpack.c.bf16 %v860_v32, %v859_v41  ;;  %7587 = vmatprep.subr.bf16.mxu1 %v8161_v31  ;;  %v1570_v52 = vshll.u32 %v8136_v49, 16  ;;  %v2283_v57 = vrot.slane %v8136_v49, 1  ;;  %v1574_v11 = vshrl.u32 %v8136_v49, 16 }
 0x139   : > { %v8137_v53 = vld [vmem:[#allocation2 + $0x60] sm:$0xff]  }
 0x13a   : > { %6965 = vst [vmem:[#allocation2 + $0x70] sm:$0xff] %v6891_v50   ;;  %v7387_v56 = vpop.f32.mrb[28].mxu0  ;;  %v1572_v63 = vrot.slane %v1570_v52, 1  ;;  %v1578_v0 = vshll.u32 %v8137_v53, 16  ;;  %v8787_v5 = vsel %vm2261_vm1, %v2281_v36, %v2283_v57  ;;  %v2285_v7 = vrot.slane %v8137_v53, 1 }
 0x13b   : > { %v755_v58 = vpop.f32.mrb[29].mxu0  ;;  %7588 = vmatpush3.bf16.msra.mxu1 %v8161_v31  ;;  %v864_v2 = vmax.f32 %v7387_v56, 0.0  ;;  %v1582_v13 = vshrl.u32 %v8137_v53, 16 }
 0x13c   : > { %v862_v3 = vmax.f32 %v755_v58, 0.0  ;;  %v7388_v4 = vpop.f32.mrb[30].mxu0  ;;  %7701 = vmatprep.subr.bf16.mxu1 %v8777_v51  ;;  %v1573_v10 = vsel %vm1481_vm0, %v1568_v62, %v1572_v63  ;;  %v8792_v14 = vsel %vm2261_vm1, %v2283_v57, %v2285_v7  ;;  %v1576_v16 = vor.u32 %v1574_v11, %v1572_v63 }
 0x13d   : > { %v758_v9 = vpop.f32.mrb[31].mxu0  ;;  %7478 = vmatmul.mubr.bf16.gmra.mrb[24].mxu1 %v1565_v59  ;;  %v1580_v17 = vrot.slane %v1578_v0, 1  ;;  %v865_v22 = vmax.f32 %v7388_v4, 0.0 }
 0x13e   : > { %v6896_v60 = vpack.c.bf16 %v862_v3, %v861_v54  ;;  %v863_v42 = vmax.f32 %v758_v9, 0.0  ;;  %7546 = vmatmul.mubr.bf16.gmra.mrb[68].mxu0 %v8136_v49  ;;  %7481 = vmatprep.mubr.bf16.mxu1 %v1573_v10 }
 0x13f   : > { %7549 = vmatprep.mubr.bf16.mxu0 %v8137_v53  ;;  %v8139_v18 = vld [vmem:[#allocation2 + $0x68] sm:$0xff]   ;;  %v1581_v26 = vsel %vm1481_vm0, %v1576_v16, %v1580_v17  ;;  %v1584_v27 = vor.u32 %v1582_v13, %v1580_v17 }
 0x140   : > { %6966 = vst [vmem:[#allocation2 + $0x78] sm:$0xff] %v6896_v60   ;;  %v6901_v19 = vpack.c.bf16 %v864_v2, %v863_v42  ;;  %v1586_v20 = vshll.u32 %v8139_v18, 16  ;;  %v2287_v24 = vrot.slane %v8139_v18, 1  ;;  %v1590_v38 = vshrl.u32 %v8139_v18, 16 }
 0x141   : > { %v8140_v21 = vld [vmem:[#allocation2 + $0x70] sm:$0xff]  }
 0x142   : > { %6967 = vst [vmem:[#allocation2 + $0x80] sm:$0xff] %v6901_v19   ;;  %v7391_v23 = vpop.f32.mrb[32].mxu0  ;;  %v1588_v28 = vrot.slane %v1586_v20, 1  ;;  %v1594_v29 = vshll.u32 %v8140_v21, 16  ;;  %v8796_v33 = vsel %vm2261_vm1, %v2285_v7, %v2287_v24  ;;  %v2289_v34 = vrot.slane %v8140_v21, 1 }
 0x143   : > { %v771_v25 = vpop.f32.mrb[33].mxu0  ;;  %v868_v30 = vmax.f32 %v7391_v23, 0.0  ;;  %v1598_v41 = vshrl.u32 %v8140_v21, 16 }
 0x144   : > { %v866_v31 = vmax.f32 %v771_v25, 0.0  ;;  %v7392_v32 = vpop.f32.mrb[34].mxu0  ;;  %v1589_v37 = vsel %vm1481_vm0, %v1584_v27, %v1588_v28  ;;  %v8800_v44 = vsel %vm2261_vm1, %v2287_v24, %v2289_v34  ;;  %v1592_v46 = vor.u32 %v1590_v38, %v1588_v28 }
 0x145   : > { %v774_v36 = vpop.f32.mrb[35].mxu0  ;;  %7482 = vmatmul.mubr.bf16.gmra.mrb[28].mxu1 %v1581_v26  ;;  %v1596_v47 = vrot.slane %v1594_v29, 1  ;;  %v869_v54 = vmax.f32 %v7392_v32, 0.0 }
 0x146   : > { %v6906_v39 = vpack.c.bf16 %v866_v31, %v865_v22  ;;  %v867_v40 = vmax.f32 %v774_v36, 0.0  ;;  %7550 = vmatmul.mubr.bf16.gmra.mrb[72].mxu0 %v8139_v18  ;;  %7485 = vmatprep.mubr.bf16.mxu1 %v1589_v37 }
 0x147   : > { %7553 = vmatprep.mubr.bf16.mxu0 %v8140_v21  ;;  %v8142_v49 = vld [vmem:[#allocation2 + $0x78] sm:$0xff]   ;;  %v1597_v59 = vsel %vm1481_vm0, %v1592_v46, %v1596_v47  ;;  %v1600_v62 = vor.u32 %v1598_v41, %v1596_v47 }
 0x148   : > { %6968 = vst [vmem:[#allocation2 + $0x88] sm:$0xff] %v6906_v39   ;;  %v6911_v50 = vpack.c.bf16 %v868_v30, %v867_v40  ;;  %v1602_v52 = vshll.u32 %v8142_v49, 16  ;;  %v2291_v57 = vrot.slane %v8142_v49, 1  ;;  %v1606_v60 = vshrl.u32 %v8142_v49, 16 }
 0x149   : > { %v8143_v53 = vld [vmem:[#allocation2 + $0x80] sm:$0xff]  }
 0x14a   : > { %6969 = vst [vmem:[#allocation2 + $0x90] sm:$0xff] %v6911_v50   ;;  %v7395_v56 = vpop.f32.mrb[36].mxu0  ;;  %v1604_v63 = vrot.slane %v1602_v52, 1  ;;  %v1610_v0 = vshll.u32 %v8143_v53, 16  ;;  %v8804_v7 = vsel %vm2261_vm1, %v2289_v34, %v2291_v57  ;;  %v2293_v9 = vrot.slane %v8143_v53, 1 }
 0x14b   : > { %v787_v58 = vpop.f32.mrb[37].mxu0  ;;  %v872_v2 = vmax.f32 %v7395_v56, 0.0  ;;  %v1614_v16 = vshrl.u32 %v8143_v53, 16 }
 0x14c   : > { %v870_v3 = vmax.f32 %v787_v58, 0.0  ;;  %v7396_v4 = vpop.f32.mrb[38].mxu0  ;;  %v1605_v11 = vsel %vm1481_vm0, %v1600_v62, %v1604_v63  ;;  %v8808_v17 = vsel %vm2261_vm1, %v2291_v57, %v2293_v9  ;;  %v1608_v18 = vor.u32 %v1606_v60, %v1604_v63 }
 0x14d   : > { %v790_v10 = vpop.f32.mrb[39].mxu0  ;;  %7486 = vmatmul.mubr.bf16.gmra.mrb[32].mxu1 %v1597_v59  ;;  %v1612_v19 = vrot.slane %v1610_v0, 1  ;;  %v873_v24 = vmax.f32 %v7396_v4, 0.0 }
 0x14e   : > { %v6916_v42 = vpack.c.bf16 %v870_v3, %v869_v54  ;;  %v871_v13 = vmax.f32 %v790_v10, 0.0  ;;  %7554 = vmatmul.mubr.bf16.gmra.mrb[76].mxu0 %v8142_v49  ;;  %7489 = vmatprep.mubr.bf16.mxu1 %v1605_v11 }
 0x14f   : > { %7557 = vmatprep.mubr.bf16.mxu0 %v8143_v53  ;;  %v8144_v20 = vld [vmem:[#allocation2 + $0x88] sm:$0xff]   ;;  %v1613_v28 = vsel %vm1481_vm0, %v1608_v18, %v1612_v19  ;;  %v1616_v29 = vor.u32 %v1614_v16, %v1612_v19 }
 0x150   : > { %6970 = vst [vmem:[#allocation2 + $0x98] sm:$0xff] %v6916_v42   ;;  %v6921_v21 = vpack.c.bf16 %v872_v2, %v871_v13  ;;  %v1618_v22 = vshll.u32 %v8144_v20, 16  ;;  %v2295_v26 = vrot.slane %v8144_v20, 1  ;;  %v1622_v41 = vshrl.u32 %v8144_v20, 16 }
 0x151   : > { %v8146_v23 = vld [vmem:[#allocation2 + $0x90] sm:$0xff]  }
 0x152   : > { %6971 = vst [vmem:[#allocation2 + $0xa0] sm:$0xff] %v6921_v21   ;;  %v7399_v25 = vpop.f32.mrb[40].mxu0  ;;  %v1620_v30 = vrot.slane %v1618_v22, 1  ;;  %v1626_v31 = vshll.u32 %v8146_v23, 16  ;;  %v8812_v37 = vsel %vm2261_vm1, %v2293_v9, %v2295_v26  ;;  %v2297_v38 = vrot.slane %v8146_v23, 1 }
 0x153   : > { %v803_v27 = vpop.f32.mrb[41].mxu0  ;;  %v876_v32 = vmax.f32 %v7399_v25, 0.0  ;;  %v1630_v49 = vshrl.u32 %v8146_v23, 16 }
 0x154   : > { %v874_v34 = vmax.f32 %v803_v27, 0.0  ;;  %v7400_v36 = vpop.f32.mrb[42].mxu0  ;;  %v1621_v40 = vsel %vm1481_vm0, %v1616_v29, %v1620_v30  ;;  %v8816_v50 = vsel %vm2261_vm1, %v2295_v26, %v2297_v38  ;;  %v1624_v52 = vor.u32 %v1622_v41, %v1620_v30 }
 0x155   : > { %v806_v39 = vpop.f32.mrb[43].mxu0  ;;  %7490 = vmatmul.mubr.bf16.gmra.mrb[36].mxu1 %v1613_v28  ;;  %v1628_v53 = vrot.slane %v1626_v31, 1  ;;  %v877_v59 = vmax.f32 %v7400_v36, 0.0 }
 0x156   : > { %v6926_v46 = vpack.c.bf16 %v874_v34, %v873_v24  ;;  %v875_v47 = vmax.f32 %v806_v39, 0.0  ;;  %7558 = vmatmul.mubr.bf16.gmra.mrb[80].mxu0 %v8144_v20  ;;  %7493 = vmatprep.mubr.bf16.mxu1 %v1621_v40 }
 0x157   : > { %7561 = vmatprep.mubr.bf16.mxu0 %v8146_v23  ;;  %v8149_v54 = vld [vmem:[#allocation2 + $0x98] sm:$0xff]   ;;  %v1629_v2 = vsel %vm1481_vm0, %v1624_v52, %v1628_v53  ;;  %v1632_v3 = vor.u32 %v1630_v49, %v1628_v53 }
 0x158   : > { %6972 = vst [vmem:[#allocation2 + $0xa8] sm:$0xff] %v6926_v46   ;;  %v6931_v56 = vpack.c.bf16 %v876_v32, %v875_v47  ;;  %v1634_v57 = vshll.u32 %v8149_v54, 16  ;;  %v2299_v63 = vrot.slane %v8149_v54, 1  ;;  %v1638_v20 = vshrl.u32 %v8149_v54, 16 }
 0x159   : > { %v8151_v58 = vld [vmem:[#allocation2 + $0xa0] sm:$0xff]  }
 0x15a   : > { %6973 = vst [vmem:[#allocation2 + $0xb0] sm:$0xff] %v6931_v56   ;;  %v7403_v62 = vpop.f32.mrb[44].mxu0  ;;  %v1636_v4 = vrot.slane %v1634_v57, 1  ;;  %v1642_v9 = vshll.u32 %v8151_v58, 16  ;;  %v8820_v42 = vsel %vm2261_vm1, %v2297_v38, %v2299_v63  ;;  %v2301_v13 = vrot.slane %v8151_v58, 1 }
 0x15b   : > { %v819_v0 = vpop.f32.mrb[45].mxu0  ;;  %v880_v10 = vmax.f32 %v7403_v62, 0.0  ;;  %v1646_v23 = vshrl.u32 %v8151_v58, 16 }
 0x15c   : > { %v878_v11 = vmax.f32 %v819_v0, 0.0  ;;  %v7404_v60 = vpop.f32.mrb[46].mxu0  ;;  %v1637_v19 = vsel %vm1481_vm0, %v1632_v3, %v1636_v4  ;;  %v8824_v24 = vsel %vm2261_vm1, %v2299_v63, %v2301_v13  ;;  %v1644_v26 = vrot.slane %v1642_v9, 1 }
 0x15d   : > { %v881_v16 = vmax.f32 %v7404_v60, 0.0  ;;  %v822_v18 = vpop.f32.mrb[47].mxu0  ;;  %7494 = vmatmul.mubr.bf16.gmra.mrb[40].mxu1 %v1629_v2  ;;  %v1640_v29 = vor.u32 %v1638_v20, %v1636_v4  ;;  %v8189_v20 = vld [vmem:[%s9808_s4 + $0x148] sm:$0xff]  }
 0x15e   : > { %v6936_v21 = vpack.c.bf16 %v878_v11, %v877_v59  ;;  %v879_v22 = vmax.f32 %v822_v18, 0.0  ;;  %7562 = vmatmul.mubr.bf16.gmra.mrb[84].mxu0 %v8149_v54  ;;  %7497 = vmatprep.mubr.bf16.mxu1 %v1637_v19  ;;  %v1648_v34 = vor.u32 %v1646_v23, %v1644_v26  ;;  %v8164_v19 = vld [vmem:[#allocation2 + $0x14] sm:$0xff]   ;;  %v8171_v23 = vld [vmem:[%s9808_s4 + $0x108] sm:$0xff]  }
 0x15f   : > { %v6821_v25 = vpack.c.bf16 %v881_v16, %v881_v16  ;;  %7565 = vmatprep.mubr.bf16.mxu0 %v8151_v58  ;;  %v8154_v27 = vld [vmem:[#allocation2 + $0xa8] sm:$0xff]   ;;  %v1645_v40 = vsel %vm1481_vm0, %v1640_v29, %v1644_v26  ;;  %v8174_v26 = vld [vmem:[%s9808_s4 + $0x110] sm:$0xff]   ;;  %v8182_v29 = vld [vmem:[%s9808_s4 + $0x120] sm:$0xff]  }
 0x160   : > { %6974 = vst [vmem:[#allocation2 + $0xb8] sm:$0xff] %v6936_v21   ;;  %v6941_v28 = vpack.c.bf16 %v880_v10, %v879_v22  ;;  %v1650_v30 = vshll.u32 %v8154_v27, 16  ;;  %v2303_v32 = vrot.slane %v8154_v27, 1  ;;  %v1654_v49 = vshrl.u32 %v8154_v27, 16  ;;  %v8160_v10 = vld [vmem:[#allocation2 + $0xc] sm:$0xff]   ;;  %v8165_v21 = vld [vmem:[#allocation2 + $0x1c] sm:$0xff]  }
 0x161   : > { %1121 = vst [vmem:[#allocation2 + $0xc8] sm:$0xf] %v6821_v25  ;;  %v8156_v31 = vld [vmem:[#allocation2 + $0xb0] sm:$0xff]   ;;  %v8167_v25 = vld [vmem:[#allocation2 + $0x24] sm:$0xff]  }
 0x162   : > { %6975 = vst [vmem:[#allocation2 + $0xc0] sm:$0xff] %v6941_v28   ;;  %v1652_v36 = vrot.slane %v1650_v30, 1  ;;  %v1658_v38 = vshll.u32 %v8156_v31, 16  ;;  %v2305_v39 = vrot.slane %v8156_v31, 1  ;;  %v8828_v41 = vsel %vm2261_vm1, %v2301_v13, %v2303_v32  ;;  %v8191_v22 = vld [vmem:[%s9808_s4 + $0x150] sm:$0xff]   ;;  %v8170_v28 = vld [vmem:[#allocation2 + $0x3c] sm:$0xff]  }
 0x163   : > { %v1662_v52 = vshrl.u32 %v8156_v31, 16  ;;  %v8172_v30 = vld [vmem:[#allocation2 + $0x44] sm:$0xff]  }
 0x164   : > { %v1653_v46 = vsel %vm1481_vm0, %v1648_v34, %v1652_v36  ;;  %v8832_v47 = vsel %vm2261_vm1, %v2303_v32, %v2305_v39  ;;  %v1660_v53 = vrot.slane %v1658_v38, 1  ;;  %v1656_v56 = vor.u32 %v1654_v49, %v1652_v36  ;;  %v8173_v32 = vld [vmem:[#allocation2 + $0x4c] sm:$0xff]   ;;  %v8204_v36 = vld [vmem:[%s9808_s4 + $0x138] sm:$0xff]  }
 0x165   : > { %7498 = vmatmul.mubr.bf16.gmra.mrb[44].mxu1 %v1645_v40  ;;  %v8194_v34 = vld [vmem:[%s9808_s4 + $0x130] sm:$0xff]   ;;  %v8176_v38 = vld [vmem:[#allocation2 + $0x5c] sm:$0xff]   ;;  %v8248_v40 = vld [vmem:[#allocation2 + $0x28] sm:$0xff]  }
 0x166   : > { %7566 = vmatmul.mubr.bf16.gmra.mrb[88].mxu0 %v8154_v27  ;;  %7501 = vmatprep.mubr.bf16.mxu1 %v1653_v46  ;;  %v1664_v62 = vor.u32 %v1662_v52, %v1660_v53  ;;  %v1661_v2 = vsel %vm1481_vm0, %v1656_v56, %v1660_v53  ;;  %v8198_v27 = vld [vmem:[%s9808_s4 + $0x168] sm:$0xff]   ;;  %v8249_v46 = vld [vmem:[#allocation2 + $0x30] sm:$0xff]   ;;  %v8253_v49 = vld [vmem:[#allocation2 + $0x38] sm:$0xff]   ;;  %v5423_v53 = vrot.slane %v8248_v40, 1 }
 0x167   : > { %7569 = vmatprep.mubr.bf16.mxu0 %v8156_v31  ;;  %v8158_v54 = vld [vmem:[#allocation2 + $0xb8] sm:$0xff]   ;;  %v8906_v52 = vld [vmem:[%s9808_s4 + $0x1c0] sm:$0xff]   ;;  %v5427_v56 = vrot.slane %v8253_v49, 1 }
 0x168   : > { %v1666_v57 = vshll.u32 %v8158_v54, 16  ;;  %v2307_v59 = vrot.slane %v8158_v54, 1  ;;  %v1670_v11 = vshrl.u32 %v8158_v54, 16  ;;  %v8205_v31 = vld [vmem:[%s9808_s4 + $0x178] sm:$0xff]  }
 0x169   : > { %v8163_v58 = vld [vmem:[#allocation2 + $0xc0] ss:$0 sps:$4 sm:$0x11]  }
 0x16a   : > { %v1668_v63 = vrot.slane %v1666_v57, 1  ;;  %v1674_v0 = vshll.u32 %v8163_v58, 16  ;;  %v8836_v3 = vsel %vm2261_vm1, %v2305_v39, %v2307_v59  ;;  %v2309_v4 = vrot.slane %v8163_v58, 1  ;;  %v8900_v39 = vld [vmem:[%s9808_s4 + $0x180] sm:$0xff]  }
 0x16b   : > { %v8254_v57 = vld [vmem:[#allocation2 + $0x40] sm:$0xff]  }
 0x16c   : > { %v1669_v9 = vsel %vm1481_vm0, %v1664_v62, %v1668_v63  ;;  %v8840_v60 = vsel %vm2261_vm1, %v2307_v59, %v2309_v4  ;;  %v1676_v13 = vrot.slane %v1674_v0, 1  ;;  %v1672_v16 = vor.u32 %v1670_v11, %v1668_v63  ;;  %v8177_v58 = vld [vmem:[#allocation2 + $0x64] sm:$0xff]   ;;  %v8178_v63 = vld [vmem:[#allocation2 + $0x6c] sm:$0xff]  }
 0x16d   : > { %7502 = vmatmul.mubr.bf16.gmra.mrb[48].mxu1 %v1661_v2  ;;  %v5429_v0 = vrot.slane %v8254_v57, 1  ;;  %v8257_v4 = vld [vmem:[#allocation2 + $0x48] sm:$0xff]   ;;  %v8258_v11 = vld [vmem:[#allocation2 + $0x50] sm:$0xff]  }
 0x16e   : > { %7570 = vmatmul.mubr.bf16.gmra.mrb[92].mxu0 %v8158_v54  ;;  %7505 = vmatprep.mubr.bf16.mxu1 %v1669_v9  ;;  %v1677_v18 = vsel %vm1481_vm0, %v1672_v16, %v1676_v13  ;;  %v5425_v54 = vrot.slane %v8249_v46, 1  ;;  %v8181_v9 = vld [vmem:[#allocation2 + $0x7c] sm:$0xff]   ;;  %v8183_v13 = vld [vmem:[#allocation2 + $0x84] sm:$0xff]   ;;  %v8184_v16 = vld [vmem:[#allocation2 + $0x8c] sm:$0xff]  }
 0x16f   : > { %7653 = vmatprep.mubr.bf16.mxu0 %v8160_v10  ;;  %v8925_v2 = vsel %vm2261_vm1, %v5427_v56, %v5429_v0  ;;  %v5431_v10 = vrot.slane %v8257_v4, 1 }
 0x170   : > { %v8918_v59 = vsel %vm2261_vm1, %v5423_v53, %v5425_v54  ;;  %v8921_v62 = vsel %vm2261_vm1, %v5425_v54, %v5427_v56 }
 0x175   : > { %7506 = vmatmul.mubr.bf16.gmra.mrb[52].mxu1 %v1677_v18  ;;  %v5433_v18 = vrot.slane %v8258_v11, 1  ;;  %v8190_v11 = vld [vmem:[#allocation2 + $0xa4] sm:$0xff]  }
 0x176   : > { %7589 = vmatprep.mubr.bf16.mxu1 %v8674_v43  ;;  %7654 = vmatmul.mubr.bf16.vlgmr.msra.gmra.mrb[96].mxu0 %v8164_v19  ;;  %v8193_v43 = vld [vmem:[%s9808_s4 + $0x158] sm:$0xff]   ;;  %v8263_v19 = vld [vmem:[#allocation2 + $0x60] sm:$0xff]  }
 0x177   : > { %7657 = vmatprep.mubr.bf16.mxu0 %v8165_v21  ;;  %7766 = vmatpush3.bf16.msra.mxu0 %v8783_v1  ;;  %v8168_v1 = vld [vmem:[#allocation2 + $0x2c] sm:$0xff]  }
 0x178   : > { %7767 = vmatprep.subr.bf16.mxu0 %v8189_v20  ;;  %v8268_v21 = vld [vmem:[#allocation2 + $0x70] sm:$0xff]  }
 0x17b   : > { %7768 = vmatpush3.bf16.msra.mxu0 %v8189_v20  ;;  %v8267_v20 = vld [vmem:[#allocation2 + $0x68] sm:$0xff]  }
 0x17c   : > { %7769 = vmatprep.subr.bf16.mxu0 %v8191_v22 }
 0x17d   : > { %7590 = vmatmul.mubr.bf16.vlgmr.msra.gmra.mrb[56].mxu1 %v8680_v61  ;;  %v8196_v61 = vld [vmem:[%s9808_s4 + $0x160] sm:$0xff]  }
 0x17e   : > { %7702 = vmatpush3.bf16.msra.mxu1 %v8777_v51  ;;  %7593 = vmatprep.mubr.bf16.mxu1 %v8692_v8  ;;  %v8179_v8 = vld [vmem:[%s9808_s4 + $0x118] sm:$0xff]  }
 0x17f   : > { %7658 = vmatmul.mubr.bf16.gmra.mrb[100].mxu0 %v8167_v25  ;;  %7703 = vmatprep.subr.bf16.mxu1 %v8171_v23  ;;  %v8169_v51 = vld [vmem:[#allocation2 + $0x34] sm:$0xff]  }
 0x180   : > { %7661 = vmatprep.mubr.bf16.mxu0 %v8168_v1  ;;  %7770 = vmatpush3.bf16.msra.mxu0 %v8191_v22  ;;  %v8185_v22 = vld [vmem:[#allocation2 + $0x94] sm:$0xff]   ;;  %v8272_v1 = vld [vmem:[#allocation2 + $0x80] sm:$0xff]  }
 0x181   : > { %7771 = vmatprep.subr.bf16.mxu0 %v8193_v43  ;;  %v8271_v25 = vld [vmem:[#allocation2 + $0x78] sm:$0xff]   ;;  %v5445_v40 = vrot.slane %v8272_v1, 1 }
 0x182   : > { %7704 = vmatpush3.bf16.msra.mxu1 %v8171_v23  ;;  %v8937_v23 = vld [vmem:[#allocation2 + $0x1c] sm:$0xf] }
 0x183   : > { %7705 = vmatprep.subr.bf16.mxu1 %v8174_v26 }
 0x184   : > { %7772 = vmatpush3.bf16.msra.mxu0 %v8193_v43 }
 0x185   : > { %7594 = vmatmul.mubr.bf16.gmra.mrb[60].mxu1 %v8702_v12  ;;  %7773 = vmatprep.subr.bf16.mxu0 %v8196_v61  ;;  %v8200_v12 = vld [vmem:[%s9808_s4 + $0x170] sm:$0xff]  }
 0x186   : > { %7597 = vmatprep.mubr.bf16.mxu1 %v8727_v48  ;;  %7706 = vmatpush3.bf16.msra.mxu1 %v8174_v26  ;;  %v8188_v48 = vld [vmem:[%s9808_s4 + $0x128] sm:$0xff]  }
 0x187   : > { %7662 = vmatmul.mubr.bf16.gmra.mrb[104].mxu0 %v8169_v51  ;;  %7707 = vmatprep.subr.bf16.mxu1 %v8179_v8  ;;  %v8276_v26 = vld [vmem:[#allocation2 + $0x88] sm:$0xff]   ;;  %v8281_v51 = vld [vmem:[#allocation2 + $0x98] sm:$0xff]  }
 0x188   : > { %7665 = vmatprep.mubr.bf16.mxu0 %v8170_v28  ;;  %7774 = vmatpush3.bf16.msra.mxu0 %v8196_v61  ;;  %v8282_v28 = vld [vmem:[#allocation2 + $0xa0] sm:$0xff]   ;;  %v5447_v46 = vrot.slane %v8276_v26, 1  ;;  %v5451_v54 = vrot.slane %v8281_v51, 1  ;;  %v8202_v26 = vld [vmem:[#allocation2 + $0x14] sm:$0xff]  }
 0x189   : > { %7775 = vmatprep.subr.bf16.mxu0 %v8198_v27 }
 0x18a   : > { %7708 = vmatpush3.bf16.msra.mxu1 %v8179_v8  ;;  %v5437_v8 = vrot.slane %v8263_v19, 1  ;;  %v8961_v57 = vsel %vm2261_vm1, %v5445_v40, %v5447_v46 }
 0x18b   : > { %7709 = vmatprep.subr.bf16.mxu1 %v8182_v29  ;;  %9823 = vst [vmem:[#allocation11_spill] sm:$0xff] %v8961_v57 }
 0x18c   : > { %7776 = vmatpush3.bf16.msra.mxu0 %v8198_v27  ;;  %v5439_v27 = vrot.slane %v8267_v20, 1 }
 0x18d   : > { %7598 = vmatmul.mubr.bf16.gmra.mrb[64].mxu1 %v8737_v55  ;;  %7777 = vmatprep.subr.bf16.mxu0 %v8200_v12  ;;  %v8175_v55 = vld [vmem:[#allocation2 + $0x54] sm:$0xff]  }
 0x18e   : > { %7601 = vmatprep.mubr.bf16.mxu1 %v8748_v6  ;;  %7710 = vmatpush3.bf16.msra.mxu1 %v8182_v29  ;;  %v8894_v6 = vld [vmem:[#allocation2 + $0x20] sm:$0xff]   ;;  %v8285_v29 = vld [vmem:[#allocation2 + $0xa8] sm:$0xff]  }
 0x18f   : > { %7666 = vmatmul.mubr.bf16.gmra.mrb[108].mxu0 %v8172_v30  ;;  %7711 = vmatprep.subr.bf16.mxu1 %v8188_v48  ;;  %v5441_v30 = vrot.slane %v8268_v21, 1 }
 0x190   : > { %7669 = vmatprep.mubr.bf16.mxu0 %v8173_v32  ;;  %7778 = vmatpush3.bf16.msra.mxu0 %v8200_v12  ;;  %v5399_v12 = vld [vmem:[#allocation2 + $0x18] sm:$0xe] }
 0x191   : > { %7779 = vmatprep.subr.bf16.mxu0 %v8205_v31  ;;  %v6750_v32 = vcombine.low %v5399_v12, %v8937_v23 }
 0x192   : > { %7712 = vmatpush3.bf16.msra.mxu1 %v8188_v48 }
 0x193   : > { %7713 = vmatprep.subr.bf16.mxu1 %v8194_v34  ;;  %v5420_v49 = vrot.slane %v6750_v32, 1 }
 0x194   : > { %7780 = vmatpush3.bf16.msra.mxu0 %v8205_v31  ;;  %v5443_v31 = vrot.slane %v8271_v25, 1  ;;  %v8195_v25 = vld [vmem:[#allocation2 + $0xb4] sm:$0xff]  }
 0x195   : > { %7602 = vmatmul.mubr.bf16.gmra.mrb[68].mxu1 %v8757_v15  ;;  %7893 = vmatprep.subr.bf16.mxu0 %v8906_v52  ;;  %v5421_v15 = vrot.slane %v8894_v6, 1 }
 0x196   : > { %7605 = vmatprep.mubr.bf16.mxu1 %v8768_v35  ;;  %7714 = vmatpush3.bf16.msra.mxu1 %v8194_v34  ;;  %v8949_v34 = vsel %vm2261_vm1, %v5437_v8, %v5439_v27  ;;  %v8958_v56 = vsel %vm2261_vm1, %v5443_v31, %v5445_v40 }
 0x197   : > { %7670 = vmatmul.mubr.bf16.gmra.mrb[112].mxu0 %v8175_v55  ;;  %7715 = vmatprep.subr.bf16.mxu1 %v8204_v36  ;;  %v8914_v35 = vsel %vm2261_vm1, %v5421_v15, %v5423_v53  ;;  %9819 = vst [vmem:[#allocation7_spill] sm:$0xff] %v8949_v34  ;;  %v8290_v55 = vld [vmem:[#allocation2 + $0xb8] sm:$0xff]   ;;  %9822 = vst [vmem:[#allocation10_spill] sm:$0xff] %v8958_v56  ;;  %v8968_v4 = vsel %vm2261_vm1, %v5420_v49, %v5421_v15  ;;  %v8192_v15 = vld [vmem:[#allocation2 + $0xac] sm:$0xff]   ;;  %v3323_v49 = vshrl.u32 %v8202_v26, 16 }
 0x198   : > { %7673 = vmatprep.mubr.bf16.mxu0 %v8176_v38  ;;  %v8955_v38 = vsel %vm2261_vm1, %v5441_v30, %v5443_v31  ;;  %v5459_v6 = vrot.slane %v8290_v55, 1  ;;  %v8207_v31 = vld [vmem:[#allocation2 + $0x24] sm:$0xff]  }
 0x199   : > { %9821 = vst [vmem:[#allocation9_spill] sm:$0xff] %v8955_v38  ;;  %v8312_v38 = vld [vmem:[#allocation2 + $0x28] sm:$0xff]  }
 0x19a   : > { %7716 = vmatpush3.bf16.msra.mxu1 %v8204_v36  ;;  %v8952_v36 = vsel %vm2261_vm1, %v5439_v27, %v5441_v30  ;;  %v8199_v27 = vld [vmem:[#allocation2 + $0xc4] sm:$0xff]  }
 0x19b   : > { %7829 = vmatprep.subr.bf16.mxu1 %v8900_v39  ;;  %9820 = vst [vmem:[#allocation8_spill] sm:$0xff] %v8952_v36 }
 0x19d   : > { %7606 = vmatmul.mubr.bf16.gmra.mrb[72].mxu1 %v8772_v45  ;;  %v8180_v45 = vld [vmem:[#allocation2 + $0x74] sm:$0xff]  }
 0x19e   : > { %7609 = vmatprep.mubr.bf16.mxu1 %v8787_v5  ;;  %v8930_v5 = vsel %vm2261_vm1, %v5429_v0, %v5431_v10  ;;  %v8963_v0 = vld [vmem:[#allocation2 + $0xc8] sm:$0xff]  }
 0x19f   : > { %7674 = vmatmul.mubr.bf16.gmra.mrb[116].mxu0 %v8177_v58  ;;  %9815 = vst [vmem:[#allocation3_spill] sm:$0xff] %v8930_v5  ;;  %v5453_v58 = vrot.slane %v8282_v28, 1  ;;  %9824 = vst [vmem:[#allocation12_spill] sm:$0xff] %v8963_v0  ;;  %v9813_v19 = vrot.slane %v8963_v0, 1 }
 0x1a0   : > { %7677 = vmatprep.mubr.bf16.mxu0 %v8178_v63  ;;  %v5455_v63 = vrot.slane %v8285_v29, 1  ;;  %v3319_v29 = vshll.u32 %v8202_v26, 16 }
 0x1a5   : > { %7610 = vmatmul.mubr.bf16.gmra.mrb[76].mxu1 %v8792_v14  ;;  %v8262_v14 = vld [vmem:[#allocation2 + $0x58] sm:$0xff]  }
 0x1a6   : > { %7613 = vmatprep.mubr.bf16.mxu1 %v8796_v33  ;;  %v8935_v33 = vsel %vm2261_vm1, %v5431_v10, %v5433_v18  ;;  %v5435_v43 = vrot.slane %v8262_v14, 1 }
 0x1a7   : > { %7678 = vmatmul.mubr.bf16.gmra.mrb[120].mxu0 %v8180_v45  ;;  %9816 = vst [vmem:[#allocation4_spill] sm:$0xff] %v8935_v33  ;;  %v8322_v33 = vld [vmem:[#allocation2 + $0x78] sm:$0xff]  }
 0x1a8   : > { %7681 = vmatprep.mubr.bf16.mxu0 %v8181_v9  ;;  %v8941_v61 = vsel %vm2261_vm1, %v5433_v18, %v5435_v43  ;;  %v8945_v48 = vsel %vm2261_vm1, %v5435_v43, %v5437_v8  ;;  %v8197_v43 = vld [vmem:[#allocation2 + $0xbc] sm:$0xff]   ;;  %v3842_v8 = vrot.slane %v8202_v26, 1  ;;  %v4986_v5 = vshll.u32 %v8322_v33, 16 }
 0x1a9   : > { %9817 = vst [vmem:[#allocation5_spill] sm:$0xff] %v8941_v61  ;;  %9818 = vst [vmem:[#allocation6_spill] sm:$0xff] %v8945_v48  ;;  %v8235_v26 = vld [vmem:[%s9808_s4 + $0x1d8] sm:$0xff]  }
 0x1ad   : > { %7614 = vmatmul.mubr.bf16.gmra.mrb[80].mxu1 %v8800_v44  ;;  %v8187_v44 = vld [vmem:[#allocation2 + $0x9c] sm:$0xff]  }
 0x1ae   : > { %7617 = vmatprep.mubr.bf16.mxu1 %v8804_v7  ;;  %v8277_v7 = vld [vmem:[#allocation2 + $0x90] sm:$0xff]  }
 0x1af   : > { %7682 = vmatmul.mubr.bf16.gmra.mrb[124].mxu0 %v8183_v13  ;;  %v5449_v53 = vrot.slane %v8277_v7, 1  ;;  %v8978_v13 = vsel %vm2261_vm1, %v5451_v54, %v5453_v58 }
 0x1b0   : > { %7685 = vmatprep.mubr.bf16.mxu0 %v8184_v16  ;;  %9827 = vst [vmem:[#allocation15_spill] sm:$0xff] %v8978_v13  ;;  %v8981_v16 = vsel %vm2261_vm1, %v5453_v58, %v5455_v63 }
 0x1b1   : > { %v8971_v45 = vsel %vm2261_vm1, %v5447_v46, %v5449_v53  ;;  %v8974_v9 = vsel %vm2261_vm1, %v5449_v53, %v5451_v54  ;;  %9828 = vst [vmem:[#allocation16_spill] sm:$0xff] %v8981_v16  ;;  %v3335_v46 = vshll.u32 %v8207_v31, 16  ;;  %v8209_v54 = vld [vmem:[#allocation2 + $0x2c] sm:$0xff]  }
 0x1b2   : > { %9825 = vst [vmem:[#allocation13_spill] sm:$0xff] %v8971_v45  ;;  %9826 = vst [vmem:[#allocation14_spill] sm:$0xff] %v8974_v9 }
 0x1b5   : > { %7618 = vmatmul.mubr.bf16.gmra.mrb[84].mxu1 %v8808_v17  ;;  %v8286_v17 = vld [vmem:[#allocation2 + $0xb0] sm:$0xff]  }
 0x1b6   : > { %7621 = vmatprep.mubr.bf16.mxu1 %v8812_v37  ;;  %v8291_v37 = vld [vmem:[#allocation2 + $0xc0] sm:$0xff]   ;;  %v5457_v10 = vrot.slane %v8286_v17, 1  ;;  %v3321_v17 = vrot.slane %v3319_v29, 1 }
 0x1b7   : > { %7686 = vmatmul.mubr.bf16.gmra.mrb[128].mxu0 %v8185_v22  ;;  %v5461_v18 = vrot.slane %v8291_v37, 1  ;;  %v3123_v22 = vld [vmem:[#allocation2 + $0x10] sm:$0xf]  ;;  %v3846_v37 = vrot.slane %v8207_v31, 1  ;;  %v9030_v29 = vld [vmem:[#allocation2 + $0x44] sm:$0xff]  }
 0x1b8   : > { %7689 = vmatprep.mubr.bf16.mxu0 %v8187_v44  ;;  %v8985_v14 = vsel %vm2261_vm1, %v5455_v63, %v5457_v10  ;;  %v3820_v44 = vld [vmem:[#allocation2 + $0xc] sm:$0xe] }
 0x1b9   : > { %9829 = vst [vmem:[#allocation17_spill] sm:$0xff] %v8985_v14  ;;  %v8992_v20 = vsel %vm2261_vm1, %v5459_v6, %v5461_v18  ;;  %v8997_v21 = vsel %vm2261_vm1, %v5461_v18, %v9813_v19  ;;  %v6628_v7 = vcombine.low %v3820_v44, %v3123_v22  ;;  %v8233_v18 = vld [vmem:[%s9808_s4 + $0x1d0] sm:$0xff]  }
 0x1ba   : > { %9831 = vst [vmem:[#allocation19_spill] sm:$0xff] %v8992_v20  ;;  %9832 = vst [vmem:[#allocation20_spill] sm:$0xff] %v8997_v21 }
 0x1bb   : > { %v3841_v28 = vrot.slane %v6628_v7, 1 }
 0x1bd   : > { %7622 = vmatmul.mubr.bf16.gmra.mrb[88].mxu1 %v8816_v50  ;;  %v8989_v50 = vsel %vm2261_vm1, %v5457_v10, %v5459_v6  ;;  %v9011_v10 = vld [vmem:[#allocation2 + $0x34] sm:$0xff]   ;;  %v3337_v6 = vrot.slane %v3335_v46, 1  ;;  %v3367_v46 = vshll.u32 %v9030_v29, 16 }
 0x1be   : > { %7625 = vmatprep.mubr.bf16.mxu1 %v8820_v42  ;;  %9830 = vst [vmem:[#allocation18_spill] sm:$0xff] %v8989_v50  ;;  %v3122_v42 = vld [vmem:[#allocation2 + $0xc] sm:$0xf] }
 0x1bf   : > { %7690 = vmatmul.mubr.bf16.gmra.mrb[132].mxu0 %v8190_v11  ;;  %v6579_v1 = vcombine.low %v3122_v42, %v3123_v22  ;;  %v3325_v11 = vor.u32 %v3323_v49, %v3321_v17  ;;  %v3850_v22 = vrot.slane %v9011_v10, 1 }
 0x1c0   : > { %7693 = vmatprep.mubr.bf16.mxu0 %v8192_v15  ;;  %v3848_v15 = vrot.slane %v8209_v54, 1 }
 0x1c1   : > { %v3314_v51 = vshll.u32 %v6579_v1, 16  ;;  %v3312_v12 = vshrl.u32 %v6579_v1, 16  ;;  %v3351_v1 = vshll.u32 %v9011_v10, 16 }
 0x1c2   : > { %v3849_v7 = vsel %vm2261_vm1, %v3846_v37, %v3848_v15 }
 0x1c3   : > { %v3316_v30 = vrot.slane %v3314_v51, 1  ;;  %v8211_v51 = vld [vmem:[#allocation2 + $0x3c] sm:$0xff]  }
 0x1c5   : > { %7626 = vmatmul.mubr.bf16.gmra.mrb[92].mxu1 %v8824_v24  ;;  %v8206_v24 = vld [vmem:[#allocation2 + $0x1c] sm:$0xff]   ;;  %v3317_v55 = vor.u32 %v3316_v30, %v3312_v12  ;;  %v3353_v12 = vrot.slane %v3351_v1, 1 }
 0x1c6   : > { %7629 = vmatprep.mubr.bf16.mxu1 %v8828_v41  ;;  %v3843_v41 = vsel %vm2261_vm1, %v3841_v28, %v3842_v8  ;;  %v3844_v32 = vrot.slane %v8206_v24, 1  ;;  %v3327_v40 = vshll.u32 %v8206_v24, 16  ;;  %v8238_v30 = vld [vmem:[%s9808_s4 + $0x1e0] sm:$0xff]  }
 0x1c7   : > { %7694 = vmatmul.mubr.bf16.gmra.mrb[136].mxu0 %v8195_v25  ;;  %v3343_v25 = vshll.u32 %v8209_v54, 16 }
 0x1c8   : > { %7697 = vmatprep.mubr.bf16.mxu0 %v8197_v43  ;;  %v3845_v53 = vsel %vm2261_vm1, %v3842_v8, %v3844_v32  ;;  %v3847_v58 = vsel %vm2261_vm1, %v3844_v32, %v3846_v37  ;;  %v3329_v63 = vrot.slane %v3327_v40, 1  ;;  %v8213_v43 = vld [vmem:[%s9808_s4 + $0x188] sm:$0xff]   ;;  %v3339_v8 = vshrl.u32 %v8207_v31, 16  ;;  %v8221_v37 = vld [vmem:[%s9808_s4 + $0x198] sm:$0xff]  }
 0x1c9   : > { %v3345_v28 = vrot.slane %v3343_v25, 1  ;;  %v3852_v31 = vrot.slane %v8211_v51, 1  ;;  %v3854_v32 = vrot.slane %v9030_v29, 1 }
 0x1ca   : > { %v3330_v44 = vsel %vm1481_vm0, %v3325_v11, %v3329_v63  ;;  %v9051_v11 = vld [vmem:[#allocation2 + $0x54] sm:$0xff]  }
 0x1cb   : > { %v3853_v49 = vsel %vm2261_vm1, %v3850_v22, %v3852_v31 }
 0x1cd   : > { %7630 = vmatmul.mubr.bf16.gmra.mrb[96].mxu1 %v8832_v47  ;;  %v3322_v47 = vsel %vm1481_vm0, %v3317_v55, %v3321_v17  ;;  %v3359_v55 = vshll.u32 %v8211_v51, 16 }
 0x1ce   : > { %7633 = vmatprep.mubr.bf16.mxu1 %v8836_v3  ;;  %v8231_v3 = vld [vmem:[%s9808_s4 + $0x1c8] sm:$0xff]  }
 0x1cf   : > { %7698 = vmatmul.mubr.bf16.gmra.mrb[140].mxu0 %v8199_v27  ;;  %v3851_v27 = vsel %vm2261_vm1, %v3848_v15, %v3850_v22  ;;  %v3363_v15 = vshrl.u32 %v8211_v51, 16 }
 0x1d0   : > { %7781 = vmatprep.mubr.bf16.mxu0 %v3843_v41  ;;  %v3341_v41 = vor.u32 %v3339_v8, %v3337_v6 }
 0x1d2   : > { %v3346_v40 = vsel %vm1481_vm0, %v3341_v41, %v3345_v28  ;;  %v3371_v41 = vshrl.u32 %v9030_v29, 16 }
 0x1d5   : > { %7634 = vmatmul.mubr.bf16.gmra.mrb[100].mxu1 %v8840_v60  ;;  %v3331_v60 = vshrl.u32 %v8206_v24, 16  ;;  %v8216_v24 = vld [vmem:[%s9808_s4 + $0x190] sm:$0xff]  }
 0x1d6   : > { %7717 = vmatprep.mubr.bf16.mxu1 %v3322_v47 }
 0x1d7   : > { %7782 = vmatmul.mubr.bf16.vlgmr.msra.gmra.mrb[144].mxu0 %v3845_v53  ;;  %v3333_v42 = vor.u32 %v3331_v60, %v3329_v63  ;;  %v3355_v53 = vshrl.u32 %v9011_v10, 16  ;;  %v3361_v63 = vrot.slane %v3359_v55, 1  ;;  %v8224_v60 = vld [vmem:[%s9808_s4 + $0x1a0] sm:$0xff]   ;;  %v8242_v10 = vld [vmem:[%s9808_s4 + $0x1f0] sm:$0xff]  }
 0x1d8   : > { %7785 = vmatprep.mubr.bf16.mxu0 %v3847_v58  ;;  %7894 = vmatpush3.bf16.msra.mxu0 %v8906_v52  ;;  %v3855_v58 = vsel %vm2261_vm1, %v3852_v31, %v3854_v32  ;;  %v9074_v31 = vld [vmem:[#allocation2 + $0x64] sm:$0xff]  }
 0x1d9   : > { %7895 = vmatprep.subr.bf16.mxu0 %v8231_v3  ;;  %v3338_v52 = vsel %vm1481_vm0, %v3333_v42, %v3337_v6  ;;  %v3357_v6 = vor.u32 %v3355_v53, %v3353_v12  ;;  %v3369_v42 = vrot.slane %v3367_v46, 1 }
 0x1db   : > { %v3362_v8 = vsel %vm1481_vm0, %v3357_v6, %v3361_v63 }
 0x1dc   : > { %7896 = vmatpush3.bf16.msra.mxu0 %v8231_v3  ;;  %v8240_v3 = vld [vmem:[%s9808_s4 + $0x1e8] sm:$0xff]  }
 0x1dd   : > { %7718 = vmatmul.mubr.bf16.vlgmr.msra.gmra.mrb[104].mxu1 %v3330_v44  ;;  %7897 = vmatprep.subr.bf16.mxu0 %v8233_v18  ;;  %v3365_v44 = vor.u32 %v3363_v15, %v3361_v63 }
 0x1de   : > { %7830 = vmatpush3.bf16.msra.mxu1 %v8900_v39  ;;  %7721 = vmatprep.mubr.bf16.mxu1 %v3338_v52  ;;  %v3347_v39 = vshrl.u32 %v8209_v54, 16  ;;  %v8214_v54 = vld [vmem:[#allocation2 + $0x4c] sm:$0xff]   ;;  %v3858_v52 = vrot.slane %v9051_v11, 1 }
 0x1df   : > { %7786 = vmatmul.mubr.bf16.gmra.mrb[148].mxu0 %v3849_v7  ;;  %7831 = vmatprep.subr.bf16.mxu1 %v8213_v43  ;;  %v3856_v25 = vrot.slane %v8214_v54, 1  ;;  %v3375_v1 = vshll.u32 %v8214_v54, 16  ;;  %v3370_v51 = vsel %vm1481_vm0, %v3365_v44, %v3369_v42 }
 0x1e0   : > { %7789 = vmatprep.mubr.bf16.mxu0 %v3851_v27  ;;  %7898 = vmatpush3.bf16.msra.mxu0 %v8233_v18  ;;  %v3349_v17 = vor.u32 %v3347_v39, %v3345_v28  ;;  %v3383_v27 = vshll.u32 %v9051_v11, 16  ;;  %v8246_v28 = vld [vmem:[%s9808_s4 + $0x1f8] sm:$0xff]  }
 0x1e1   : > { %7899 = vmatprep.subr.bf16.mxu0 %v8235_v26  ;;  %v9071_v39 = vld [vmem:[#allocation2 + $0x5c] sm:$0xff]  }
 0x1e2   : > { %7832 = vmatpush3.bf16.msra.mxu1 %v8213_v43  ;;  %v3354_v47 = vsel %vm1481_vm0, %v3349_v17, %v3353_v12  ;;  %v3859_v12 = vsel %vm2261_vm1, %v3856_v25, %v3858_v52  ;;  %v8236_v17 = vld [vmem:[%s9808_s4 + $0x1b0] sm:$0xff]   ;;  %v3860_v53 = vrot.slane %v9071_v39, 1  ;;  %v3391_v15 = vshll.u32 %v9071_v39, 16 }
 0x1e3   : > { %7833 = vmatprep.subr.bf16.mxu1 %v8216_v24 }
 0x1e4   : > { %7900 = vmatpush3.bf16.msra.mxu0 %v8235_v26  ;;  %v8230_v26 = vld [vmem:[%s9808_s4 + $0x1a8] sm:$0xff]   ;;  %v3861_v44 = vsel %vm2261_vm1, %v3858_v52, %v3860_v53 }
 0x1e5   : > { %7722 = vmatmul.mubr.bf16.gmra.mrb[108].mxu1 %v3346_v40  ;;  %7901 = vmatprep.subr.bf16.mxu0 %v8238_v30  ;;  %v3379_v40 = vshrl.u32 %v8214_v54, 16  ;;  %v8245_v54 = vld [vmem:[%s9808_s4 + $0x1b8] sm:$0xff]  }
 0x1e6   : > { %7725 = vmatprep.mubr.bf16.mxu1 %v3354_v47  ;;  %7834 = vmatpush3.bf16.msra.mxu1 %v8216_v24  ;;  %v3857_v24 = vsel %vm2261_vm1, %v3854_v32, %v3856_v25  ;;  %v3385_v47 = vrot.slane %v3383_v27, 1  ;;  %v9102_v27 = vld [vmem:[%s9808_s4 + $0x200] sm:$0xff]  }
 0x1e7   : > { %7790 = vmatmul.mubr.bf16.gmra.mrb[152].mxu0 %v3853_v49  ;;  %7835 = vmatprep.subr.bf16.mxu1 %v8221_v37 }
 0x1e8   : > { %7793 = vmatprep.mubr.bf16.mxu0 %v3855_v58  ;;  %7902 = vmatpush3.bf16.msra.mxu0 %v8238_v30  ;;  %v3377_v30 = vrot.slane %v3375_v1, 1  ;;  %v3387_v1 = vshrl.u32 %v9051_v11, 16 }
 0x1e9   : > { %v7527_v18 = vpop.f32.mrb[48].mxu0  ;;  %7903 = vmatprep.subr.bf16.mxu0 %v8240_v3 }
 0x1ea   : > { %v2065_v22 = vpop.f32.mrb[49].mxu0  ;;  %7836 = vmatpush3.bf16.msra.mxu1 %v8221_v37  ;;  %v3373_v37 = vor.u32 %v3371_v41, %v3369_v42  ;;  %v3381_v6 = vor.u32 %v3379_v40, %v3377_v30  ;;  %v3862_v18 = vrot.slane %v9074_v31, 1 }
 0x1eb   : > { %v7528_v43 = vpop.f32.mrb[50].mxu0  ;;  %7837 = vmatprep.subr.bf16.mxu1 %v8224_v60 }
 0x1ec   : > { %v2068_v7 = vpop.f32.mrb[51].mxu0  ;;  %7904 = vmatpush3.bf16.msra.mxu0 %v8240_v3  ;;  %v3386_v25 = vsel %vm1481_vm0, %v3381_v6, %v3385_v47 }
 0x1ed   : > { %7726 = vmatmul.mubr.bf16.gmra.mrb[112].mxu1 %v3362_v8  ;;  %7905 = vmatprep.subr.bf16.mxu0 %v8242_v10  ;;  %v3393_v8 = vrot.slane %v3391_v15, 1 }
 0x1ee   : > { %7729 = vmatprep.mubr.bf16.mxu1 %v3370_v51  ;;  %7838 = vmatpush3.bf16.msra.mxu1 %v8224_v60  ;;  %v9097_v51 = vld [vmem:[#allocation2 + $0x74] sm:$0xff]  }
 0x1ef   : > { %7794 = vmatmul.mubr.bf16.gmra.mrb[156].mxu0 %v3857_v24  ;;  %7839 = vmatprep.subr.bf16.mxu1 %v8230_v26  ;;  %v3389_v24 = vor.u32 %v3387_v1, %v3385_v47  ;;  %v3866_v47 = vrot.slane %v9097_v51, 1  ;;  %v3415_v15 = vshll.u32 %v9097_v51, 16 }
 0x1f0   : > { %7797 = vmatprep.mubr.bf16.mxu0 %v3859_v12  ;;  %v7463_v55 = vpop.f32.mrb[8].mxu1  ;;  %7906 = vmatpush3.bf16.msra.mxu0 %v8242_v10  ;;  %v3395_v12 = vshrl.u32 %v9071_v39, 16 }
 0x1f1   : > { %v1784_v32 = vpop.f32.mrb[9].mxu1  ;;  %v7531_v29 = vpop.f32.mrb[52].mxu0  ;;  %7907 = vmatprep.subr.bf16.mxu0 %v8246_v28  ;;  %v3394_v39 = vsel %vm1481_vm0, %v3389_v24, %v3393_v8 }
 0x1f2   : > { %v9079_v46 = vadd.f32 %v2065_v22, %v1784_v32  ;;  %v7464_v3 = vpop.f32.mrb[10].mxu1  ;;  %v2080_v49 = vpop.f32.mrb[53].mxu0  ;;  %7840 = vmatpush3.bf16.msra.mxu1 %v8230_v26  ;;  %v3378_v22 = vsel %vm1481_vm0, %v3373_v37, %v3377_v30  ;;  %v8219_v26 = vld [vmem:[#allocation2 + $0x6c] sm:$0xff]  }
 0x1f3   : > { %v9082_v58 = vadd.f32 %v7528_v43, %v7464_v3  ;;  %v1787_v63 = vpop.f32.mrb[11].mxu1  ;;  %v7532_v60 = vpop.f32.mrb[54].mxu0  ;;  %7841 = vmatprep.subr.bf16.mxu1 %v8236_v17  ;;  %v3399_v43 = vshll.u32 %v9074_v31, 16  ;;  %v3864_v32 = vrot.slane %v8219_v26, 1  ;;  %v3411_v24 = vshrl.u32 %v8219_v26, 16 }
 0x1f4   : > { %v9089_v42 = vadd.f32 %v2068_v7, %v1787_v63  ;;  %v2083_v10 = vpop.f32.mrb[55].mxu0  ;;  %7908 = vmatpush3.bf16.msra.mxu0 %v8246_v28  ;;  %v3863_v7 = vsel %vm2261_vm1, %v3860_v53, %v3862_v18  ;;  %v3397_v63 = vor.u32 %v3395_v12, %v3393_v8 }
 0x1f5   : > { %7730 = vmatmul.mubr.bf16.gmra.mrb[116].mxu1 %v3378_v22  ;;  %v3401_v30 = vrot.slane %v3399_v43, 1  ;;  %v8222_v10 = vld [vmem:[#allocation2 + $0x7c] sm:$0xff]   ;;  %v3867_v22 = vsel %vm2261_vm1, %v3864_v32, %v3866_v47  ;;  %v9119_v43 = vld [vmem:[#allocation2 + $0x84] sm:$0xff]  }
 0x1f6   : > { %7733 = vmatprep.mubr.bf16.mxu1 %v3386_v25  ;;  %7842 = vmatpush3.bf16.msra.mxu1 %v8236_v17 }
 0x1f7   : > { %7798 = vmatmul.mubr.bf16.gmra.mrb[160].mxu0 %v3861_v44  ;;  %7843 = vmatprep.subr.bf16.mxu1 %v8245_v54 }
 0x1f8   : > { %7801 = vmatprep.mubr.bf16.mxu0 %v3863_v7  ;;  %v7467_v28 = vpop.f32.mrb[12].mxu1 }
 0x1f9   : > { %v9104_v52 = vadd.f32 %v7531_v29, %v7467_v28  ;;  %v1799_v11 = vpop.f32.mrb[13].mxu1  ;;  %v7535_v41 = vpop.f32.mrb[56].mxu0  ;;  %v3407_v29 = vshll.u32 %v8219_v26, 16  ;;  %v3431_v26 = vshll.u32 %v9119_v43, 16 }
 0x1fa   : > { %v9107_v17 = vadd.f32 %v2080_v49, %v1799_v11  ;;  %v7468_v55 = vpop.f32.mrb[14].mxu1  ;;  %v2095_v37 = vpop.f32.mrb[57].mxu0  ;;  %7844 = vmatpush3.bf16.msra.mxu1 %v8245_v54  ;;  %v3402_v49 = vsel %vm1481_vm0, %v3397_v63, %v3401_v30  ;;  %v3403_v54 = vshrl.u32 %v9074_v31, 16  ;;  %v3417_v11 = vrot.slane %v3415_v15, 1  ;;  %v8225_v15 = vld [vmem:[#allocation2 + $0x8c] sm:$0xff]  }
 0x1fb   : > { %v9109_v40 = vadd.f32 %v7532_v60, %v7468_v55  ;;  %v1802_v3 = vpop.f32.mrb[15].mxu1  ;;  %v7536_v53 = vpop.f32.mrb[58].mxu0  ;;  %7957 = vmatprep.subr.bf16.mxu1 %v9102_v27  ;;  %v3865_v60 = vsel %vm2261_vm1, %v3862_v18, %v3864_v32  ;;  %v3409_v25 = vrot.slane %v3407_v29, 1  ;;  %v3868_v55 = vrot.slane %v8222_v10, 1 }
 0x1fc   : > { %v2097_v6 = vpop.f32.mrb[59].mxu0  ;;  %v3405_v1 = vor.u32 %v3403_v54, %v3401_v30  ;;  %v3870_v32 = vrot.slane %v9119_v43, 1  ;;  %v3423_v53 = vshll.u32 %v8222_v10, 16 }
 0x1fd   : > { %7734 = vmatmul.mubr.bf16.gmra.mrb[120].mxu1 %v3394_v39  ;;  %v3413_v3 = vor.u32 %v3411_v24, %v3409_v25  ;;  %v3869_v39 = vsel %vm2261_vm1, %v3866_v47, %v3868_v55 }
 0x1fe   : > { %7737 = vmatprep.mubr.bf16.mxu1 %v3402_v49  ;;  %v3410_v30 = vsel %vm1481_vm0, %v3405_v1, %v3409_v25  ;;  %v3419_v49 = vshrl.u32 %v9097_v51, 16  ;;  %v3425_v54 = vrot.slane %v3423_v53, 1 }
 0x1ff   : > { %7802 = vmatmul.mubr.bf16.gmra.mrb[164].mxu0 %v3865_v60  ;;  %v3871_v60 = vsel %vm2261_vm1, %v3868_v55, %v3870_v32 }
 0x200   : > { %7805 = vmatprep.mubr.bf16.mxu0 %v3867_v22  ;;  %v7471_v44 = vpop.f32.mrb[16].mxu1  ;;  %v3421_v25 = vor.u32 %v3419_v49, %v3417_v11 }
 0x201   : > { %v9121_v7 = vadd.f32 %v7535_v41, %v7471_v44  ;;  %v1814_v8 = vpop.f32.mrb[17].mxu1  ;;  %v7539_v28 = vpop.f32.mrb[60].mxu0  ;;  %v3418_v41 = vsel %vm1481_vm0, %v3413_v3, %v3417_v11 }
 0x202   : > { %v7472_v12 = vpop.f32.mrb[18].mxu1  ;;  %v2109_v18 = vpop.f32.mrb[61].mxu0  ;;  %v3427_v8 = vshrl.u32 %v8222_v10, 16  ;;  %v3433_v28 = vrot.slane %v3431_v26, 1  ;;  %v3426_v49 = vsel %vm1481_vm0, %v3421_v25, %v3425_v54  ;;  %v3435_v26 = vshrl.u32 %v9119_v43, 16 }
 0x203   : > { %v1816_v31 = vpop.f32.mrb[19].mxu1  ;;  %v7540_v37 = vpop.f32.mrb[62].mxu0 }
 0x204   : > { %v9124_v63 = vadd.f32 %v2097_v6, %v1816_v31  ;;  %v2112_v29 = vpop.f32.mrb[63].mxu0  ;;  %v9132_v6 = vld [vmem:[#allocation2 + $0x94] sm:$0xff]   ;;  %v3872_v31 = vrot.slane %v8225_v15, 1  ;;  %v3429_v55 = vor.u32 %v3427_v8, %v3425_v54  ;;  %v3437_v54 = vor.u32 %v3435_v26, %v3433_v28  ;;  %v8232_v26 = vld [vmem:[#allocation2 + $0xac] sm:$0xff]  }
 0x205   : > { %7738 = vmatmul.mubr.bf16.gmra.mrb[124].mxu1 %v3410_v30  ;;  %v3874_v53 = vrot.slane %v9132_v6, 1 }
 0x206   : > { %7741 = vmatprep.mubr.bf16.mxu1 %v3418_v41  ;;  %v3439_v41 = vshll.u32 %v8225_v15, 16  ;;  %v3434_v10 = vsel %vm1481_vm0, %v3429_v55, %v3433_v28  ;;  %v3443_v55 = vshrl.u32 %v8225_v15, 16 }
 0x207   : > { %7806 = vmatmul.mubr.bf16.gmra.mrb[168].mxu0 %v3869_v39 }
 0x208   : > { %7809 = vmatprep.mubr.bf16.mxu0 %v3871_v60  ;;  %v7475_v22 = vpop.f32.mrb[20].mxu1  ;;  %v8227_v60 = vld [vmem:[#allocation2 + $0x9c] sm:$0xff]  }
 0x209   : > { %v1828_v44 = vpop.f32.mrb[21].mxu1  ;;  %v7543_v1 = vpop.f32.mrb[64].mxu0  ;;  %v3875_v22 = vsel %vm2261_vm1, %v3872_v31, %v3874_v53  ;;  %v3455_v0 = vshll.u32 %v8227_v60, 16 }
 0x20a   : > { %v9134_v24 = vadd.f32 %v2109_v18, %v1828_v44  ;;  %v7476_v12 = vpop.f32.mrb[22].mxu1  ;;  %v2124_v47 = vpop.f32.mrb[65].mxu0  ;;  %v3447_v18 = vshll.u32 %v9132_v6, 16  ;;  %v3441_v44 = vrot.slane %v3439_v41, 1 }
 0x20b   : > { %v9136_v51 = vadd.f32 %v7540_v37, %v7476_v12  ;;  %v1831_v3 = vpop.f32.mrb[23].mxu1  ;;  %v7544_v30 = vpop.f32.mrb[66].mxu0  ;;  %v3873_v37 = vsel %vm2261_vm1, %v3870_v32, %v3872_v31 }
 0x20c   : > { %v9139_v39 = vadd.f32 %v2112_v29, %v1831_v3  ;;  %v2127_v11 = vpop.f32.mrb[67].mxu0  ;;  %v9147_v29 = vld [vmem:[#allocation2 + $0xa4] sm:$0xff]   ;;  %v3445_v19 = vor.u32 %v3443_v55, %v3441_v44  ;;  %v9162_v55 = vld [vmem:[#allocation2 + $0xb4] sm:$0xff]  }
 0x20d   : > { %7742 = vmatmul.mubr.bf16.gmra.mrb[128].mxu1 %v3426_v49  ;;  %v3449_v11 = vrot.slane %v3447_v18, 1 }
 0x20e   : > { %7745 = vmatprep.mubr.bf16.mxu1 %v3434_v10  ;;  %v3876_v10 = vrot.slane %v8227_v60, 1 }
 0x20f   : > { %7810 = vmatmul.mubr.bf16.gmra.mrb[172].mxu0 %v3873_v37  ;;  %v3450_v15 = vsel %vm1481_vm0, %v3445_v19, %v3449_v11 }
 0x210   : > { %7813 = vmatprep.mubr.bf16.mxu0 %v3875_v22  ;;  %v7479_v8 = vpop.f32.mrb[24].mxu1  ;;  %v3878_v22 = vrot.slane %v9147_v29, 1  ;;  %v3877_v18 = vsel %vm2261_vm1, %v3874_v53, %v3876_v10 }
 0x211   : > { %v9149_v25 = vadd.f32 %v7543_v1, %v7479_v8  ;;  %v1843_v12 = vpop.f32.mrb[25].mxu1  ;;  %v7547_v3 = vpop.f32.mrb[68].mxu0  ;;  %v3442_v1 = vsel %vm1481_vm0, %v3437_v54, %v3441_v44 }
 0x212   : > { %v9151_v49 = vadd.f32 %v2124_v47, %v1843_v12  ;;  %v7480_v32 = vpop.f32.mrb[26].mxu1  ;;  %v2139_v43 = vpop.f32.mrb[69].mxu0  ;;  %v3463_v47 = vshll.u32 %v9147_v29, 16  ;;  %v3879_v8 = vsel %vm2261_vm1, %v3876_v10, %v3878_v22  ;;  %v3457_v12 = vrot.slane %v3455_v0, 1 }
 0x213   : > { %v9153_v37 = vadd.f32 %v7544_v30, %v7480_v32  ;;  %v1846_v31 = vpop.f32.mrb[27].mxu1  ;;  %v7548_v41 = vpop.f32.mrb[70].mxu0  ;;  %v3451_v30 = vshrl.u32 %v9132_v6, 16  ;;  %v3882_v10 = vrot.slane %v9162_v55, 1  ;;  %v3471_v0 = vshll.u32 %v8232_v26, 16 }
 0x214   : > { %v2141_v28 = vpop.f32.mrb[71].mxu0  ;;  %v3459_v31 = vshrl.u32 %v8227_v60, 16  ;;  %v3465_v41 = vrot.slane %v3463_v47, 1  ;;  %v3479_v60 = vshll.u32 %v9162_v55, 16  ;;  %v8237_v47 = vld [vmem:[#allocation2 + $0xbc] sm:$0xff]  }
 0x215   : > { %7746 = vmatmul.mubr.bf16.gmra.mrb[132].mxu1 %v3442_v1  ;;  %v3453_v44 = vor.u32 %v3451_v30, %v3449_v11 }
 0x216   : > { %7749 = vmatprep.mubr.bf16.mxu1 %v3450_v15  ;;  %v3880_v15 = vrot.slane %v8232_v26, 1  ;;  %v3481_v50 = vrot.slane %v3479_v60, 1 }
 0x217   : > { %7814 = vmatmul.mubr.bf16.gmra.mrb[176].mxu0 %v3877_v18  ;;  %v3461_v18 = vor.u32 %v3459_v31, %v3457_v12  ;;  %v3458_v11 = vsel %vm1481_vm0, %v3453_v44, %v3457_v12  ;;  %v9175_v31 = vld [vmem:[#allocation2 + $0xc4] sm:$0xff]  }
 0x218   : > { %7817 = vmatprep.mubr.bf16.mxu0 %v3879_v8  ;;  %v7483_v32 = vpop.f32.mrb[28].mxu1 }
 0x219   : > { %v9164_v54 = vadd.f32 %v7547_v3, %v7483_v32  ;;  %v1858_v19 = vpop.f32.mrb[29].mxu1  ;;  %v7551_v43 = vpop.f32.mrb[72].mxu0  ;;  %v4701_v3 = vld [vmem:[#allocation2 + $0x18] sm:$0xf]  ;;  %v3466_v30 = vsel %vm1481_vm0, %v3461_v18, %v3465_v41  ;;  %v3881_v32 = vsel %vm2261_vm1, %v3878_v22, %v3880_v15 }
 0x21a   : > { %v7484_v1 = vpop.f32.mrb[30].mxu1  ;;  %v2153_v53 = vpop.f32.mrb[73].mxu0  ;;  %v3467_v19 = vshrl.u32 %v9147_v29, 16  ;;  %v3883_v43 = vsel %vm2261_vm1, %v3880_v15, %v3882_v10  ;;  %v6701_v12 = vcombine.low %v4701_v3, %v8937_v23  ;;  %v3886_v23 = vrot.slane %v9175_v31, 1 }
 0x21b   : > { %v1860_v6 = vpop.f32.mrb[31].mxu1  ;;  %v7552_v21 = vpop.f32.mrb[74].mxu0 }
 0x21c   : > { %v9167_v20 = vadd.f32 %v2141_v28, %v1860_v6  ;;  %v2156_v8 = vpop.f32.mrb[75].mxu0  ;;  %v3473_v28 = vrot.slane %v3471_v0, 1  ;;  %v3469_v1 = vor.u32 %v3467_v19, %v3465_v41  ;;  %v4893_v3 = vshll.u32 %v6701_v12, 16 }
 0x21d   : > { %7750 = vmatmul.mubr.bf16.gmra.mrb[136].mxu1 %v3458_v11  ;;  %v3475_v11 = vshrl.u32 %v8232_v26, 16 }
 0x21e   : > { %7753 = vmatprep.mubr.bf16.mxu1 %v3466_v30  ;;  %v3487_v30 = vshll.u32 %v8237_v47, 16  ;;  %v3474_v26 = vsel %vm1481_vm0, %v3469_v1, %v3473_v28 }
 0x21f   : > { %7818 = vmatmul.mubr.bf16.gmra.mrb[180].mxu0 %v3881_v32  ;;  %v3884_v32 = vrot.slane %v8237_v47, 1  ;;  %v3477_v13 = vor.u32 %v3475_v11, %v3473_v28 }
 0x220   : > { %7821 = vmatprep.mubr.bf16.mxu0 %v3883_v43  ;;  %v7487_v44 = vpop.f32.mrb[32].mxu1  ;;  %v3489_v60 = vrot.slane %v3487_v30, 1 }
 0x221   : > { %v1872_v6 = vpop.f32.mrb[33].mxu1  ;;  %v7555_v18 = vpop.f32.mrb[76].mxu0  ;;  %v3885_v19 = vsel %vm2261_vm1, %v3882_v10, %v3884_v32  ;;  %v3495_v44 = vshll.u32 %v9175_v31, 16  ;;  %v3887_v11 = vsel %vm2261_vm1, %v3884_v32, %v3886_v23 }
 0x222   : > { %v9178_v14 = vadd.f32 %v2153_v53, %v1872_v6  ;;  %v7488_v22 = vpop.f32.mrb[34].mxu1  ;;  %v2168_v29 = vpop.f32.mrb[77].mxu0  ;;  %v3482_v53 = vsel %vm1481_vm0, %v3477_v13, %v3481_v50  ;;  %v8241_v6 = vld [vmem:[#allocation2 + $0xcc] ss:$0 sps:$4 sm:$0x11]  }
 0x223   : > { %v9180_v16 = vadd.f32 %v7552_v21, %v7488_v22  ;;  %v1875_v15 = vpop.f32.mrb[35].mxu1  ;;  %v7556_v0 = vpop.f32.mrb[78].mxu0  ;;  %v3483_v21 = vshrl.u32 %v9162_v55, 16  ;;  %v4895_v22 = vrot.slane %v4893_v3, 1  ;;  %v3888_v57 = vrot.slane %v8241_v6, 1 }
 0x224   : > { %v9183_v43 = vadd.f32 %v2156_v8, %v1875_v15  ;;  %v2171_v41 = vpop.f32.mrb[79].mxu0  ;;  %v3491_v8 = vshrl.u32 %v8237_v47, 16  ;;  %v8311_v15 = vld [vmem:[#allocation2 + $0x20] sm:$0xff]  }
 0x225   : > { %7754 = vmatmul.mubr.bf16.gmra.mrb[140].mxu1 %v3474_v26  ;;  %v4898_v41 = vshll.u32 %v8311_v15, 16  ;;  %v3485_v1 = vor.u32 %v3483_v21, %v3481_v50  ;;  %v4906_v50 = vshll.u32 %v8312_v38, 16 }
 0x226   : > { %7757 = vmatprep.mubr.bf16.mxu1 %v3482_v53  ;;  %v3493_v10 = vor.u32 %v3491_v8, %v3489_v60  ;;  %v4891_v53 = vshrl.u32 %v6701_v12, 16  ;;  %v3499_v8 = vshrl.u32 %v9175_v31, 16  ;;  %v3503_v12 = vshll.u32 %v8241_v6, 16 }
 0x227   : > { %7822 = vmatmul.mubr.bf16.gmra.mrb[184].mxu0 %v3885_v19  ;;  %v3497_v19 = vrot.slane %v3495_v44, 1  ;;  %v3490_v21 = vsel %vm1481_vm0, %v3485_v1, %v3489_v60  ;;  %v8313_v44 = vld [vmem:[#allocation2 + $0x30] sm:$0xff]  }
 0x228   : > { %7825 = vmatprep.mubr.bf16.mxu0 %v3887_v11  ;;  %v7491_v28 = vpop.f32.mrb[36].mxu1  ;;  %v4896_v56 = vor.u32 %v4895_v22, %v4891_v53  ;;  %v4900_v11 = vrot.slane %v4898_v41, 1  ;;  %v4914_v22 = vshll.u32 %v8313_v44, 16  ;;  %v4902_v41 = vshrl.u32 %v8311_v15, 16 }
 0x229   : > { %v9191_v13 = vadd.f32 %v7555_v18, %v7491_v28  ;;  %v1887_v30 = vpop.f32.mrb[37].mxu1  ;;  %v7559_v26 = vpop.f32.mrb[80].mxu0  ;;  %v3505_v60 = vrot.slane %v3503_v12, 1  ;;  %v4910_v53 = vshrl.u32 %v8312_v38, 16 }
 0x22a   : > { %v9193_v55 = vadd.f32 %v2168_v29, %v1887_v30  ;;  %v7492_v9 = vpop.f32.mrb[38].mxu1  ;;  %v2183_v45 = vpop.f32.mrb[81].mxu0  ;;  %v3498_v29 = vsel %vm1481_vm0, %v3493_v10, %v3497_v19  ;;  %v3501_v30 = vor.u32 %v3499_v8, %v3497_v19  ;;  %v8247_v8 = vld [vmem:[#allocation2 + $0x18] sm:$0xff]  }
 0x22b   : > { %v9195_v32 = vadd.f32 %v7556_v0, %v7492_v9  ;;  %v1890_v47 = vpop.f32.mrb[39].mxu1  ;;  %v7560_v3 = vpop.f32.mrb[82].mxu0  ;;  %v3889_v45 = vsel %vm2261_vm1, %v3886_v23, %v3888_v57  ;;  %v4901_v9 = vsel %vm1481_vm0, %v4896_v56, %v4900_v11  ;;  %v4908_v0 = vrot.slane %v4906_v50, 1  ;;  %v8314_v56 = vld [vmem:[#allocation2 + $0x38] sm:$0xff]  }
 0x22c   : > { %v2185_v18 = vpop.f32.mrb[83].mxu0  ;;  %v4922_v50 = vshll.u32 %v8314_v56, 16  ;;  %v3506_v19 = vsel %vm1481_vm0, %v3501_v30, %v3505_v60 }
 0x22d   : > { %7758 = vmatmul.mubr.bf16.gmra.mrb[144].mxu1 %v3490_v21  ;;  %v4912_v23 = vor.u32 %v4910_v53, %v4908_v0  ;;  %v4916_v21 = vrot.slane %v4914_v22, 1 }
 0x22e   : > { %7761 = vmatprep.mubr.bf16.mxu1 %v3498_v29  ;;  %v4904_v29 = vor.u32 %v4902_v41, %v4900_v11  ;;  %v4924_v12 = vrot.slane %v4922_v50, 1  ;;  %v4926_v41 = vshrl.u32 %v8314_v56, 16  ;;  %v8316_v50 = vld [vmem:[#allocation2 + $0x48] sm:$0xff]  }
 0x22f   : > { %7826 = vmatmul.mubr.bf16.gmra.mrb[188].mxu0 %v3889_v45  ;;  %v4917_v38 = vsel %vm1481_vm0, %v4912_v23, %v4916_v21 }
 0x230   : > { %7909 = vmatprep.mubr.bf16.mxu0 %v4901_v9  ;;  %v7495_v28 = vpop.f32.mrb[40].mxu1  ;;  %v8315_v9 = vld [vmem:[#allocation2 + $0x40] sm:$0xff]  }
 0x231   : > { %v9202_v1 = vadd.f32 %v7559_v26, %v7495_v28  ;;  %v1902_v31 = vpop.f32.mrb[41].mxu1  ;;  %v7563_v6 = vpop.f32.mrb[84].mxu0  ;;  %v4909_v26 = vsel %vm1481_vm0, %v4904_v29, %v4908_v0  ;;  %v4930_v28 = vshll.u32 %v8315_v9, 16  ;;  %v4928_v29 = vor.u32 %v4926_v41, %v4924_v12 }
 0x232   : > { %v7496_v10 = vpop.f32.mrb[42].mxu1  ;;  %v2197_v47 = vpop.f32.mrb[85].mxu0  ;;  %v4918_v31 = vshrl.u32 %v8313_v44, 16  ;;  %v8259_v44 = vld [vmem:[%s9808_s4 + $0x208] sm:$0xff]  }
 0x233   : > { %v1904_v3 = vpop.f32.mrb[43].mxu1  ;;  %v7564_v57 = vpop.f32.mrb[86].mxu0  ;;  %v4932_v23 = vrot.slane %v4930_v28, 1 }
 0x234   : > { %v9204_v45 = vadd.f32 %v2185_v18, %v1904_v3  ;;  %v2200_v15 = vpop.f32.mrb[87].mxu0  ;;  %v8251_v3 = vld [vmem:[#allocation2 + $0x20] sm:$0xff]  }
 0x235   : > { %7762 = vmatmul.mubr.bf16.gmra.mrb[148].mxu1 %v3506_v19  ;;  %v4938_v19 = vshll.u32 %v8316_v50, 16 }
 0x236   : > { %7845 = vmatprep.mubr.bf16.mxu1 %v8247_v8 }
 0x237   : > { %7910 = vmatmul.mubr.bf16.vlgmr.msra.gmra.mrb[192].mxu0 %v4909_v26  ;;  %v4920_v26 = vor.u32 %v4918_v31, %v4916_v21  ;;  %v4940_v28 = vrot.slane %v4938_v19, 1  ;;  %v4934_v21 = vshrl.u32 %v8315_v9, 16  ;;  %v8273_v9 = vld [vmem:[%s9808_s4 + $0x218] sm:$0xff]  }
 0x238   : > { %7913 = vmatprep.mubr.bf16.mxu0 %v4917_v38  ;;  %v7499_v22 = vpop.f32.mrb[44].mxu1  ;;  %v4933_v38 = vsel %vm1481_vm0, %v4928_v29, %v4932_v23 }
 0x239   : > { %v1916_v11 = vpop.f32.mrb[45].mxu1  ;;  %v7567_v18 = vpop.f32.mrb[88].mxu0  ;;  %v8317_v22 = vld [vmem:[#allocation2 + $0x50] sm:$0xff]  }
 0x23a   : > { %v9209_v6 = vadd.f32 %v2197_v47, %v1916_v11  ;;  %v7500_v30 = vpop.f32.mrb[46].mxu1  ;;  %v2212_v60 = vpop.f32.mrb[89].mxu0  ;;  %v8252_v47 = vld [vmem:[#allocation2 + $0x28] sm:$0xff]   ;;  %v4946_v11 = vshll.u32 %v8317_v22, 16 }
 0x23b   : > { %v9211_v53 = vadd.f32 %v7564_v57, %v7500_v30  ;;  %v1919_v10 = vpop.f32.mrb[47].mxu1  ;;  %v7568_v0 = vpop.f32.mrb[90].mxu0  ;;  %v4925_v57 = vsel %vm1481_vm0, %v4920_v26, %v4924_v12  ;;  %v8255_v26 = vld [vmem:[#allocation2 + $0x30] sm:$0xff]  }
 0x23c   : > { %v9216_v8 = vadd.f32 %v2200_v15, %v1919_v10  ;;  %v2215_v56 = vpop.f32.mrb[91].mxu0  ;;  %v8264_v15 = vld [vmem:[%s9808_s4 + $0x210] sm:$0xff]   ;;  %v4942_v10 = vshrl.u32 %v8316_v50, 16  ;;  %v4948_v36 = vrot.slane %v4946_v11, 1  ;;  %v4936_v50 = vor.u32 %v4934_v21, %v4932_v23  ;;  %v8319_v11 = vld [vmem:[#allocation2 + $0x60] sm:$0xff]  }
 0x23d   : > { %7846 = vmatmul.mubr.bf16.vlgmr.msra.gmra.mrb[152].mxu1 %v8251_v3 }
 0x23e   : > { %7958 = vmatpush3.bf16.msra.mxu1 %v9102_v27  ;;  %7849 = vmatprep.mubr.bf16.mxu1 %v8252_v47 }
 0x23f   : > { %7914 = vmatmul.mubr.bf16.gmra.mrb[196].mxu0 %v4925_v57  ;;  %7959 = vmatprep.subr.bf16.mxu1 %v8259_v44  ;;  %v4944_v57 = vor.u32 %v4942_v10, %v4940_v28  ;;  %v8278_v10 = vld [vmem:[%s9808_s4 + $0x220] sm:$0xff]  }
 0x240   : > { %7917 = vmatprep.mubr.bf16.mxu0 %v4933_v38  ;;  %v7503_v41 = vpop.f32.mrb[48].mxu1  ;;  %v8318_v38 = vld [vmem:[#allocation2 + $0x58] sm:$0xff]  }
 0x241   : > { %v9224_v31 = vadd.f32 %v7567_v18, %v7503_v41  ;;  %v1931_v27 = vpop.f32.mrb[49].mxu1  ;;  %v7571_v30 = vpop.f32.mrb[92].mxu0  ;;  %v4954_v34 = vshll.u32 %v8318_v38, 16 }
 0x242   : > { %v9226_v12 = vadd.f32 %v2212_v60, %v1931_v27  ;;  %v7504_v3 = vpop.f32.mrb[50].mxu1  ;;  %v2227_v29 = vpop.f32.mrb[93].mxu0  ;;  %7960 = vmatpush3.bf16.msra.mxu1 %v8259_v44  ;;  %v8256_v60 = vld [vmem:[#allocation2 + $0x38] sm:$0xff]   ;;  %v4949_v44 = vsel %vm1481_vm0, %v4944_v57, %v4948_v36  ;;  %v4962_v27 = vshll.u32 %v8319_v11, 16  ;;  %v8260_v57 = vld [vmem:[#allocation2 + $0x40] sm:$0xff]  }
 0x243   : > { %v9228_v19 = vadd.f32 %v7568_v0, %v7504_v3  ;;  %v1934_v56 = vpop.f32.mrb[51].mxu1  ;;  %v7572_v47 = vpop.f32.mrb[94].mxu0  ;;  %7961 = vmatprep.subr.bf16.mxu1 %v8264_v15  ;;  %v4941_v0 = vsel %vm1481_vm0, %v4936_v50, %v4940_v28  ;;  %v4956_v41 = vrot.slane %v4954_v34, 1  ;;  %v4950_v29 = vshrl.u32 %v8317_v22, 16  ;;  %v8287_v22 = vld [vmem:[%s9808_s4 + $0x228] sm:$0xff]  }
 0x244   : > { %v2229_v18 = vpop.f32.mrb[95].mxu0  ;;  %v4958_v28 = vshrl.u32 %v8318_v38, 16  ;;  %v4964_v50 = vrot.slane %v4962_v27, 1 }
 0x245   : > { %7850 = vmatmul.mubr.bf16.gmra.mrb[156].mxu1 %v8255_v26  ;;  %v4952_v38 = vor.u32 %v4950_v29, %v4948_v36  ;;  %v4966_v29 = vshrl.u32 %v8319_v11, 16  ;;  %v8299_v11 = vld [vmem:[%s9808_s4 + $0x238] sm:$0xff]  }
 0x246   : > { %7853 = vmatprep.mubr.bf16.mxu1 %v8256_v60  ;;  %7962 = vmatpush3.bf16.msra.mxu1 %v8264_v15  ;;  %v4960_v60 = vor.u32 %v4958_v28, %v4956_v41 }
 0x247   : > { %7918 = vmatmul.mubr.bf16.gmra.mrb[200].mxu0 %v4941_v0  ;;  %7963 = vmatprep.subr.bf16.mxu1 %v8273_v9  ;;  %v8320_v0 = vld [vmem:[#allocation2 + $0x68] sm:$0xff]  }
 0x248   : > { %7921 = vmatprep.mubr.bf16.mxu0 %v4949_v44  ;;  %v7507_v3 = vpop.f32.mrb[52].mxu1  ;;  %v4970_v48 = vshll.u32 %v8320_v0, 16  ;;  %v4965_v27 = vsel %vm1481_vm0, %v4960_v60, %v4964_v50 }
 0x249   : > { %v9238_v23 = vadd.f32 %v7571_v30, %v7507_v3  ;;  %v1946_v21 = vpop.f32.mrb[53].mxu1  ;;  %v7655_v56 = vpop.f32.mrb[96].mxu0  ;;  %v8261_v3 = vld [vmem:[#allocation2 + $0x48] sm:$0xff]  }
 0x24a   : > { %v7508_v15 = vpop.f32.mrb[54].mxu1  ;;  %v2915_v47 = vpop.f32.mrb[97].mxu0  ;;  %7964 = vmatpush3.bf16.msra.mxu1 %v8273_v9  ;;  %v4957_v9 = vsel %vm1481_vm0, %v4952_v38, %v4956_v41  ;;  %v4972_v21 = vrot.slane %v4970_v48, 1  ;;  %v9247_v56 = vld [vmem:[#allocation2 + $0x70] sm:$0xff]  }
 0x24b   : > { %v1948_v26 = vpop.f32.mrb[55].mxu1  ;;  %v7656_v34 = vpop.f32.mrb[98].mxu0  ;;  %7965 = vmatprep.subr.bf16.mxu1 %v8278_v10  ;;  %v4978_v28 = vshll.u32 %v9247_v56, 16  ;;  %v8265_v38 = vld [vmem:[#allocation2 + $0x50] sm:$0xff]  }
 0x24c   : > { %v9243_v30 = vadd.f32 %v2229_v18, %v1948_v26  ;;  %v2918_v44 = vpop.f32.mrb[99].mxu0  ;;  %v8292_v18 = vld [vmem:[%s9808_s4 + $0x230] sm:$0xff]   ;;  %v4974_v26 = vshrl.u32 %v8320_v0, 16 }
 0x24d   : > { %7854 = vmatmul.mubr.bf16.gmra.mrb[160].mxu1 %v8260_v57  ;;  %v4980_v61 = vrot.slane %v4978_v28, 1 }
 0x24e   : > { %9833 = vst [vmem:[#allocation21_spill] sm:$0xff] %v9243_v30  ;;  %7857 = vmatprep.mubr.bf16.mxu1 %v8261_v3  ;;  %7966 = vmatpush3.bf16.msra.mxu1 %v8278_v10 }
 0x24f   : > { %7922 = vmatmul.mubr.bf16.gmra.mrb[204].mxu0 %v4957_v9  ;;  %7967 = vmatprep.subr.bf16.mxu1 %v8287_v22  ;;  %v4976_v9 = vor.u32 %v4974_v26, %v4972_v21  ;;  %v8323_v26 = vld [vmem:[#allocation2 + $0x80] sm:$0xff]  }
 0x250   : > { %7925 = vmatprep.mubr.bf16.mxu0 %v4965_v27  ;;  %v7591_v36 = vpop.f32.mrb[56].mxu1  ;;  %v8266_v27 = vld [vmem:[#allocation2 + $0x58] sm:$0xff]  }
 0x251   : > { %v2417_v15 = vpop.f32.mrb[57].mxu1  ;;  %v4968_v36 = vor.u32 %v4966_v29, %v4964_v50  ;;  %v4982_v50 = vshrl.u32 %v9247_v56, 16 }
 0x252   : > { %v2592_v41 = vadd.f32 %v2417_v15, %v9079_v46  ;;  %v7659_v10 = vpop.f32.mrb[100].mxu0  ;;  %v7592_v57 = vpop.f32.mrb[58].mxu1  ;;  %7968 = vmatpush3.bf16.msra.mxu1 %v8287_v22 }
 0x253   : > { %v2594_v48 = vadd.f32 %v7592_v57, %v9082_v58  ;;  %v2930_v60 = vpop.f32.mrb[101].mxu0  ;;  %v2420_v3 = vpop.f32.mrb[59].mxu1  ;;  %7969 = vmatprep.subr.bf16.mxu1 %v8292_v18  ;;  %v4973_v28 = vsel %vm1481_vm0, %v4968_v36, %v4972_v21  ;;  %v4994_v57 = vshll.u32 %v8323_v26, 16  ;;  %v8324_v36 = vld [vmem:[#allocation2 + $0x88] sm:$0xff]  }
 0x254   : > { %v2593_v0 = vadd.f32 %v2420_v3, %v9089_v42  ;;  %v7660_v46 = vpop.f32.mrb[102].mxu0  ;;  %v9259_v22 = vadd.f32 %v2915_v47, %v2592_v41  ;;  %v4981_v42 = vsel %vm1481_vm0, %v4976_v9, %v4980_v61  ;;  %v4988_v3 = vrot.slane %v4986_v5, 1  ;;  %v8269_v5 = vld [vmem:[#allocation2 + $0x60] sm:$0xff]  }
 0x255   : > { %v2933_v58 = vpop.f32.mrb[103].mxu0  ;;  %7858 = vmatmul.mubr.bf16.gmra.mrb[164].mxu1 %v8265_v38  ;;  %v9261_v15 = vadd.f32 %v7656_v34, %v2594_v48  ;;  %v4990_v41 = vshrl.u32 %v8322_v33, 16 }
 0x256   : > { %7861 = vmatprep.mubr.bf16.mxu1 %v8266_v27  ;;  %7970 = vmatpush3.bf16.msra.mxu1 %v8292_v18  ;;  %v9264_v30 = vadd.f32 %v2918_v44, %v2593_v0  ;;  %v4996_v18 = vrot.slane %v4994_v57, 1  ;;  %v5002_v58 = vshll.u32 %v8324_v36, 16 }
 0x257   : > { %7926 = vmatmul.mubr.bf16.gmra.mrb[208].mxu0 %v4973_v28  ;;  %7971 = vmatprep.subr.bf16.mxu1 %v8299_v11  ;;  %v4992_v27 = vor.u32 %v4990_v41, %v4988_v3 }
 0x258   : > { %7929 = vmatprep.mubr.bf16.mxu0 %v4981_v42  ;;  %v7595_v47 = vpop.f32.mrb[60].mxu1  ;;  %v4984_v42 = vor.u32 %v4982_v50, %v4980_v61  ;;  %v5004_v57 = vrot.slane %v5002_v58, 1  ;;  %v5006_v50 = vshrl.u32 %v8324_v36, 16 }
 0x259   : > { %v2596_v34 = vadd.f32 %v7595_v47, %v9104_v52  ;;  %v2432_v29 = vpop.f32.mrb[61].mxu1  ;;  %v8270_v52 = vld [vmem:[#allocation2 + $0x68] sm:$0xff]  }
 0x25a   : > { %v2595_v21 = vadd.f32 %v2432_v29, %v9107_v17  ;;  %v7663_v48 = vpop.f32.mrb[104].mxu0  ;;  %v7596_v38 = vpop.f32.mrb[62].mxu1  ;;  %7972 = vmatpush3.bf16.msra.mxu1 %v8299_v11  ;;  %v4997_v11 = vsel %vm1481_vm0, %v4992_v27, %v4996_v18  ;;  %v8325_v29 = vld [vmem:[#allocation2 + $0x90] sm:$0xff]  }
 0x25b   : > { %v2597_v44 = vadd.f32 %v7596_v38, %v9109_v40  ;;  %v2945_v0 = vpop.f32.mrb[105].mxu0  ;;  %v2435_v9 = vpop.f32.mrb[63].mxu1  ;;  %v9271_v28 = vadd.f32 %v7659_v10, %v2596_v34  ;;  %v4989_v40 = vsel %vm1481_vm0, %v4984_v42, %v4988_v3  ;;  %v5010_v41 = vshll.u32 %v8325_v29, 16  ;;  %v8275_v42 = vld [vmem:[#allocation2 + $0x78] sm:$0xff]  }
 0x25c   : > { %v7664_v56 = vpop.f32.mrb[106].mxu0  ;;  %v9273_v33 = vadd.f32 %v2930_v60, %v2595_v21  ;;  %v4998_v34 = vshrl.u32 %v8323_v26, 16  ;;  %v8274_v0 = vld [vmem:[#allocation2 + $0x70] sm:$0xff]   ;;  %v5008_v9 = vor.u32 %v5006_v50, %v5004_v57 }
 0x25d   : > { %v2947_v17 = vpop.f32.mrb[107].mxu0  ;;  %7862 = vmatmul.mubr.bf16.gmra.mrb[168].mxu1 %v8269_v5  ;;  %v9275_v47 = vadd.f32 %v7660_v46, %v2597_v44  ;;  %v5012_v3 = vrot.slane %v5010_v41, 1  ;;  %v8326_v5 = vld [vmem:[#allocation2 + $0x98] sm:$0xff]  }
 0x25e   : > { %7865 = vmatprep.mubr.bf16.mxu1 %v8270_v52  ;;  %v5018_v56 = vshll.u32 %v8326_v5, 16  ;;  %v5000_v26 = vor.u32 %v4998_v34, %v4996_v18  ;;  %v5022_v50 = vshrl.u32 %v8326_v5, 16 }
 0x25f   : > { %7930 = vmatmul.mubr.bf16.gmra.mrb[212].mxu0 %v4989_v40 }
 0x260   : > { %7933 = vmatprep.mubr.bf16.mxu0 %v4997_v11  ;;  %v7599_v10 = vpop.f32.mrb[64].mxu1  ;;  %v5013_v11 = vsel %vm1481_vm0, %v5008_v9, %v5012_v3  ;;  %v5020_v41 = vrot.slane %v5018_v56, 1  ;;  %v8328_v9 = vld [vmem:[#allocation2 + $0xa8] sm:$0xff]  }
 0x261   : > { %v2599_v61 = vadd.f32 %v7599_v10, %v9121_v7  ;;  %v2447_v60 = vpop.f32.mrb[65].mxu1  ;;  %v5005_v7 = vsel %vm1481_vm0, %v5000_v26, %v5004_v57  ;;  %v8327_v10 = vld [vmem:[#allocation2 + $0xa0] sm:$0xff]   ;;  %v5034_v56 = vshll.u32 %v8328_v9, 16 }
 0x262   : > { %v7667_v21 = vpop.f32.mrb[108].mxu0  ;;  %v7600_v38 = vpop.f32.mrb[66].mxu1  ;;  %v5026_v60 = vshll.u32 %v8327_v10, 16 }
 0x263   : > { %v2959_v46 = vpop.f32.mrb[109].mxu0  ;;  %v2449_v44 = vpop.f32.mrb[67].mxu1  ;;  %v9280_v27 = vadd.f32 %v7663_v48, %v2599_v61  ;;  %v5014_v61 = vshrl.u32 %v8325_v29, 16 }
 0x264   : > { %v2598_v58 = vadd.f32 %v2449_v44, %v9124_v63  ;;  %v7668_v52 = vpop.f32.mrb[110].mxu0  ;;  %v8279_v44 = vld [vmem:[#allocation2 + $0x80] sm:$0xff]  }
 0x265   : > { %v2962_v40 = vpop.f32.mrb[111].mxu0  ;;  %7866 = vmatmul.mubr.bf16.gmra.mrb[172].mxu1 %v8274_v0  ;;  %v5024_v0 = vor.u32 %v5022_v50, %v5020_v41  ;;  %v5016_v29 = vor.u32 %v5014_v61, %v5012_v3  ;;  %v5030_v3 = vshrl.u32 %v8327_v10, 16 }
 0x266   : > { %7869 = vmatprep.mubr.bf16.mxu1 %v8275_v42  ;;  %v9284_v36 = vadd.f32 %v2947_v17, %v2598_v58  ;;  %v5028_v58 = vrot.slane %v5026_v60, 1 }
 0x267   : > { %7934 = vmatmul.mubr.bf16.gmra.mrb[216].mxu0 %v5005_v7  ;;  %v8280_v7 = vld [vmem:[#allocation2 + $0x88] sm:$0xff]  }
 0x268   : > { %7937 = vmatprep.mubr.bf16.mxu0 %v5013_v11  ;;  %v7603_v48 = vpop.f32.mrb[68].mxu1  ;;  %v5029_v60 = vsel %vm1481_vm0, %v5024_v0, %v5028_v58  ;;  %v8330_v0 = vld [vmem:[#allocation2 + $0xb8] sm:$0xff]  }
 0x269   : > { %v2461_v63 = vpop.f32.mrb[69].mxu1  ;;  %v8329_v48 = vld [vmem:[#allocation2 + $0xb0] sm:$0xff]  }
 0x26a   : > { %v2600_v18 = vadd.f32 %v2461_v63, %v9134_v24  ;;  %v7671_v34 = vpop.f32.mrb[112].mxu0  ;;  %v7604_v21 = vpop.f32.mrb[70].mxu1  ;;  %v5042_v63 = vshll.u32 %v8329_v48, 16 }
 0x26b   : > { %v2602_v38 = vadd.f32 %v7604_v21, %v9136_v51  ;;  %v2974_v57 = vpop.f32.mrb[113].mxu0  ;;  %v2464_v17 = vpop.f32.mrb[71].mxu1  ;;  %v5021_v51 = vsel %vm1481_vm0, %v5016_v29, %v5020_v41 }
 0x26c   : > { %v2601_v42 = vadd.f32 %v2464_v17, %v9139_v39  ;;  %v7672_v26 = vpop.f32.mrb[114].mxu0  ;;  %v9290_v11 = vadd.f32 %v2959_v46, %v2600_v18  ;;  %v5036_v39 = vrot.slane %v5034_v56, 1  ;;  %v5038_v18 = vshrl.u32 %v8328_v9, 16 }
 0x26d   : > { %v2977_v5 = vpop.f32.mrb[115].mxu0  ;;  %7870 = vmatmul.mubr.bf16.gmra.mrb[176].mxu1 %v8279_v44  ;;  %v9292_v24 = vadd.f32 %v7668_v52, %v2602_v38  ;;  %v5044_v41 = vrot.slane %v5042_v63, 1  ;;  %v5050_v56 = vshll.u32 %v8330_v0, 16 }
 0x26e   : > { %7873 = vmatprep.mubr.bf16.mxu1 %v8280_v7  ;;  %v9295_v50 = vadd.f32 %v2962_v40, %v2601_v42  ;;  %v8283_v7 = vld [vmem:[#allocation2 + $0x90] sm:$0xff]   ;;  %v5040_v29 = vor.u32 %v5038_v18, %v5036_v39 }
 0x26f   : > { %7938 = vmatmul.mubr.bf16.gmra.mrb[220].mxu0 %v5021_v51  ;;  %v8284_v51 = vld [vmem:[#allocation2 + $0x98] sm:$0xff]  }
 0x270   : > { %7941 = vmatprep.mubr.bf16.mxu0 %v5029_v60  ;;  %v7607_v21 = vpop.f32.mrb[72].mxu1  ;;  %v5045_v63 = vsel %vm1481_vm0, %v5040_v29, %v5044_v41  ;;  %v9310_v29 = vld [vmem:[#allocation2 + $0xd0] sm:$0xff]  }
 0x271   : > { %v2604_v46 = vadd.f32 %v7607_v21, %v9149_v25  ;;  %v2476_v61 = vpop.f32.mrb[73].mxu1  ;;  %v5032_v25 = vor.u32 %v5030_v3, %v5028_v58  ;;  %v5052_v21 = vrot.slane %v5050_v56, 1  ;;  %v5054_v3 = vshrl.u32 %v8330_v0, 16 }
 0x272   : > { %v2603_v52 = vadd.f32 %v2476_v61, %v9151_v49  ;;  %v7675_v38 = vpop.f32.mrb[116].mxu0  ;;  %v7608_v17 = vpop.f32.mrb[74].mxu1  ;;  %v8331_v61 = vld [vmem:[#allocation2 + $0xc0] sm:$0xff]  }
 0x273   : > { %v2605_v44 = vadd.f32 %v7608_v17, %v9153_v37  ;;  %v2989_v40 = vpop.f32.mrb[117].mxu0  ;;  %v2479_v42 = vpop.f32.mrb[75].mxu1  ;;  %v9301_v5 = vadd.f32 %v7671_v34, %v2604_v46  ;;  %v5037_v37 = vsel %vm1481_vm0, %v5032_v25, %v5036_v39  ;;  %v5058_v18 = vshll.u32 %v8331_v61, 16  ;;  %v8289_v25 = vld [vmem:[#allocation2 + $0xa8] sm:$0xff]  }
 0x274   : > { %v7676_v10 = vpop.f32.mrb[118].mxu0  ;;  %v9303_v60 = vadd.f32 %v2974_v57, %v2603_v52  ;;  %v5046_v46 = vshrl.u32 %v8329_v48, 16  ;;  %v8288_v40 = vld [vmem:[#allocation2 + $0xa0] sm:$0xff]   ;;  %v5056_v42 = vor.u32 %v5054_v3, %v5052_v21 }
 0x275   : > { %v2991_v9 = vpop.f32.mrb[119].mxu0  ;;  %7874 = vmatmul.mubr.bf16.gmra.mrb[180].mxu1 %v8283_v7  ;;  %v9305_v49 = vadd.f32 %v7672_v26, %v2605_v44  ;;  %v5060_v39 = vrot.slane %v5058_v18, 1  ;;  %v8332_v7 = vld [vmem:[#allocation2 + $0xc8] sm:$0xff]  }
 0x276   : > { %7877 = vmatprep.mubr.bf16.mxu1 %v8284_v51  ;;  %v5066_v10 = vshll.u32 %v8332_v7, 16  ;;  %v5070_v3 = vshrl.u32 %v8332_v7, 16 }
 0x277   : > { %7942 = vmatmul.mubr.bf16.gmra.mrb[224].mxu0 %v5037_v37  ;;  %v5061_v18 = vsel %vm1481_vm0, %v5056_v42, %v5060_v39 }
 0x278   : > { %7945 = vmatprep.mubr.bf16.mxu0 %v5045_v63  ;;  %v7611_v34 = vpop.f32.mrb[76].mxu1  ;;  %v5062_v63 = vshrl.u32 %v8331_v61, 16 }
 0x279   : > { %v2607_v58 = vadd.f32 %v7611_v34, %v9164_v54  ;;  %v2491_v57 = vpop.f32.mrb[77].mxu1  ;;  %v5048_v54 = vor.u32 %v5046_v46, %v5044_v41 }
 0x27a   : > { %v7679_v52 = vpop.f32.mrb[120].mxu0  ;;  %v7612_v17 = vpop.f32.mrb[78].mxu1  ;;  %v5068_v57 = vrot.slane %v5066_v10, 1 }
 0x27b   : > { %v3003_v26 = vpop.f32.mrb[121].mxu0  ;;  %v2493_v44 = vpop.f32.mrb[79].mxu1  ;;  %v9312_v56 = vadd.f32 %v7675_v38, %v2607_v58  ;;  %v5053_v0 = vsel %vm1481_vm0, %v5048_v54, %v5052_v21  ;;  %v5074_v38 = vshll.u32 %v9310_v29, 16  ;;  %v9320_v58 = vld [vmem:[#allocation2 + $0xd8] ss:$0 sps:$4 sm:$0x11]   ;;  %v5064_v21 = vor.u32 %v5062_v63, %v5060_v39 }
 0x27c   : > { %v2606_v51 = vadd.f32 %v2493_v44, %v9167_v20  ;;  %v7680_v48 = vpop.f32.mrb[122].mxu0  ;;  %v5072_v42 = vor.u32 %v5070_v3, %v5068_v57  ;;  %v5078_v54 = vshrl.u32 %v9310_v29, 16 }
 0x27d   : > { %v3006_v37 = vpop.f32.mrb[123].mxu0  ;;  %7878 = vmatmul.mubr.bf16.gmra.mrb[184].mxu1 %v8288_v40  ;;  %v8293_v40 = vld [vmem:[#allocation2 + $0xb0] sm:$0xff]   ;;  %v5076_v10 = vrot.slane %v5074_v38, 1 }
 0x27e   : > { %7881 = vmatprep.mubr.bf16.mxu1 %v8289_v25  ;;  %v9316_v34 = vadd.f32 %v2991_v9, %v2606_v51  ;;  %v8294_v25 = vld [vmem:[#allocation2 + $0xb8] sm:$0xff]  }
 0x27f   : > { %7946 = vmatmul.mubr.bf16.gmra.mrb[228].mxu0 %v5053_v0  ;;  %v5082_v0 = vshll.u32 %v9320_v58, 16  ;;  %v5080_v38 = vor.u32 %v5078_v54, %v5076_v10 }
 0x280   : > { %7949 = vmatprep.mubr.bf16.mxu0 %v5061_v18  ;;  %v7615_v20 = vpop.f32.mrb[80].mxu1 }
 0x281   : > { %v2505_v41 = vpop.f32.mrb[81].mxu1  ;;  %v5084_v20 = vrot.slane %v5082_v0, 1  ;;  %v8300_v0 = vld [vmem:[#allocation2 + $0xd0] sm:$0xff]  }
 0x282   : > { %v2608_v46 = vadd.f32 %v2505_v41, %v9178_v14  ;;  %v7683_v52 = vpop.f32.mrb[124].mxu0  ;;  %v7616_v17 = vpop.f32.mrb[82].mxu1 }
 0x283   : > { %v2610_v9 = vadd.f32 %v7616_v17, %v9180_v16  ;;  %v3018_v61 = vpop.f32.mrb[125].mxu0  ;;  %v2508_v44 = vpop.f32.mrb[83].mxu1  ;;  %v5069_v16 = vsel %vm1481_vm0, %v5064_v21, %v5068_v57 }
 0x284   : > { %v2609_v7 = vadd.f32 %v2508_v44, %v9183_v43  ;;  %v7684_v51 = vpop.f32.mrb[126].mxu0  ;;  %v9327_v18 = vadd.f32 %v3003_v26, %v2608_v46  ;;  %v5077_v43 = vsel %vm1481_vm0, %v5072_v42, %v5076_v10  ;;  %v8298_v42 = vld [vmem:[#allocation2 + $0xc8] sm:$0xff]  }
 0x285   : > { %v3021_v14 = vpop.f32.mrb[127].mxu0  ;;  %7882 = vmatmul.mubr.bf16.gmra.mrb[188].mxu1 %v8293_v40  ;;  %v9329_v39 = vadd.f32 %v7680_v48, %v2610_v9 }
 0x286   : > { %7885 = vmatprep.mubr.bf16.mxu1 %v8294_v25  ;;  %v9332_v63 = vadd.f32 %v3006_v37, %v2609_v7  ;;  %v8297_v37 = vld [vmem:[#allocation2 + $0xc0] sm:$0xff]   ;;  %v5085_v7 = vsel %vm1481_vm0, %v5080_v38, %v5084_v20 }
 0x287   : > { %7950 = vmatmul.mubr.bf16.gmra.mrb[232].mxu0 %v5069_v16 }
 0x288   : > { %7953 = vmatprep.mubr.bf16.mxu0 %v5077_v43  ;;  %v7619_v3 = vpop.f32.mrb[84].mxu1 }
 0x289   : > { %v2612_v41 = vadd.f32 %v7619_v3, %v9191_v13  ;;  %v2520_v26 = vpop.f32.mrb[85].mxu1 }
 0x28a   : > { %v2611_v46 = vadd.f32 %v2520_v26, %v9193_v55  ;;  %v7687_v17 = vpop.f32.mrb[128].mxu0  ;;  %v7620_v48 = vpop.f32.mrb[86].mxu1 }
 0x28b   : > { %v2613_v9 = vadd.f32 %v7620_v48, %v9195_v32  ;;  %v3033_v44 = vpop.f32.mrb[129].mxu0  ;;  %v2523_v57 = vpop.f32.mrb[87].mxu1  ;;  %v9338_v21 = vadd.f32 %v7683_v52, %v2612_v41 }
 0x28c   : > { %v7688_v40 = vpop.f32.mrb[130].mxu0  ;;  %v9341_v10 = vadd.f32 %v3018_v61, %v2611_v46 }
 0x28d   : > { %v3035_v25 = vpop.f32.mrb[131].mxu0  ;;  %7886 = vmatmul.mubr.bf16.gmra.mrb[192].mxu1 %v8297_v37  ;;  %v9343_v13 = vadd.f32 %v7684_v51, %v2613_v9 }
 0x28e   : > { %7889 = vmatprep.mubr.bf16.mxu1 %v8298_v42 }
 0x28f   : > { %7954 = vmatmul.mubr.bf16.gmra.mrb[236].mxu0 %v5085_v7 }
 0x290   : > { %v7623_v55 = vpop.f32.mrb[88].mxu1 }
 0x291   : > { %v2615_v32 = vadd.f32 %v7623_v55, %v9202_v1  ;;  %v2535_v54 = vpop.f32.mrb[89].mxu1 }
 0x292   : > { %v7691_v14 = vpop.f32.mrb[132].mxu0  ;;  %v7624_v52 = vpop.f32.mrb[90].mxu1 }
 0x293   : > { %v3047_v16 = vpop.f32.mrb[133].mxu0  ;;  %v2537_v43 = vpop.f32.mrb[91].mxu1  ;;  %v9346_v3 = vadd.f32 %v7687_v17, %v2615_v32 }
 0x294   : > { %v2614_v61 = vadd.f32 %v2537_v43, %v9204_v45  ;;  %v7692_v38 = vpop.f32.mrb[134].mxu0 }
 0x295   : > { %v3050_v20 = vpop.f32.mrb[135].mxu0  ;;  %7890 = vmatmul.mubr.bf16.gmra.mrb[196].mxu1 %v8300_v0 }
 0x296   : > { %7973 = vmatprep.mubr.bf16.mxu1 %v8968_v4  ;;  %v9350_v51 = vadd.f32 %v3035_v25, %v2614_v61 }
 0x298   : > { %v7627_v41 = vpop.f32.mrb[92].mxu1 }
 0x299   : > { %v2549_v26 = vpop.f32.mrb[93].mxu1 }
 0x29a   : > { %v2616_v1 = vadd.f32 %v2549_v26, %v9209_v6  ;;  %v7695_v46 = vpop.f32.mrb[136].mxu0  ;;  %v7628_v48 = vpop.f32.mrb[94].mxu1  ;;  %v9834_v26 = vld [vmem:[#allocation21_spill] sm:$0xff] }
 0x29b   : > { %v2618_v9 = vadd.f32 %v7628_v48, %v9211_v53  ;;  %v3062_v44 = vpop.f32.mrb[137].mxu0  ;;  %v2552_v17 = vpop.f32.mrb[95].mxu1 }
 0x29c   : > { %v2617_v57 = vadd.f32 %v2552_v17, %v9216_v8  ;;  %v7696_v45 = vpop.f32.mrb[138].mxu0  ;;  %v9355_v37 = vadd.f32 %v3047_v16, %v2616_v1 }
 0x29d   : > { %v3065_v40 = vpop.f32.mrb[139].mxu0  ;;  %7974 = vmatmul.mubr.bf16.vlgmr.msra.gmra.mrb[200].mxu1 %v8914_v35  ;;  %v9358_v4 = vadd.f32 %v7692_v38, %v2618_v9  ;;  %v9835_v9 = vld [vmem:[#allocation3_spill] sm:$0xff] }
 0x29e   : > { %7977 = vmatprep.mubr.bf16.mxu1 %v8918_v59  ;;  %v9361_v42 = vadd.f32 %v3050_v20, %v2617_v57 }
 0x2a0   : > { %v7631_v6 = vpop.f32.mrb[96].mxu1 }
 0x2a1   : > { %v2620_v7 = vadd.f32 %v7631_v6, %v9224_v31  ;;  %v2564_v53 = vpop.f32.mrb[97].mxu1 }
 0x2a2   : > { %v2619_v25 = vadd.f32 %v2564_v53, %v9226_v12  ;;  %v7699_v55 = vpop.f32.mrb[140].mxu0  ;;  %v7632_v8 = vpop.f32.mrb[98].mxu1 }
 0x2a3   : > { %v2621_v32 = vadd.f32 %v7632_v8, %v9228_v19  ;;  %v3077_v54 = vpop.f32.mrb[141].mxu0  ;;  %v2567_v0 = vpop.f32.mrb[99].mxu1  ;;  %v9366_v14 = vadd.f32 %v7695_v46, %v2620_v7 }
 0x2a4   : > { %v7700_v35 = vpop.f32.mrb[142].mxu0  ;;  %v9368_v52 = vadd.f32 %v3062_v44, %v2619_v25  ;;  %v9838_v0 = vld [vmem:[#allocation6_spill] sm:$0xff] }
 0x2a5   : > { %v3079_v59 = vpop.f32.mrb[143].mxu0  ;;  %7978 = vmatmul.mubr.bf16.gmra.mrb[204].mxu1 %v8921_v62  ;;  %v9371_v16 = vadd.f32 %v7696_v45, %v2621_v32  ;;  %v9836_v62 = vld [vmem:[#allocation4_spill] sm:$0xff]  ;;  %v9837_v32 = vld [vmem:[#allocation5_spill] sm:$0xff] }
 0x2a6   : > { %7981 = vmatprep.mubr.bf16.mxu1 %v8925_v2 }
 0x2a8   : > { %v7635_v31 = vpop.f32.mrb[100].mxu1 }
 0x2a9   : > { %v2623_v12 = vadd.f32 %v7635_v31, %v9238_v23  ;;  %v2579_v43 = vpop.f32.mrb[101].mxu1 }
 0x2aa   : > { %v7783_v61 = vpop.f32.mrb[144].mxu0  ;;  %v7636_v19 = vpop.f32.mrb[102].mxu1 }
 0x2ab   : > { %v3996_v38 = vpop.f32.mrb[145].mxu0  ;;  %v2581_v20 = vpop.f32.mrb[103].mxu1  ;;  %v9375_v41 = vadd.f32 %v7699_v55, %v2623_v12 }
 0x2ac   : > { %v2622_v1 = vadd.f32 %v2581_v20, %v9834_v26  ;;  %v7784_v46 = vpop.f32.mrb[146].mxu0 }
 0x2ad   : > { %v3999_v48 = vpop.f32.mrb[147].mxu0  ;;  %7982 = vmatmul.mubr.bf16.gmra.mrb[208].mxu1 %v9835_v9 }
 0x2ae   : > { %7985 = vmatprep.mubr.bf16.mxu1 %v9836_v62  ;;  %v9380_v44 = vadd.f32 %v3079_v59, %v2622_v1  ;;  %v8303_v1 = vld [vmem:[%s9810_s6] sm:$0xff]  }
 0x2af   : > { %8021 = vmatprep.subr.bf16.mxu0 %v8303_v1 }
 0x2b0   : > { %v7719_v2 = vpop.f32.mrb[104].mxu1  ;;  %8022 = vmatpush3.bf16.msra.mxu0 %v8303_v1 }
 0x2b1   : > { %v3613_v17 = vpop.f32.mrb[105].mxu1 }
 0x2b2   : > { %v3788_v23 = vadd.f32 %v3613_v17, %v9259_v22  ;;  %v7787_v57 = vpop.f32.mrb[148].mxu0  ;;  %v7720_v45 = vpop.f32.mrb[106].mxu1 }
 0x2b3   : > { %v3790_v40 = vadd.f32 %v7720_v45, %v9261_v15  ;;  %v4011_v6 = vpop.f32.mrb[149].mxu0  ;;  %v3616_v7 = vpop.f32.mrb[107].mxu1 }
 0x2b4   : > { %v3789_v53 = vadd.f32 %v3616_v7, %v9264_v30  ;;  %v7788_v25 = vpop.f32.mrb[150].mxu0  ;;  %v9385_v55 = vadd.f32 %v3996_v38, %v3788_v23 }
 0x2b5   : > { %v4014_v8 = vpop.f32.mrb[151].mxu0  ;;  %7986 = vmatmul.mubr.bf16.gmra.mrb[212].mxu1 %v9837_v32  ;;  %v9388_v54 = vadd.f32 %v7784_v46, %v3790_v40 }
 0x2b6   : > { %7989 = vmatprep.mubr.bf16.mxu1 %v9838_v0  ;;  %v9391_v35 = vadd.f32 %v3999_v48, %v3789_v53  ;;  %v9841_v53 = vld [vmem:[#allocation9_spill] sm:$0xff]  ;;  %v9842_v8 = vld [vmem:[#allocation10_spill] sm:$0xff] }
 0x2b8   : > { %v7723_v22 = vpop.f32.mrb[108].mxu1 }
 0x2b9   : > { %v3792_v59 = vadd.f32 %v7723_v22, %v9271_v28  ;;  %v3628_v15 = vpop.f32.mrb[109].mxu1  ;;  %v9839_v28 = vld [vmem:[#allocation7_spill] sm:$0xff] }
 0x2ba   : > { %v3791_v31 = vadd.f32 %v3628_v15, %v9273_v33  ;;  %v7791_v12 = vpop.f32.mrb[152].mxu0  ;;  %v7724_v30 = vpop.f32.mrb[110].mxu1  ;;  %v9840_v33 = vld [vmem:[#allocation8_spill] sm:$0xff] }
 0x2bb   : > { %v3793_v43 = vadd.f32 %v7724_v30, %v9275_v47  ;;  %v4026_v61 = vpop.f32.mrb[153].mxu0  ;;  %v3631_v19 = vpop.f32.mrb[111].mxu1  ;;  %v9396_v38 = vadd.f32 %v7787_v57, %v3792_v59 }
 0x2bc   : > { %v7792_v20 = vpop.f32.mrb[154].mxu0  ;;  %v9398_v26 = vadd.f32 %v4011_v6, %v3791_v31 }
 0x2bd   : > { %v4028_v46 = vpop.f32.mrb[155].mxu0  ;;  %7990 = vmatmul.mubr.bf16.gmra.mrb[216].mxu1 %v9839_v28  ;;  %v9404_v48 = vadd.f32 %v7788_v25, %v3793_v43  ;;  %v8304_v25 = vld [vmem:[%s9810_s6 + $0x8] sm:$0xff]  }
 0x2be   : > { %7993 = vmatprep.mubr.bf16.mxu1 %v9840_v33  ;;  %8023 = vmatprep.subr.bf16.mxu0 %v8304_v25  ;;  %v9843_v20 = vld [vmem:[#allocation11_spill] sm:$0xff] }
 0x2bf   : > { %8024 = vmatpush3.bf16.msra.mxu0 %v8304_v25 }
 0x2c0   : > { %v7727_v47 = vpop.f32.mrb[112].mxu1 }
 0x2c1   : > { %v3795_v9 = vadd.f32 %v7727_v47, %v9280_v27  ;;  %v3643_v62 = vpop.f32.mrb[113].mxu1 }
 0x2c2   : > { %v7795_v2 = vpop.f32.mrb[156].mxu0  ;;  %v7728_v17 = vpop.f32.mrb[114].mxu1 }
 0x2c3   : > { %v4040_v23 = vpop.f32.mrb[157].mxu0  ;;  %v3645_v57 = vpop.f32.mrb[115].mxu1  ;;  %v9408_v45 = vadd.f32 %v7791_v12, %v3795_v9 }
 0x2c4   : > { %v3794_v40 = vadd.f32 %v3645_v57, %v9284_v36  ;;  %v7796_v6 = vpop.f32.mrb[158].mxu0 }
 0x2c5   : > { %v4043_v7 = vpop.f32.mrb[159].mxu0  ;;  %7994 = vmatmul.mubr.bf16.gmra.mrb[220].mxu1 %v9841_v53 }
 0x2c6   : > { %7997 = vmatprep.mubr.bf16.mxu1 %v9842_v8  ;;  %v9416_v27 = vadd.f32 %v4028_v46, %v3794_v40  ;;  %v9844_v46 = vld [vmem:[#allocation13_spill] sm:$0xff] }
 0x2c8   : > { %v7731_v32 = vpop.f32.mrb[116].mxu1 }
 0x2c9   : > { %v3657_v0 = vpop.f32.mrb[117].mxu1 }
 0x2ca   : > { %v3796_v22 = vadd.f32 %v3657_v0, %v9290_v11  ;;  %v7799_v59 = vpop.f32.mrb[160].mxu0  ;;  %v7732_v36 = vpop.f32.mrb[118].mxu1 }
 0x2cb   : > { %v3798_v15 = vadd.f32 %v7732_v36, %v9292_v24  ;;  %v4055_v31 = vpop.f32.mrb[161].mxu0  ;;  %v3660_v12 = vpop.f32.mrb[119].mxu1 }
 0x2cc   : > { %v3797_v30 = vadd.f32 %v3660_v12, %v9295_v50  ;;  %v7800_v43 = vpop.f32.mrb[162].mxu0  ;;  %v9421_v61 = vadd.f32 %v4040_v23, %v3796_v22 }
 0x2cd   : > { %v4058_v19 = vpop.f32.mrb[163].mxu0  ;;  %7998 = vmatmul.mubr.bf16.gmra.mrb[224].mxu1 %v9843_v20  ;;  %v9424_v1 = vadd.f32 %v7796_v6, %v3798_v15  ;;  %v8305_v6 = vld [vmem:[%s9810_s6 + $0x10] sm:$0xff]  }
 0x2ce   : > { %8001 = vmatprep.mubr.bf16.mxu1 %v9844_v46  ;;  %v9427_v28 = vadd.f32 %v4043_v7, %v3797_v30  ;;  %8025 = vmatprep.subr.bf16.mxu0 %v8305_v6  ;;  %v9847_v30 = vld [vmem:[#allocation16_spill] sm:$0xff]  ;;  %v9848_v19 = vld [vmem:[#allocation17_spill] sm:$0xff] }
 0x2cf   : > { %8026 = vmatpush3.bf16.msra.mxu0 %v8305_v6 }
 0x2d0   : > { %v7735_v11 = vpop.f32.mrb[120].mxu1 }
 0x2d1   : > { %v3800_v33 = vadd.f32 %v7735_v11, %v9301_v5  ;;  %v3672_v24 = vpop.f32.mrb[121].mxu1  ;;  %v9845_v5 = vld [vmem:[#allocation14_spill] sm:$0xff] }
 0x2d2   : > { %v3799_v47 = vadd.f32 %v3672_v24, %v9303_v60  ;;  %v7803_v9 = vpop.f32.mrb[164].mxu0  ;;  %v7736_v50 = vpop.f32.mrb[122].mxu1  ;;  %v9846_v60 = vld [vmem:[#allocation15_spill] sm:$0xff] }
 0x2d3   : > { %v3801_v62 = vadd.f32 %v7736_v50, %v9305_v49  ;;  %v4070_v2 = vpop.f32.mrb[165].mxu0  ;;  %v3675_v17 = vpop.f32.mrb[123].mxu1  ;;  %v9432_v23 = vadd.f32 %v7799_v59, %v3800_v33 }
 0x2d4   : > { %v7804_v57 = vpop.f32.mrb[166].mxu0  ;;  %v9434_v40 = vadd.f32 %v4055_v31, %v3799_v47 }
 0x2d5   : > { %v4072_v7 = vpop.f32.mrb[167].mxu0  ;;  %8002 = vmatmul.mubr.bf16.gmra.mrb[228].mxu1 %v9845_v5  ;;  %v9440_v53 = vadd.f32 %v7800_v43, %v3801_v62  ;;  %v8306_v43 = vld [vmem:[%s9810_s6 + $0x18] sm:$0xff]  }
 0x2d6   : > { %8005 = vmatprep.mubr.bf16.mxu1 %v9846_v60  ;;  %8027 = vmatprep.subr.bf16.mxu0 %v8306_v43  ;;  %v9849_v57 = vld [vmem:[#allocation18_spill] sm:$0xff] }
 0x2d7   : > { %8028 = vmatpush3.bf16.msra.mxu0 %v8306_v43 }
 0x2d8   : > { %v7739_v49 = vpop.f32.mrb[124].mxu1 }
 0x2d9   : > { %v3803_v25 = vadd.f32 %v7739_v49, %v9312_v56  ;;  %v3687_v8 = vpop.f32.mrb[125].mxu1  ;;  %v5465_v49 = vrot.slane %v9310_v29, 1  ;;  %v9852_v29 = vld [vmem:[#allocation12_spill] sm:$0xff] }
 0x2da   : > { %v7807_v32 = vpop.f32.mrb[168].mxu0  ;;  %v7740_v0 = vpop.f32.mrb[126].mxu1 }
 0x2db   : > { %v4084_v22 = vpop.f32.mrb[169].mxu0  ;;  %v3689_v59 = vpop.f32.mrb[127].mxu1  ;;  %v9444_v36 = vadd.f32 %v7803_v9, %v3803_v25 }
 0x2dc   : > { %v3802_v15 = vadd.f32 %v3689_v59, %v9316_v34  ;;  %v7808_v31 = vpop.f32.mrb[170].mxu0 }
 0x2dd   : > { %v4087_v12 = vpop.f32.mrb[171].mxu0  ;;  %8006 = vmatmul.mubr.bf16.gmra.mrb[232].mxu1 %v9847_v30  ;;  %v9851_v30 = vld [vmem:[#allocation20_spill] sm:$0xff] }
 0x2de   : > { %8009 = vmatprep.mubr.bf16.mxu1 %v9848_v19  ;;  %v9452_v56 = vadd.f32 %v4072_v7, %v3802_v15  ;;  %v9850_v7 = vld [vmem:[#allocation19_spill] sm:$0xff] }
 0x2e0   : > { %v7743_v20 = vpop.f32.mrb[128].mxu1 }
 0x2e1   : > { %v3701_v46 = vpop.f32.mrb[129].mxu1 }
 0x2e2   : > { %v3804_v11 = vadd.f32 %v3701_v46, %v9327_v18  ;;  %v7811_v33 = vpop.f32.mrb[172].mxu0  ;;  %v7744_v34 = vpop.f32.mrb[130].mxu1 }
 0x2e3   : > { %v3806_v24 = vadd.f32 %v7744_v34, %v9329_v39  ;;  %v4099_v47 = vpop.f32.mrb[173].mxu0  ;;  %v3704_v9 = vpop.f32.mrb[131].mxu1 }
 0x2e4   : > { %v3805_v50 = vadd.f32 %v3704_v9, %v9332_v63  ;;  %v7812_v62 = vpop.f32.mrb[174].mxu0  ;;  %v9457_v2 = vadd.f32 %v4084_v22, %v3804_v11 }
 0x2e5   : > { %v4102_v17 = vpop.f32.mrb[175].mxu0  ;;  %8010 = vmatmul.mubr.bf16.gmra.mrb[236].mxu1 %v9849_v57  ;;  %v9460_v6 = vadd.f32 %v7808_v31, %v3806_v24 }
 0x2e6   : > { %8013 = vmatprep.mubr.bf16.mxu1 %v9850_v7  ;;  %v9463_v5 = vadd.f32 %v4087_v12, %v3805_v50 }
 0x2e8   : > { %v7747_v18 = vpop.f32.mrb[132].mxu1 }
 0x2e9   : > { %v3808_v60 = vadd.f32 %v7747_v18, %v9338_v21  ;;  %v3716_v39 = vpop.f32.mrb[133].mxu1  ;;  %v8307_v21 = vld [vmem:[%s9810_s6 + $0x20] sm:$0xff]  }
 0x2ea   : > { %v3807_v63 = vadd.f32 %v3716_v39, %v9341_v10  ;;  %v7815_v25 = vpop.f32.mrb[176].mxu0  ;;  %v7748_v8 = vpop.f32.mrb[134].mxu1  ;;  %v9853_v10 = vrot.slane %v9852_v29, 1  ;;  %8029 = vmatprep.subr.bf16.mxu0 %v8307_v21 }
 0x2eb   : > { %v3809_v32 = vadd.f32 %v7748_v8, %v9343_v13  ;;  %v4114_v0 = vpop.f32.mrb[177].mxu0  ;;  %v3719_v22 = vpop.f32.mrb[135].mxu1  ;;  %v9469_v59 = vadd.f32 %v7811_v33, %v3808_v60  ;;  %v5467_v13 = vrot.slane %v9320_v58, 1  ;;  %8030 = vmatpush3.bf16.msra.mxu0 %v8307_v21 }
 0x2ec   : > { %v7816_v15 = vpop.f32.mrb[178].mxu0  ;;  %v9471_v31 = vadd.f32 %v4099_v47, %v3807_v63  ;;  %v5466_v43 = vsel %vm2261_vm1, %v9853_v10, %v5465_v49 }
 0x2ed   : > { %v4116_v12 = vpop.f32.mrb[179].mxu0  ;;  %8014 = vmatmul.mubr.bf16.gmra.mrb[240].mxu1 %v9851_v30  ;;  %v9480_v19 = vadd.f32 %v7812_v62, %v3809_v32  ;;  %v5468_v24 = vsel %vm2261_vm1, %v5465_v49, %v5467_v13 }
 0x2ee   : > { %8017 = vmatprep.mubr.bf16.mxu1 %v5466_v43 }
 0x2f0   : > { %v7751_v20 = vpop.f32.mrb[136].mxu1 }
 0x2f1   : > { %v3811_v46 = vadd.f32 %v7751_v20, %v9346_v3  ;;  %v3731_v11 = vpop.f32.mrb[137].mxu1  ;;  %v8308_v3 = vld [vmem:[%s9810_s6 + $0x28] sm:$0xff]  }
 0x2f2   : > { %v7819_v33 = vpop.f32.mrb[180].mxu0  ;;  %v7752_v34 = vpop.f32.mrb[138].mxu1  ;;  %8031 = vmatprep.subr.bf16.mxu0 %v8308_v3 }
 0x2f3   : > { %v4128_v47 = vpop.f32.mrb[181].mxu0  ;;  %v3733_v9 = vpop.f32.mrb[139].mxu1  ;;  %v9485_v50 = vadd.f32 %v7815_v25, %v3811_v46  ;;  %8032 = vmatpush3.bf16.msra.mxu0 %v8308_v3 }
 0x2f4   : > { %v3810_v62 = vadd.f32 %v3733_v9, %v9350_v51  ;;  %v7820_v17 = vpop.f32.mrb[182].mxu0 }
 0x2f5   : > { %v4131_v57 = vpop.f32.mrb[183].mxu0  ;;  %8018 = vmatmul.mubr.bf16.gmra.mrb[244].mxu1 %v5468_v24 }
 0x2f6   : > { %v9488_v58 = vadd.f32 %v4116_v12, %v3810_v62 }
 0x2f8   : > { %v7755_v7 = vpop.f32.mrb[140].mxu1 }
 0x2f9   : > { %v3745_v18 = vpop.f32.mrb[141].mxu1 }
 0x2fa   : > { %v3812_v60 = vadd.f32 %v3745_v18, %v9355_v37  ;;  %v7823_v39 = vpop.f32.mrb[184].mxu0  ;;  %v7756_v49 = vpop.f32.mrb[142].mxu1  ;;  %v8309_v37 = vld [vmem:[%s9810_s6 + $0x30] sm:$0xff]  }
 0x2fb   : > { %v3814_v63 = vadd.f32 %v7756_v49, %v9358_v4  ;;  %v4143_v25 = vpop.f32.mrb[185].mxu0  ;;  %v3748_v51 = vpop.f32.mrb[143].mxu1  ;;  %v8310_v4 = vld [vmem:[%s9810_s6 + $0x38] sm:$0xff]   ;;  %8033 = vmatprep.subr.bf16.mxu0 %v8309_v37 }
 0x2fc   : > { %v3813_v8 = vadd.f32 %v3748_v51, %v9361_v42  ;;  %v7824_v32 = vpop.f32.mrb[186].mxu0  ;;  %v9496_v0 = vadd.f32 %v4128_v47, %v3812_v60  ;;  %8034 = vmatpush3.bf16.msra.mxu0 %v8309_v37 }
 0x2fd   : > { %v4146_v22 = vpop.f32.mrb[187].mxu0  ;;  %v9498_v15 = vadd.f32 %v7820_v17, %v3814_v63  ;;  %8035 = vmatprep.subr.bf16.mxu0 %v8310_v4 }
 0x2fe   : > { %v9500_v21 = vadd.f32 %v4131_v57, %v3813_v8 }
 0x300   : > { %v7759_v12 = vpop.f32.mrb[144].mxu1  ;;  %8036 = vmatpush3.bf16.msra.mxu0 %v8310_v4 }
 0x301   : > { %v3816_v30 = vadd.f32 %v7759_v12, %v9366_v14  ;;  %v3760_v42 = vpop.f32.mrb[145].mxu1 }
 0x302   : > { %v3815_v29 = vadd.f32 %v3760_v42, %v9368_v52  ;;  %v7827_v10 = vpop.f32.mrb[188].mxu0  ;;  %v7760_v43 = vpop.f32.mrb[146].mxu1 }
 0x303   : > { %v3817_v13 = vadd.f32 %v7760_v43, %v9371_v16  ;;  %v4158_v20 = vpop.f32.mrb[189].mxu0  ;;  %v3763_v46 = vpop.f32.mrb[147].mxu1  ;;  %v9511_v11 = vadd.f32 %v7823_v39, %v3816_v30 }
 0x304   : > { %v7828_v33 = vpop.f32.mrb[190].mxu0  ;;  %v9513_v34 = vadd.f32 %v4143_v25, %v3815_v29 }
 0x305   : > { %v4160_v24 = vpop.f32.mrb[191].mxu0  ;;  %v9515_v47 = vadd.f32 %v7824_v32, %v3817_v13 }
 0x308   : > { %v7763_v14 = vpop.f32.mrb[148].mxu1 }
 0x309   : > { %v3819_v52 = vadd.f32 %v7763_v14, %v9375_v41  ;;  %v3775_v9 = vpop.f32.mrb[149].mxu1 }
 0x30a   : > { %v7911_v62 = vpop.f32.mrb[192].mxu0  ;;  %v7764_v17 = vpop.f32.mrb[150].mxu1 }
 0x30b   : > { %v5192_v16 = vpop.f32.mrb[193].mxu0  ;;  %v3777_v57 = vpop.f32.mrb[151].mxu1  ;;  %v9518_v7 = vadd.f32 %v7827_v10, %v3819_v52 }
 0x30c   : > { %v3818_v3 = vadd.f32 %v3777_v57, %v9380_v44  ;;  %v7912_v18 = vpop.f32.mrb[194].mxu0 }
 0x30d   : > { %v5195_v60 = vpop.f32.mrb[195].mxu0 }
 0x30e   : > { %v9521_v39 = vadd.f32 %v4160_v24, %v3818_v3 }
 0x310   : > { %v7847_v49 = vpop.f32.mrb[152].mxu1 }
 0x311   : > { %v4494_v63 = vpop.f32.mrb[153].mxu1 }
 0x312   : > { %v4669_v25 = vadd.f32 %v4494_v63, %v9385_v55  ;;  %v7915_v51 = vpop.f32.mrb[196].mxu0  ;;  %v7848_v8 = vpop.f32.mrb[154].mxu1 }
 0x313   : > { %v4671_v41 = vadd.f32 %v7848_v8, %v9388_v54  ;;  %v5207_v32 = vpop.f32.mrb[197].mxu0  ;;  %v4497_v22 = vpop.f32.mrb[155].mxu1 }
 0x314   : > { %v4670_v12 = vadd.f32 %v4497_v22, %v9391_v35  ;;  %v7916_v37 = vpop.f32.mrb[198].mxu0  ;;  %v9526_v4 = vadd.f32 %v5192_v16, %v4669_v25 }
 0x315   : > { %v5210_v44 = vpop.f32.mrb[199].mxu0  ;;  %v9528_v30 = vadd.f32 %v7912_v18, %v4671_v41 }
 0x316   : > { %v9530_v42 = vadd.f32 %v5195_v60, %v4670_v12 }
 0x318   : > { %v7851_v29 = vpop.f32.mrb[156].mxu1 }
 0x319   : > { %v4673_v10 = vadd.f32 %v7851_v29, %v9396_v38  ;;  %v4509_v55 = vpop.f32.mrb[157].mxu1 }
 0x31a   : > { %v4672_v43 = vadd.f32 %v4509_v55, %v9398_v26  ;;  %v7919_v13 = vpop.f32.mrb[200].mxu0  ;;  %v7852_v54 = vpop.f32.mrb[158].mxu1 }
 0x31b   : > { %v4674_v20 = vadd.f32 %v7852_v54, %v9404_v48  ;;  %v5222_v46 = vpop.f32.mrb[201].mxu0  ;;  %v4512_v35 = vpop.f32.mrb[159].mxu1  ;;  %v9535_v33 = vadd.f32 %v7915_v51, %v4673_v10 }
 0x31c   : > { %v7920_v24 = vpop.f32.mrb[202].mxu0  ;;  %v9537_v14 = vadd.f32 %v5207_v32, %v4672_v43 }
 0x31d   : > { %v5224_v52 = vpop.f32.mrb[203].mxu0  ;;  %v9539_v9 = vadd.f32 %v7916_v37, %v4674_v20 }
 0x320   : > { %v7855_v62 = vpop.f32.mrb[160].mxu1 }
 0x321   : > { %v4676_v38 = vadd.f32 %v7855_v62, %v9408_v45  ;;  %v4524_v17 = vpop.f32.mrb[161].mxu1 }
 0x322   : > { %v7923_v16 = vpop.f32.mrb[204].mxu0  ;;  %v7856_v26 = vpop.f32.mrb[162].mxu1 }
 0x323   : > { %v5236_v57 = vpop.f32.mrb[205].mxu0  ;;  %v4526_v3 = vpop.f32.mrb[163].mxu1  ;;  %v9542_v18 = vadd.f32 %v7919_v13, %v4676_v38 }
 0x324   : > { %v4675_v48 = vadd.f32 %v4526_v3, %v9416_v27  ;;  %v7924_v60 = vpop.f32.mrb[206].mxu0 }
 0x325   : > { %v5239_v49 = vpop.f32.mrb[207].mxu0 }
 0x326   : > { %v9545_v63 = vadd.f32 %v5224_v52, %v4675_v48 }
 0x328   : > { %v7859_v25 = vpop.f32.mrb[164].mxu1 }
 0x329   : > { %v4538_v51 = vpop.f32.mrb[165].mxu1 }
 0x32a   : > { %v4677_v8 = vadd.f32 %v4538_v51, %v9421_v61  ;;  %v7927_v41 = vpop.f32.mrb[208].mxu0  ;;  %v7860_v32 = vpop.f32.mrb[166].mxu1 }
 0x32b   : > { %v4679_v45 = vadd.f32 %v7860_v32, %v9424_v1  ;;  %v5251_v22 = vpop.f32.mrb[209].mxu0  ;;  %v4541_v12 = vpop.f32.mrb[167].mxu1 }
 0x32c   : > { %v4678_v37 = vadd.f32 %v4541_v12, %v9427_v28  ;;  %v7928_v44 = vpop.f32.mrb[210].mxu0  ;;  %v9550_v29 = vadd.f32 %v5236_v57, %v4677_v8 }
 0x32d   : > { %v5254_v27 = vpop.f32.mrb[211].mxu0  ;;  %v9552_v10 = vadd.f32 %v7924_v60, %v4679_v45 }
 0x32e   : > { %v9554_v55 = vadd.f32 %v5239_v49, %v4678_v37 }
 0x330   : > { %v7863_v43 = vpop.f32.mrb[168].mxu1 }
 0x331   : > { %v4681_v13 = vadd.f32 %v7863_v43, %v9432_v23  ;;  %v4553_v61 = vpop.f32.mrb[169].mxu1 }
 0x332   : > { %v4680_v54 = vadd.f32 %v4553_v61, %v9434_v40  ;;  %v7931_v20 = vpop.f32.mrb[212].mxu0  ;;  %v7864_v1 = vpop.f32.mrb[170].mxu1 }
 0x333   : > { %v4682_v46 = vadd.f32 %v7864_v1, %v9440_v53  ;;  %v5266_v35 = vpop.f32.mrb[213].mxu0  ;;  %v4556_v28 = vpop.f32.mrb[171].mxu1  ;;  %v9559_v24 = vadd.f32 %v7927_v41, %v4681_v13 }
 0x334   : > { %v7932_v52 = vpop.f32.mrb[214].mxu0  ;;  %v9561_v62 = vadd.f32 %v5251_v22, %v4680_v54 }
 0x335   : > { %v5268_v38 = vpop.f32.mrb[215].mxu0  ;;  %v9563_v17 = vadd.f32 %v7928_v44, %v4682_v46 }
 0x338   : > { %v7867_v16 = vpop.f32.mrb[172].mxu1 }
 0x339   : > { %v4684_v23 = vadd.f32 %v7867_v16, %v9444_v36  ;;  %v4568_v26 = vpop.f32.mrb[173].mxu1 }
 0x33a   : > { %v7935_v57 = vpop.f32.mrb[216].mxu0  ;;  %v7868_v40 = vpop.f32.mrb[174].mxu1 }
 0x33b   : > { %v5280_v3 = vpop.f32.mrb[217].mxu0  ;;  %v4570_v48 = vpop.f32.mrb[175].mxu1  ;;  %v9566_v60 = vadd.f32 %v7931_v20, %v4684_v23 }
 0x33c   : > { %v4683_v53 = vadd.f32 %v4570_v48, %v9452_v56  ;;  %v7936_v49 = vpop.f32.mrb[218].mxu0 }
 0x33d   : > { %v5283_v25 = vpop.f32.mrb[219].mxu0 }
 0x33e   : > { %v9569_v51 = vadd.f32 %v5268_v38, %v4683_v53 }
 0x340   : > { %v7871_v8 = vpop.f32.mrb[176].mxu1 }
 0x341   : > { %v4582_v41 = vpop.f32.mrb[177].mxu1 }
 0x342   : > { %v4685_v32 = vadd.f32 %v4582_v41, %v9457_v2  ;;  %v7939_v45 = vpop.f32.mrb[220].mxu0  ;;  %v7872_v22 = vpop.f32.mrb[178].mxu1 }
 0x343   : > { %v4687_v36 = vadd.f32 %v7872_v22, %v9460_v6  ;;  %v5295_v12 = vpop.f32.mrb[221].mxu0  ;;  %v4585_v37 = vpop.f32.mrb[179].mxu1 }
 0x344   : > { %v4686_v44 = vadd.f32 %v4585_v37, %v9463_v5  ;;  %v7940_v27 = vpop.f32.mrb[222].mxu0  ;;  %v9574_v43 = vadd.f32 %v5280_v3, %v4685_v32 }
 0x345   : > { %v5298_v56 = vpop.f32.mrb[223].mxu0  ;;  %v9576_v13 = vadd.f32 %v7936_v49, %v4687_v36 }
 0x346   : > { %v9578_v61 = vadd.f32 %v5283_v25, %v4686_v44 }
 0x348   : > { %v7875_v54 = vpop.f32.mrb[180].mxu1 }
 0x349   : > { %v4689_v20 = vadd.f32 %v7875_v54, %v9469_v59  ;;  %v4597_v2 = vpop.f32.mrb[181].mxu1 }
 0x34a   : > { %v4688_v1 = vadd.f32 %v4597_v2, %v9471_v31  ;;  %v7943_v46 = vpop.f32.mrb[224].mxu0  ;;  %v7876_v6 = vpop.f32.mrb[182].mxu1 }
 0x34b   : > { %v4690_v35 = vadd.f32 %v7876_v6, %v9480_v19  ;;  %v5310_v28 = vpop.f32.mrb[225].mxu0  ;;  %v4600_v5 = vpop.f32.mrb[183].mxu1  ;;  %v9583_v52 = vadd.f32 %v7939_v45, %v4689_v20 }
 0x34c   : > { %v7944_v38 = vpop.f32.mrb[226].mxu0  ;;  %v9585_v16 = vadd.f32 %v5295_v12, %v4688_v1 }
 0x34d   : > { %v5312_v23 = vpop.f32.mrb[227].mxu0  ;;  %v9587_v26 = vadd.f32 %v7940_v27, %v4690_v35 }
 0x350   : > { %v7879_v57 = vpop.f32.mrb[184].mxu1 }
 0x351   : > { %v4692_v59 = vadd.f32 %v7879_v57, %v9485_v50  ;;  %v4612_v40 = vpop.f32.mrb[185].mxu1 }
 0x352   : > { %v7947_v3 = vpop.f32.mrb[228].mxu0  ;;  %v7880_v31 = vpop.f32.mrb[186].mxu1 }
 0x353   : > { %v5324_v48 = vpop.f32.mrb[229].mxu0  ;;  %v4614_v53 = vpop.f32.mrb[187].mxu1  ;;  %v9590_v49 = vadd.f32 %v7943_v46, %v4692_v59 }
 0x354   : > { %v4691_v19 = vadd.f32 %v4614_v53, %v9488_v58  ;;  %v7948_v25 = vpop.f32.mrb[230].mxu0 }
 0x355   : > { %v5327_v8 = vpop.f32.mrb[231].mxu0 }
 0x356   : > { %v9593_v41 = vadd.f32 %v5312_v23, %v4691_v19 }
 0x358   : > { %v7883_v32 = vpop.f32.mrb[188].mxu1 }
 0x359   : > { %v4626_v45 = vpop.f32.mrb[189].mxu1  ;;  %v9622_v32 = vld [vmem:[%s9809_s5] ss:$0 sm:$0xff] }
 0x35a   : > { %v4693_v22 = vadd.f32 %v4626_v45, %v9496_v0  ;;  %v7951_v36 = vpop.f32.mrb[232].mxu0  ;;  %v7884_v12 = vpop.f32.mrb[190].mxu1 }
 0x35b   : > { %v4695_v50 = vadd.f32 %v7884_v12, %v9498_v15  ;;  %v5339_v37 = vpop.f32.mrb[233].mxu0  ;;  %v4629_v44 = vpop.f32.mrb[191].mxu1 }
 0x35c   : > { %v4694_v27 = vadd.f32 %v4629_v44, %v9500_v21  ;;  %v7952_v56 = vpop.f32.mrb[234].mxu0  ;;  %v9598_v54 = vadd.f32 %v5324_v48, %v4693_v22 }
 0x35d   : > { %v5342_v58 = vpop.f32.mrb[235].mxu0  ;;  %v9600_v20 = vadd.f32 %v7948_v25, %v4695_v50 }
 0x35e   : > { %v9602_v2 = vadd.f32 %v5327_v8, %v4694_v27 }
 0x360   : > { %v7887_v1 = vpop.f32.mrb[192].mxu1 }
 0x361   : > { %v4697_v46 = vadd.f32 %v7887_v1, %v9511_v11  ;;  %v4641_v0 = vpop.f32.mrb[193].mxu1 }
 0x362   : > { %v4696_v6 = vadd.f32 %v4641_v0, %v9513_v34  ;;  %v7888_v35 = vpop.f32.mrb[194].mxu1  ;;  %v7955_v15 = vpop.f32.mrb[236].mxu0 }
 0x363   : > { %v4698_v28 = vadd.f32 %v7888_v35, %v9515_v47  ;;  %v4644_v5 = vpop.f32.mrb[195].mxu1  ;;  %v5354_v21 = vpop.f32.mrb[237].mxu0  ;;  %v9607_v38 = vadd.f32 %v7951_v36, %v4697_v46 }
 0x364   : > { %v7956_v23 = vpop.f32.mrb[238].mxu0  ;;  %v9609_v57 = vadd.f32 %v5339_v37, %v4696_v6 }
 0x365   : > { %v5356_v59 = vpop.f32.mrb[239].mxu0  ;;  %v9611_v40 = vadd.f32 %v7952_v56, %v4698_v28 }
 0x368   : > { %v7891_v3 = vpop.f32.mrb[196].mxu1 }
 0x369   : > { %v4700_v11 = vadd.f32 %v7891_v3, %v9518_v7  ;;  %v4656_v31 = vpop.f32.mrb[197].mxu1 }
 0x36a   : > { %v7892_v48 = vpop.f32.mrb[198].mxu1 }
 0x36b   : > { %v9614_v34 = vadd.f32 %v7955_v15, %v4700_v11  ;;  %v4658_v53 = vpop.f32.mrb[199].mxu1 }
 0x36c   : > { %v4699_v47 = vadd.f32 %v4658_v53, %v9521_v39 }
 0x36e   : > { %v9617_v19 = vadd.f32 %v5356_v59, %v4699_v47 }
 0x370   : > { %v7975_v25 = vpop.f32.mrb[200].mxu1 }
 0x371   : > { %v5575_v8 = vpop.f32.mrb[201].mxu1 }
 0x372   : > { %v5750_v45 = vadd.f32 %v5575_v8, %v9526_v4  ;;  %v7976_v22 = vpop.f32.mrb[202].mxu1 }
 0x373   : > { %v5752_v7 = vadd.f32 %v7976_v22, %v9528_v30  ;;  %v5578_v36 = vpop.f32.mrb[203].mxu1 }
 0x374   : > { %v5789_v12 = vadd.f32 %v9622_v32, %v5750_v45  ;;  %v5751_v50 = vadd.f32 %v5578_v36, %v9530_v42 }
 0x375   : > { %v5791_v1 = vadd.f32 %v9622_v32, %v5752_v7 }
 0x376   : > { %v5790_v39 = vadd.f32 %v9622_v32, %v5751_v50  ;;  %v5821_v37 = vmax.f32 %v5789_v12, 0.0 }
 0x377   : > { %v5823_v28 = vmax.f32 %v5791_v1, 0.0 }
 0x378   : > { %v5822_v44 = vmax.f32 %v5790_v39, 0.0  ;;  %v7979_v27 = vpop.f32.mrb[204].mxu1 }
 0x379   : > { %v5754_v56 = vadd.f32 %v7979_v27, %v9535_v33  ;;  %v5590_v58 = vpop.f32.mrb[205].mxu1 }
 0x37a   : > { %v5753_v4 = vadd.f32 %v5590_v58, %v9537_v14  ;;  %v7980_v46 = vpop.f32.mrb[206].mxu1  ;;  %v5853_v0 = vpack.c.bf16 %v5822_v44, %v5821_v37 }
 0x37b   : > { %v5793_v30 = vadd.f32 %v9622_v32, %v5754_v56  ;;  %v5755_v6 = vadd.f32 %v7980_v46, %v9539_v9  ;;  %v5593_v35 = vpop.f32.mrb[207].mxu1 }
 0x37c   : > { %v5792_v42 = vadd.f32 %v9622_v32, %v5753_v4  ;;  %8037 = vmatprep.mubr.bf16.mxu0 %v5853_v0 }
 0x37d   : > { %v5794_v15 = vadd.f32 %v9622_v32, %v5755_v6  ;;  %v5825_v33 = vmax.f32 %v5793_v30, 0.0 }
 0x37e   : > { %v5824_v5 = vmax.f32 %v5792_v42, 0.0 }
 0x37f   : > { %v5826_v21 = vmax.f32 %v5794_v15, 0.0 }
 0x380   : > { %v5854_v23 = vpack.c.bf16 %v5824_v5, %v5823_v28  ;;  %v7983_v59 = vpop.f32.mrb[208].mxu1 }
 0x381   : > { %v5757_v14 = vadd.f32 %v7983_v59, %v9542_v18  ;;  %v5605_v3 = vpop.f32.mrb[209].mxu1  ;;  %v5855_v11 = vpack.c.bf16 %v5826_v21, %v5825_v33 }
 0x382   : > { %v7984_v31 = vpop.f32.mrb[210].mxu1  ;;  %8038 = vmatmul.mubr.bf16.vlgmr.msra.gmra.mrb[240].mxu0 %v5854_v23 }
 0x383   : > { %v5607_v48 = vpop.f32.mrb[211].mxu1  ;;  %8041 = vmatprep.mubr.bf16.mxu0 %v5855_v11  ;;  %v5796_v9 = vadd.f32 %v9622_v32, %v5757_v14 }
 0x384   : > { %v5756_v53 = vadd.f32 %v5607_v48, %v9545_v63 }
 0x385   : > { %v5828_v25 = vmax.f32 %v5796_v9, 0.0 }
 0x386   : > { %v5795_v47 = vadd.f32 %v9622_v32, %v5756_v53 }
 0x388   : > { %v5827_v8 = vmax.f32 %v5795_v47, 0.0  ;;  %v7987_v45 = vpop.f32.mrb[212].mxu1 }
 0x389   : > { %v5619_v22 = vpop.f32.mrb[213].mxu1 }
 0x38a   : > { %v5758_v7 = vadd.f32 %v5619_v22, %v9550_v29  ;;  %v7988_v36 = vpop.f32.mrb[214].mxu1  ;;  %v5856_v18 = vpack.c.bf16 %v5828_v25, %v5827_v8 }
 0x38b   : > { %v5760_v12 = vadd.f32 %v7988_v36, %v9552_v10  ;;  %v5622_v50 = vpop.f32.mrb[215].mxu1 }
 0x38c   : > { %v5797_v39 = vadd.f32 %v9622_v32, %v5758_v7  ;;  %v5759_v37 = vadd.f32 %v5622_v50, %v9554_v55  ;;  %8042 = vmatmul.mubr.bf16.gmra.mrb[244].mxu0 %v5856_v18 }
 0x38d   : > { %v5799_v29 = vadd.f32 %v9622_v32, %v5760_v12 }
 0x38e   : > { %v5798_v63 = vadd.f32 %v9622_v32, %v5759_v37  ;;  %v5829_v44 = vmax.f32 %v5797_v39, 0.0 }
 0x38f   : > { %v5831_v42 = vmax.f32 %v5799_v29, 0.0 }
 0x390   : > { %v5830_v27 = vmax.f32 %v5798_v63, 0.0  ;;  %v7991_v56 = vpop.f32.mrb[216].mxu1 }
 0x391   : > { %v5762_v58 = vadd.f32 %v7991_v56, %v9559_v24  ;;  %v5634_v1 = vpop.f32.mrb[217].mxu1 }
 0x392   : > { %v5761_v4 = vadd.f32 %v5634_v1, %v9561_v62  ;;  %v7992_v46 = vpop.f32.mrb[218].mxu1  ;;  %v5857_v10 = vpack.c.bf16 %v5830_v27, %v5829_v44 }
 0x393   : > { %v5801_v0 = vadd.f32 %v9622_v32, %v5762_v58  ;;  %v5763_v30 = vadd.f32 %v7992_v46, %v9563_v17  ;;  %v5637_v55 = vpop.f32.mrb[219].mxu1 }
 0x394   : > { %v5800_v6 = vadd.f32 %v9622_v32, %v5761_v4  ;;  %8045 = vmatprep.mubr.bf16.mxu0 %v5857_v10 }
 0x395   : > { %v5802_v35 = vadd.f32 %v9622_v32, %v5763_v30  ;;  %v5833_v24 = vmax.f32 %v5801_v0, 0.0 }
 0x396   : > { %v5832_v15 = vmax.f32 %v5800_v6, 0.0 }
 0x397   : > { %v5834_v28 = vmax.f32 %v5802_v35, 0.0 }
 0x398   : > { %v7995_v5 = vpop.f32.mrb[220].mxu1  ;;  %v5858_v33 = vpack.c.bf16 %v5832_v15, %v5831_v42 }
 0x399   : > { %v5765_v62 = vadd.f32 %v7995_v5, %v9566_v60  ;;  %v5649_v21 = vpop.f32.mrb[221].mxu1  ;;  %v5859_v23 = vpack.c.bf16 %v5834_v28, %v5833_v24 }
 0x39a   : > { %v7996_v59 = vpop.f32.mrb[222].mxu1  ;;  %8046 = vmatmul.mubr.bf16.gmra.mrb[248].mxu0 %v5858_v33 }
 0x39b   : > { %v5651_v14 = vpop.f32.mrb[223].mxu1  ;;  %8049 = vmatprep.mubr.bf16.mxu0 %v5859_v23  ;;  %v5804_v17 = vadd.f32 %v9622_v32, %v5765_v62 }
 0x39c   : > { %v5764_v3 = vadd.f32 %v5651_v14, %v9569_v51 }
 0x39d   : > { %v5836_v31 = vmax.f32 %v5804_v17, 0.0 }
 0x39e   : > { %v5803_v11 = vadd.f32 %v9622_v32, %v5764_v3 }
 0x3a0   : > { %v5835_v48 = vmax.f32 %v5803_v11, 0.0  ;;  %v7999_v9 = vpop.f32.mrb[224].mxu1 }
 0x3a1   : > { %v5663_v53 = vpop.f32.mrb[225].mxu1 }
 0x3a2   : > { %v5766_v47 = vadd.f32 %v5663_v53, %v9574_v43  ;;  %v8000_v25 = vpop.f32.mrb[226].mxu1  ;;  %v5860_v60 = vpack.c.bf16 %v5836_v31, %v5835_v48 }
 0x3a3   : > { %v5768_v8 = vadd.f32 %v8000_v25, %v9576_v13  ;;  %v5666_v45 = vpop.f32.mrb[227].mxu1 }
 0x3a4   : > { %v5805_v22 = vadd.f32 %v9622_v32, %v5766_v47  ;;  %v5767_v7 = vadd.f32 %v5666_v45, %v9578_v61  ;;  %8050 = vmatmul.mubr.bf16.gmra.mrb[252].mxu0 %v5860_v60 }
 0x3a5   : > { %v5807_v43 = vadd.f32 %v9622_v32, %v5768_v8 }
 0x3a6   : > { %v5806_v51 = vadd.f32 %v9622_v32, %v5767_v7  ;;  %v5837_v36 = vmax.f32 %v5805_v22, 0.0 }
 0x3a7   : > { %v5839_v1 = vmax.f32 %v5807_v43, 0.0 }
 0x3a8   : > { %v5838_v18 = vmax.f32 %v5806_v51, 0.0  ;;  %v8003_v12 = vpop.f32.mrb[228].mxu1 }
 0x3a9   : > { %v5770_v50 = vadd.f32 %v8003_v12, %v9583_v52  ;;  %v5678_v39 = vpop.f32.mrb[229].mxu1 }
 0x3aa   : > { %v5769_v37 = vadd.f32 %v5678_v39, %v9585_v16  ;;  %v8004_v63 = vpop.f32.mrb[230].mxu1  ;;  %v5861_v13 = vpack.c.bf16 %v5838_v18, %v5837_v36 }
 0x3ab   : > { %v5809_v44 = vadd.f32 %v9622_v32, %v5770_v50  ;;  %v5771_v27 = vadd.f32 %v8004_v63, %v9587_v26  ;;  %v5681_v61 = vpop.f32.mrb[231].mxu1 }
 0x3ac   : > { %v5808_v56 = vadd.f32 %v9622_v32, %v5769_v37  ;;  %8053 = vmatprep.mubr.bf16.mxu0 %v5861_v13  ;;  %v6103_v61 = vld [vmem:[%s8451_s18 + $0x19] sm:$0xff] }
 0x3ad   : > { %v5810_v58 = vadd.f32 %v9622_v32, %v5771_v27  ;;  %v5841_v52 = vmax.f32 %v5809_v44, 0.0  ;;  %v9691_v44 = vld [vmem:[%s9811_s7] ss:$0 sm:$0xff] }
 0x3ae   : > { %v5840_v29 = vmax.f32 %v5808_v56, 0.0 }
 0x3af   : > { %v5842_v4 = vmax.f32 %v5810_v58, 0.0 }
 0x3b0   : > { %v5862_v46 = vpack.c.bf16 %v5840_v29, %v5839_v1  ;;  %v8007_v10 = vpop.f32.mrb[232].mxu1  ;;  %v6101_v1 = vld [vmem:[%s8451_s18 + $0x1] sm:$0xff] }
 0x3b1   : > { %v5773_v16 = vadd.f32 %v8007_v10, %v9590_v49  ;;  %v5693_v0 = vpop.f32.mrb[233].mxu1  ;;  %v5863_v30 = vpack.c.bf16 %v5842_v4, %v5841_v52  ;;  %v6104_v29 = vld [vmem:[%s8451_s18 + $0x21] sm:$0xff]  ;;  %v6102_v10 = vld [vmem:[%s8451_s18 + $0x9] sm:$0xff] }
 0x3b2   : > { %v8008_v55 = vpop.f32.mrb[234].mxu1  ;;  %8054 = vmatmul.mubr.bf16.gmra.mrb[0].mxu0 %v5862_v46 }
 0x3b3   : > { %v5695_v6 = vpop.f32.mrb[235].mxu1  ;;  %8057 = vmatprep.mubr.bf16.mxu0 %v5863_v30  ;;  %v5812_v26 = vadd.f32 %v9622_v32, %v5773_v16 }
 0x3b4   : > { %v5772_v35 = vadd.f32 %v5695_v6, %v9593_v41 }
 0x3b5   : > { %v5844_v15 = vmax.f32 %v5812_v26, 0.0 }
 0x3b6   : > { %v5811_v42 = vadd.f32 %v9622_v32, %v5772_v35 }
 0x3b8   : > { %v5843_v24 = vmax.f32 %v5811_v42, 0.0  ;;  %v8011_v28 = vpop.f32.mrb[236].mxu1 }
 0x3b9   : > { %v5707_v5 = vpop.f32.mrb[237].mxu1 }
 0x3ba   : > { %v5864_v33 = vpack.c.bf16 %v5844_v15, %v5843_v24  ;;  %v5774_v62 = vadd.f32 %v5707_v5, %v9598_v54  ;;  %v8012_v49 = vpop.f32.mrb[238].mxu1  ;;  %v6107_v24 = vld [vmem:[%s8451_s18 + $0x49] sm:$0xff] }
 0x3bb   : > { %v5776_v21 = vadd.f32 %v8012_v49, %v9600_v20  ;;  %v5710_v23 = vpop.f32.mrb[239].mxu1 }
 0x3bc   : > { %v5813_v59 = vadd.f32 %v9622_v32, %v5774_v62  ;;  %v5775_v14 = vadd.f32 %v5710_v23, %v9602_v2  ;;  %8058 = vmatmul.mubr.bf16.gmra.mrb[4].mxu0 %v5864_v33  ;;  %v6105_v33 = vld [vmem:[%s8451_s18 + $0x31] sm:$0xff] }
 0x3bd   : > { %v5815_v9 = vadd.f32 %v9622_v32, %v5776_v21  ;;  %v6108_v21 = vld [vmem:[%s8451_s18 + $0x51] sm:$0xff] }
 0x3be   : > { %v5814_v41 = vadd.f32 %v9622_v32, %v5775_v14  ;;  %v5845_v17 = vmax.f32 %v5813_v59, 0.0 }
 0x3bf   : > { %v5847_v45 = vmax.f32 %v5815_v9, 0.0 }
 0x3c0   : > { %v5846_v3 = vmax.f32 %v5814_v41, 0.0  ;;  %v8015_v11 = vpop.f32.mrb[240].mxu1  ;;  %v6106_v41 = vld [vmem:[%s8451_s18 + $0x39] sm:$0xff] }
 0x3c1   : > { %v5778_v31 = vadd.f32 %v8015_v11, %v9607_v38  ;;  %v5722_v48 = vpop.f32.mrb[241].mxu1 }
 0x3c2   : > { %v5777_v54 = vadd.f32 %v5722_v48, %v9609_v57  ;;  %v8016_v53 = vpop.f32.mrb[242].mxu1  ;;  %v5865_v20 = vpack.c.bf16 %v5846_v3, %v5845_v17 }
 0x3c3   : > { %v5817_v47 = vadd.f32 %v9622_v32, %v5778_v31  ;;  %v5779_v25 = vadd.f32 %v8016_v53, %v9611_v40  ;;  %v5725_v2 = vpop.f32.mrb[243].mxu1 }
 0x3c4   : > { %v5816_v60 = vadd.f32 %v9622_v32, %v5777_v54  ;;  %8061 = vmatprep.mubr.bf16.mxu0 %v5865_v20 }
 0x3c5   : > { %v5818_v8 = vadd.f32 %v9622_v32, %v5779_v25  ;;  %v5849_v38 = vmax.f32 %v5817_v47, 0.0  ;;  %v6111_v47 = vld [vmem:[%s8451_s18 + $0x79] sm:$0xff] }
 0x3c6   : > { %v5848_v22 = vmax.f32 %v5816_v60, 0.0  ;;  %v6109_v60 = vld [vmem:[%s8451_s18 + $0x61] sm:$0xff] }
 0x3c7   : > { %v5850_v7 = vmax.f32 %v5818_v8, 0.0 }
 0x3c8   : > { %v5866_v51 = vpack.c.bf16 %v5848_v22, %v5847_v45  ;;  %v8019_v36 = vpop.f32.mrb[244].mxu1  ;;  %v6112_v22 = vld [vmem:[%s8451_s18 + $0x81] sm:$0xff] }
 0x3c9   : > { %v5781_v57 = vadd.f32 %v8019_v36, %v9614_v34  ;;  %v5737_v18 = vpop.f32.mrb[245].mxu1  ;;  %v5867_v12 = vpack.c.bf16 %v5850_v7, %v5849_v38  ;;  %v6110_v36 = vld [vmem:[%s8451_s18 + $0x69] sm:$0xff] }
 0x3ca   : > { %v8020_v50 = vpop.f32.mrb[246].mxu1  ;;  %8062 = vmatmul.mubr.bf16.gmra.mrb[8].mxu0 %v5866_v51 }
 0x3cb   : > { %v5739_v40 = vpop.f32.mrb[247].mxu1  ;;  %8065 = vmatprep.mubr.bf16.mxu0 %v5867_v12  ;;  %v5820_v39 = vadd.f32 %v9622_v32, %v5781_v57 }
 0x3cc   : > { %v5780_v43 = vadd.f32 %v5739_v40, %v9617_v19 }
 0x3cd   : > { %v5852_v63 = vmax.f32 %v5820_v39, 0.0 }
 0x3ce   : > { %v5819_v37 = vadd.f32 %v9622_v32, %v5780_v43 }
 0x3d0   : > { %v5851_v13 = vmax.f32 %v5819_v37, 0.0 }
 0x3d2   : > { %v5868_v34 = vpack.c.bf16 %v5852_v63, %v5851_v13  ;;  %v6115_v13 = vld [vmem:[%s8451_s18 + $0xa9] sm:$0xff] }
 0x3d4   : > { %8066 = vmatmul.mubr.bf16.gmra.mrb[12].mxu0 %v5868_v34 }
 0x455   : > { %v8039_v27 = vpop.f32.mrb[240].mxu0 }
 0x456   : > { %v5983_v56 = vadd.f32 %v8039_v27, %v9691_v44  ;;  %v5974_v58 = vpop.f32.mrb[241].mxu0 }
 0x457   : > { %v5975_v19 = vadd.f32 %v9691_v44, %v5974_v58  ;;  %v8040_v32 = vpop.f32.mrb[242].mxu0 }
 0x458   : > { %v6135_v52 = vadd.f32 %v6103_v61, %v5983_v56  ;;  %v5986_v4 = vadd.f32 %v8040_v32, %v9691_v44  ;;  %v5977_v46 = vpop.f32.mrb[243].mxu0  ;;  %v6113_v61 = vld [vmem:[%s8451_s18 + $0x91] sm:$0xff] }
 0x459   : > { %v6133_v16 = vadd.f32 %v6101_v1, %v5975_v19  ;;  %v5978_v0 = vadd.f32 %v9691_v44, %v5977_v46  ;;  %v6116_v1 = vld [vmem:[%s8451_s18 + $0xb1] sm:$0xff] }
 0x45a   : > { %v6167_v30 = vmax.f32 %v6135_v52, 0.0  ;;  %v6136_v55 = vadd.f32 %v6104_v29, %v5986_v4  ;;  %v6114_v52 = vld [vmem:[%s8451_s18 + $0x99] sm:$0xff] }
 0x45b   : > { %v6165_v6 = vmax.f32 %v6133_v16, 0.0  ;;  %v6134_v26 = vadd.f32 %v6102_v10, %v5978_v0 }
 0x45c   : > { %6199 = vst [vmem:[%s9704_s16 + $0x10] sm:$0xff] %v6167_v30  ;;  %v6168_v35 = vmax.f32 %v6136_v55, 0.0 }
 0x45d   : > { %6197 = vst [vmem:[%s9704_s16] sm:$0xff] %v6165_v6  ;;  %v6166_v42 = vmax.f32 %v6134_v26, 0.0 }
 0x45e   : > { %6200 = vst [vmem:[%s9704_s16 + $0x18] sm:$0xff] %v6168_v35  ;;  %v6119_v35 = vld [vmem:[%s8451_s18 + $0xd9] sm:$0xff] }
 0x45f   : > { %6198 = vst [vmem:[%s9704_s16 + $0x8] sm:$0xff] %v6166_v42  ;;  %v8043_v15 = vpop.f32.mrb[244].mxu0 }
 0x460   : > { %v5999_v28 = vadd.f32 %v8043_v15, %v9691_v44  ;;  %v5990_v5 = vpop.f32.mrb[245].mxu0 }
 0x461   : > { %v5991_v62 = vadd.f32 %v9691_v44, %v5990_v5  ;;  %v8044_v49 = vpop.f32.mrb[246].mxu0 }
 0x462   : > { %v6139_v23 = vadd.f32 %v6107_v24, %v5999_v28  ;;  %v6002_v59 = vadd.f32 %v8044_v49, %v9691_v44  ;;  %v5993_v14 = vpop.f32.mrb[247].mxu0  ;;  %v6117_v24 = vld [vmem:[%s8451_s18 + $0xc1] sm:$0xff] }
 0x463   : > { %v6137_v17 = vadd.f32 %v6105_v33, %v5991_v62  ;;  %v5994_v3 = vadd.f32 %v9691_v44, %v5993_v14  ;;  %v6120_v33 = vld [vmem:[%s8451_s18 + $0xe1] sm:$0xff] }
 0x464   : > { %v6171_v11 = vmax.f32 %v6139_v23, 0.0  ;;  %v6140_v31 = vadd.f32 %v6108_v21, %v6002_v59  ;;  %v6118_v23 = vld [vmem:[%s8451_s18 + $0xc9] sm:$0xff] }
 0x465   : > { %v6169_v48 = vmax.f32 %v6137_v17, 0.0  ;;  %v6138_v9 = vadd.f32 %v6106_v41, %v5994_v3 }
 0x466   : > { %6203 = vst [vmem:[%s9704_s16 + $0x30] sm:$0xff] %v6171_v11  ;;  %v6172_v54 = vmax.f32 %v6140_v31, 0.0 }
 0x467   : > { %6201 = vst [vmem:[%s9704_s16 + $0x20] sm:$0xff] %v6169_v48  ;;  %v6170_v53 = vmax.f32 %v6138_v9, 0.0 }
 0x468   : > { %6204 = vst [vmem:[%s9704_s16 + $0x38] sm:$0xff] %v6172_v54  ;;  %v6123_v54 = vld [vmem:[%s8451_s18 + $0x109] sm:$0xff] }
 0x469   : > { %6202 = vst [vmem:[%s9704_s16 + $0x28] sm:$0xff] %v6170_v53 }
 0x46d   : > { %v8047_v20 = vpop.f32.mrb[248].mxu0 }
 0x46e   : > { %v6015_v25 = vadd.f32 %v8047_v20, %v9691_v44  ;;  %v6006_v2 = vpop.f32.mrb[249].mxu0 }
 0x46f   : > { %v6007_v8 = vadd.f32 %v9691_v44, %v6006_v2  ;;  %v8048_v45 = vpop.f32.mrb[250].mxu0 }
 0x470   : > { %v6143_v38 = vadd.f32 %v6111_v47, %v6015_v25  ;;  %v6018_v7 = vadd.f32 %v8048_v45, %v9691_v44  ;;  %v6009_v51 = vpop.f32.mrb[251].mxu0  ;;  %v6121_v47 = vld [vmem:[%s8451_s18 + $0xf1] sm:$0xff] }
 0x471   : > { %v6141_v57 = vadd.f32 %v6109_v60, %v6007_v8  ;;  %v6010_v18 = vadd.f32 %v9691_v44, %v6009_v51  ;;  %v6124_v60 = vld [vmem:[%s8451_s18 + $0x111] sm:$0xff] }
 0x472   : > { %v6175_v12 = vmax.f32 %v6143_v38, 0.0  ;;  %v6144_v50 = vadd.f32 %v6112_v22, %v6018_v7  ;;  %v6122_v38 = vld [vmem:[%s8451_s18 + $0xf9] sm:$0xff] }
 0x473   : > { %v6173_v40 = vmax.f32 %v6141_v57, 0.0  ;;  %v6142_v39 = vadd.f32 %v6110_v36, %v6010_v18 }
 0x474   : > { %6207 = vst [vmem:[%s9704_s16 + $0x50] sm:$0xff] %v6175_v12  ;;  %v6176_v43 = vmax.f32 %v6144_v50, 0.0 }
 0x475   : > { %6205 = vst [vmem:[%s9704_s16 + $0x40] sm:$0xff] %v6173_v40  ;;  %v6174_v37 = vmax.f32 %v6142_v39, 0.0 }
 0x476   : > { %6208 = vst [vmem:[%s9704_s16 + $0x58] sm:$0xff] %v6176_v43  ;;  %v6127_v43 = vld [vmem:[%s8451_s18 + $0x139] sm:$0xff] }
 0x477   : > { %6206 = vst [vmem:[%s9704_s16 + $0x48] sm:$0xff] %v6174_v37  ;;  %v8051_v63 = vpop.f32.mrb[252].mxu0 }
 0x478   : > { %v6031_v34 = vadd.f32 %v8051_v63, %v9691_v44  ;;  %v6022_v27 = vpop.f32.mrb[253].mxu0 }
 0x479   : > { %v6023_v56 = vadd.f32 %v9691_v44, %v6022_v27  ;;  %v8052_v58 = vpop.f32.mrb[254].mxu0 }
 0x47a   : > { %v6147_v19 = vadd.f32 %v6115_v13, %v6031_v34  ;;  %v6034_v32 = vadd.f32 %v8052_v58, %v9691_v44  ;;  %v6025_v29 = vpop.f32.mrb[255].mxu0  ;;  %v6125_v13 = vld [vmem:[%s8451_s18 + $0x121] sm:$0xff] }
 0x47b   : > { %v6145_v4 = vadd.f32 %v6113_v61, %v6023_v56  ;;  %v6026_v46 = vadd.f32 %v9691_v44, %v6025_v29  ;;  %v6128_v61 = vld [vmem:[%s8451_s18 + $0x141] sm:$0xff] }
 0x47c   : > { %v6179_v10 = vmax.f32 %v6147_v19, 0.0  ;;  %v6148_v16 = vadd.f32 %v6116_v1, %v6034_v32  ;;  %v6126_v19 = vld [vmem:[%s8451_s18 + $0x129] sm:$0xff] }
 0x47d   : > { %v6177_v0 = vmax.f32 %v6145_v4, 0.0  ;;  %v6146_v30 = vadd.f32 %v6114_v52, %v6026_v46 }
 0x47e   : > { %6211 = vst [vmem:[%s9704_s16 + $0x70] sm:$0xff] %v6179_v10  ;;  %v6180_v55 = vmax.f32 %v6148_v16, 0.0 }
 0x47f   : > { %6209 = vst [vmem:[%s9704_s16 + $0x60] sm:$0xff] %v6177_v0  ;;  %v6178_v6 = vmax.f32 %v6146_v30, 0.0 }
 0x480   : > { %6212 = vst [vmem:[%s9704_s16 + $0x78] sm:$0xff] %v6180_v55  ;;  %v6131_v55 = vld [vmem:[%s8451_s18 + $0x169] sm:$0xff] }
 0x481   : > { %6210 = vst [vmem:[%s9704_s16 + $0x68] sm:$0xff] %v6178_v6 }
 0x485   : > { %v8055_v26 = vpop.f32.mrb[0].mxu0 }
 0x486   : > { %v6047_v42 = vadd.f32 %v8055_v26, %v9691_v44  ;;  %v6038_v15 = vpop.f32.mrb[1].mxu0 }
 0x487   : > { %v6039_v28 = vadd.f32 %v9691_v44, %v6038_v15  ;;  %v8056_v5 = vpop.f32.mrb[2].mxu0 }
 0x488   : > { %v6151_v62 = vadd.f32 %v6119_v35, %v6047_v42  ;;  %v6050_v49 = vadd.f32 %v8056_v5, %v9691_v44  ;;  %v6041_v21 = vpop.f32.mrb[3].mxu0  ;;  %v6129_v35 = vld [vmem:[%s8451_s18 + $0x151] sm:$0xff] }
 0x489   : > { %v6149_v59 = vadd.f32 %v6117_v24, %v6039_v28  ;;  %v6042_v14 = vadd.f32 %v9691_v44, %v6041_v21  ;;  %v6132_v24 = vld [vmem:[%s8451_s18 + $0x171] sm:$0xff] }
 0x48a   : > { %v6183_v41 = vmax.f32 %v6151_v62, 0.0  ;;  %v6152_v17 = vadd.f32 %v6120_v33, %v6050_v49  ;;  %v6130_v62 = vld [vmem:[%s8451_s18 + $0x159] sm:$0xff] }
 0x48b   : > { %v6181_v3 = vmax.f32 %v6149_v59, 0.0  ;;  %v6150_v11 = vadd.f32 %v6118_v23, %v6042_v14 }
 0x48c   : > { %6215 = vst [vmem:[%s9704_s16 + $0x90] sm:$0xff] %v6183_v41  ;;  %v6184_v31 = vmax.f32 %v6152_v17, 0.0 }
 0x48d   : > { %6213 = vst [vmem:[%s9704_s16 + $0x80] sm:$0xff] %v6181_v3  ;;  %v6182_v48 = vmax.f32 %v6150_v11, 0.0 }
 0x48e   : > { %6216 = vst [vmem:[%s9704_s16 + $0x98] sm:$0xff] %v6184_v31 }
 0x48f   : > { %6214 = vst [vmem:[%s9704_s16 + $0x88] sm:$0xff] %v6182_v48  ;;  %v8059_v9 = vpop.f32.mrb[4].mxu0 }
 0x490   : > { %v6063_v53 = vadd.f32 %v8059_v9, %v9691_v44  ;;  %v6054_v20 = vpop.f32.mrb[5].mxu0 }
 0x491   : > { %v6055_v25 = vadd.f32 %v9691_v44, %v6054_v20  ;;  %v8060_v2 = vpop.f32.mrb[6].mxu0 }
 0x492   : > { %v6155_v8 = vadd.f32 %v6123_v54, %v6063_v53  ;;  %v6066_v45 = vadd.f32 %v8060_v2, %v9691_v44  ;;  %v6057_v22 = vpop.f32.mrb[7].mxu0 }
 0x493   : > { %v6153_v7 = vadd.f32 %v6121_v47, %v6055_v25  ;;  %v6058_v51 = vadd.f32 %v9691_v44, %v6057_v22 }
 0x494   : > { %v6187_v36 = vmax.f32 %v6155_v8, 0.0  ;;  %v6156_v57 = vadd.f32 %v6124_v60, %v6066_v45 }
 0x495   : > { %v6185_v18 = vmax.f32 %v6153_v7, 0.0  ;;  %v6154_v12 = vadd.f32 %v6122_v38, %v6058_v51 }
 0x496   : > { %6219 = vst [vmem:[%s9704_s16 + $0xb0] sm:$0xff] %v6187_v36  ;;  %v6188_v50 = vmax.f32 %v6156_v57, 0.0 }
 0x497   : > { %6217 = vst [vmem:[%s9704_s16 + $0xa0] sm:$0xff] %v6185_v18  ;;  %v6186_v40 = vmax.f32 %v6154_v12, 0.0 }
 0x498   : > { %6220 = vst [vmem:[%s9704_s16 + $0xb8] sm:$0xff] %v6188_v50 }
 0x499   : > { %6218 = vst [vmem:[%s9704_s16 + $0xa8] sm:$0xff] %v6186_v40 }
 0x49d   : > { %v8063_v39 = vpop.f32.mrb[8].mxu0 }
 0x49e   : > { %v6079_v37 = vadd.f32 %v8063_v39, %v9691_v44  ;;  %v6070_v63 = vpop.f32.mrb[9].mxu0 }
 0x49f   : > { %v6071_v34 = vadd.f32 %v9691_v44, %v6070_v63  ;;  %v8064_v27 = vpop.f32.mrb[10].mxu0 }
 0x4a0   : > { %v6159_v56 = vadd.f32 %v6127_v43, %v6079_v37  ;;  %v6082_v58 = vadd.f32 %v8064_v27, %v9691_v44  ;;  %v6073_v1 = vpop.f32.mrb[11].mxu0 }
 0x4a1   : > { %v6157_v32 = vadd.f32 %v6125_v13, %v6071_v34  ;;  %v6074_v29 = vadd.f32 %v9691_v44, %v6073_v1 }
 0x4a2   : > { %v6191_v52 = vmax.f32 %v6159_v56, 0.0  ;;  %v6160_v4 = vadd.f32 %v6128_v61, %v6082_v58 }
 0x4a3   : > { %v6189_v46 = vmax.f32 %v6157_v32, 0.0  ;;  %v6158_v10 = vadd.f32 %v6126_v19, %v6074_v29 }
 0x4a4   : > { %6223 = vst [vmem:[%s9704_s16 + $0xd0] sm:$0xff] %v6191_v52  ;;  %v6192_v16 = vmax.f32 %v6160_v4, 0.0 }
 0x4a5   : > { %6221 = vst [vmem:[%s9704_s16 + $0xc0] sm:$0xff] %v6189_v46  ;;  %v6190_v0 = vmax.f32 %v6158_v10, 0.0 }
 0x4a6   : > { %6224 = vst [vmem:[%s9704_s16 + $0xd8] sm:$0xff] %v6192_v16 }
 0x4a7   : > { %6222 = vst [vmem:[%s9704_s16 + $0xc8] sm:$0xff] %v6190_v0  ;;  %v8067_v30 = vpop.f32.mrb[12].mxu0 }
 0x4a8   : > { %v6095_v6 = vadd.f32 %v8067_v30, %v9691_v44  ;;  %v6086_v26 = vpop.f32.mrb[13].mxu0 }
 0x4a9   : > { %v6087_v42 = vadd.f32 %v9691_v44, %v6086_v26  ;;  %v8068_v15 = vpop.f32.mrb[14].mxu0 }
 0x4aa   : > { %v6163_v28 = vadd.f32 %v6131_v55, %v6095_v6  ;;  %v6098_v5 = vadd.f32 %v8068_v15, %v9691_v44  ;;  %v6089_v33 = vpop.f32.mrb[15].mxu0 }
 0x4ab   : > { %v6161_v49 = vadd.f32 %v6129_v35, %v6087_v42  ;;  %v6090_v21 = vadd.f32 %v9691_v44, %v6089_v33 }
 0x4ac   : > { %v6195_v23 = vmax.f32 %v6163_v28, 0.0  ;;  %v6164_v59 = vadd.f32 %v6132_v24, %v6098_v5 }
 0x4ad   : > { %v6193_v14 = vmax.f32 %v6161_v49, 0.0  ;;  %v6162_v41 = vadd.f32 %v6130_v62, %v6090_v21 }
 0x4ae   : > { %6227 = vst [vmem:[%s9704_s16 + $0xf0] sm:$0xff] %v6195_v23  ;;  %v6196_v17 = vmax.f32 %v6164_v59, 0.0 }
 0x4af   : > { %6225 = vst [vmem:[%s9704_s16 + $0xe0] sm:$0xff] %v6193_v14  ;;  %v6194_v3 = vmax.f32 %v6162_v41, 0.0 }
 0x4b0   : > { %6228 = vst [vmem:[%s9704_s16 + $0xf8] sm:$0xff] %v6196_v17 }
 0x4b1   : > { %6226 = vst [vmem:[%s9704_s16 + $0xe8] sm:$0xff] %v6194_v3 }
 0x4b2 PF: > { %s18_s29 = sadd.s32 1, %s8355_s29   ;;  %s9854_s27 = smov %s8351_s28 }
 0x4b3   : > { %p15_p5 = scmp.ge.s32.totalorder %s18_s29, 4   ;;  %s9855_s28 = smov %s9857_s30 }
 0x4b5   :  { %17 = sbr.rel (!%p15_p5) target bundleno = 2 (0x2), region = 100 }

</bundles_post_ra>
